<compile_context>
chip_gen: v5e
topology: v5e:2x2
jax: 0.10.0
libtpu: 0.0.40
codegen_flags: <defaults>
</compile_context>

<pallas_src>
import functools

import jax
import jax.numpy as jnp
from jax.experimental import pallas as pl
from jax.experimental.pallas import tpu as pltpu


K_IN = 784
K_PAD = 896          # 7 * 128 — lane-aligned K for the fc1 matmul
TB_MAX = 512         # batch tile (rows fed to the MXU per grid step)


def _use_bf16_epilogue():
    """bf16 VALU exists on v6e/v7x; keep the epilogue in f32 on v5e and older.
    Purely a perf heuristic — both paths are numerically mirrored in the ref."""
    try:
        kind = jax.devices()[0].device_kind.lower()
        return not any(t in kind for t in ("v2", "v3", "v4", "v5"))
    except Exception:
        return True


# ---------------------------------------------------------------------------
# Kernel factory: one batch tile through the full MLP
#   fc1 (896->1024) -> LeakyReLU(0.2)
#   fc2 (1024->512) -> LeakyReLU(0.2)
#   fc3 (512->128)  -> LeakyReLU(0.2)   (minimal fix for the buggy reference)
#   fc4 (128->1)    -> Sigmoid          (emitted lane-dense as (1, tb))
# ---------------------------------------------------------------------------
@functools.lru_cache(maxsize=None)
def _make_kernel(bf16_epilogue: bool):

    def epilogue(acc_f32, b_ref):
        # bias add in f32 (accumulator is f32), LeakyReLU as mul+max
        h = acc_f32 + b_ref[...]
        if bf16_epilogue:
            h = h.astype(jnp.bfloat16)
            return jnp.maximum(h, 0.2 * h)                 # bf16 VALU (v6e/v7x)
        return jnp.maximum(h, 0.2 * h).astype(jnp.bfloat16)  # f32 VALU (v5e)

    def kernel(
        x_ref,                      # (tb, 896) bf16
        w1_ref, b1_ref,             # (896, 1024) bf16, (1, 1024) f32
        w2_ref, b2_ref,             # (1024, 512) bf16, (1, 512)  f32
        w3_ref, b3_ref,             # (512, 128)  bf16, (1, 128)  f32
        w4_ref,                     # (1, 128) f32
        b4_ref,                     # (1,) f32 in SMEM
        o_ref,                      # (1, tb) f32  — lane-dense output
    ):
        x = x_ref[...]

        h = jnp.dot(x, w1_ref[...], preferred_element_type=jnp.float32)
        h = epilogue(h, b1_ref)                            # (tb, 1024) bf16
        # TODO(synk): Dropout(0.3) -> identity (eval-mode semantics).

        h = jnp.dot(h, w2_ref[...], preferred_element_type=jnp.float32)
        h = epilogue(h, b2_ref)                            # (tb, 512) bf16

        h = jnp.dot(h, w3_ref[...], preferred_element_type=jnp.float32)
        h = epilogue(h, b3_ref)                            # (tb, 128) bf16

        # fc4: output width is 1 -> elementwise mul + lane reduction in f32
        logit = jnp.sum(h.astype(jnp.float32) * w4_ref[...], axis=-1) + b4_ref[0]

        # sigmoid = 1 / (1 + exp(-z)); exp + approx reciprocal both hit the EUP
        z = pl.reciprocal(1.0 + jnp.exp(-logit), approx=True)   # (tb,)
        o_ref[...] = z.reshape(1, -1)                           # (1, tb)

    return kernel


# ---------------------------------------------------------------------------
# One-time parameter prep (hoisted out of the per-call forward)
# ---------------------------------------------------------------------------
def prepare_params(params):
    """Cast weights to bf16, zero-pad W1's K dim 784->896, reshape biases."""
    w1, b1, w2, b2, w3, b3, w4, b4 = params
    w1_p = jnp.pad(w1.astype(jnp.bfloat16), ((0, K_PAD - K_IN), (0, 0)))
    w2_p = w2.astype(jnp.bfloat16)
    w3_p = w3.astype(jnp.bfloat16)
    w4_p = w4.reshape(1, 128).astype(jnp.float32)
    b1_p = b1.reshape(1, -1).astype(jnp.float32)
    b2_p = b2.reshape(1, -1).astype(jnp.float32)
    b3_p = b3.reshape(1, -1).astype(jnp.float32)
    b4_p = b4.reshape(1).astype(jnp.float32)          # SMEM scalar
    return (w1_p, b1_p, w2_p, b2_p, w3_p, b3_p, w4_p, b4_p)


def _batch_tiling(B):
    """Pick (tile, padded_batch).  Rounds to 16 (bf16 sublane pack); for large
    batches guarantees >=2 grid steps (megacore on v7x) with tb % 128 == 0 so
    the lane-dense output block stays legal."""
    b16 = max(16, pl.cdiv(B, 16) * 16)
    if b16 < 512:
        return b16, b16                                   # single small tile
    tb = min(TB_MAX, pl.cdiv(pl.cdiv(b16, 2), 128) * 128)
    b_pad = pl.cdiv(b16, tb) * tb
    return tb, b_pad


def discriminator_forward(x, prepped_params):
    """x: (B, 1, 28, 28) or (B, 784). Returns (B, 1) float32 probabilities."""
    B = x.shape[0]
    w1_p, b1_p, w2_p, b2_p, w3_p, b3_p, w4_p, b4_p = prepped_params

    tb, b_pad = _batch_tiling(B)
    grid = (b_pad // tb,)

    x2d = x.reshape(B, K_IN).astype(jnp.bfloat16)
    x_p = jnp.pad(x2d, ((0, b_pad - B), (0, K_PAD - K_IN)))

    kernel = _make_kernel(_use_bf16_epilogue())

    const = lambda shape: pl.BlockSpec(shape, lambda i: (0, 0))

    out = pl.pallas_call(
        kernel,
        out_shape=jax.ShapeDtypeStruct((1, b_pad), jnp.float32),
        grid=grid,
        in_specs=[
            pl.BlockSpec((tb, K_PAD), lambda i: (i, 0)),   # x: moves with grid
            const((K_PAD, 1024)), const((1, 1024)),        # w1, b1 (VMEM-resident)
            const((1024, 512)),   const((1, 512)),         # w2, b2
            const((512, 128)),    const((1, 128)),         # w3, b3
            const((1, 128)),                                # w4
            pl.BlockSpec(memory_space=pltpu.MemorySpace.SMEM),  # b4 scalar
        ],
        out_specs=pl.BlockSpec((1, tb), lambda i: (0, i)),  # lane-dense logits
        compiler_params=pltpu.CompilerParams(
            dimension_semantics=("parallel",),   # shard batch tiles over TCs
            vmem_limit_bytes=40 << 20,           # fits v7x 64 MiB with headroom
        ),
    )(x_p, w1_p, b1_p, w2_p, b2_p, w3_p, b3_p, w4_p, b4_p)

    return out[0, :B].reshape(B, 1)


# ---------------------------------------------------------------------------
# Deterministic parameter init (PyTorch nn.Linear default: U(-1/sqrt(in), +))
# Weights are created as (in_features, out_features) for the x @ W layout.
# ---------------------------------------------------------------------------
def init_params(key):
    dims = [(784, 1024), (1024, 512), (512, 128), (128, 1)]
    params = []
    for (din, dout) in dims:
        key, kw, kb = jax.random.split(key, 3)
        bound = 1.0 / (din ** 0.5)
        w = jax.random.uniform(kw, (din, dout), jnp.float32, -bound, bound)
        b = jax.random.uniform(kb, (dout,), jnp.float32, -bound, bound)
        params += [w, b]
    return tuple(params)


def reference_forward(x, params, bf16_epilogue=True):
    """Plain-JAX reference mirroring the kernel's bf16-matmul / epilogue
    numerics (eval-mode dropout)."""
    B = x.shape[0]
    w1, b1, w2, b2, w3, b3, w4, b4 = params
    h = x.reshape(B, K_IN).astype(jnp.bfloat16)
    for w, b in ((w1, b1), (w2, b2), (w3, b3)):
        acc = jnp.dot(h, w.astype(jnp.bfloat16),
                      preferred_element_type=jnp.float32) + b.astype(jnp.float32)
        if bf16_epilogue:
            acc = acc.astype(jnp.bfloat16)
            h = jnp.maximum(acc, 0.2 * acc)
        else:
            h = jnp.maximum(acc, 0.2 * acc).astype(jnp.bfloat16)
    logit = jnp.sum(h.astype(jnp.float32) * w4.reshape(1, -1), axis=-1,
                    keepdims=True) + b4
    return jax.nn.sigmoid(logit)


if __name__ == "__main__":
    key = jax.random.PRNGKey(0)
    kp, kx = jax.random.split(key)
    params = init_params(kp)
    prepped = prepare_params(params)      # one-time weight layout prep

    # MNIST-like input, small batch
    x = jax.random.normal(kx, (2, 1, 28, 28), jnp.float32)

    out = jax.block_until_ready(discriminator_forward(x, prepped))

    ref = reference_forward(x, params, bf16_epilogue=_use_bf16_epilogue())
    assert out.shape == (2, 1), out.shape
    # bf16 matmuls + approx reciprocal in the sigmoid -> loose-ish tolerance
    assert jnp.allclose(out, ref, atol=2e-3, rtol=2e-3), (out, ref)

    print("KERNEL_OK")
</pallas_src>

<mosaic_0001>
module attributes {stable_mosaic.version = 11 : i64} {
  func.func @kernel(%arg0: i32, %arg1: memref<16x896xbf16, #tpu.memory_space<vmem>>, %arg2: memref<896x1024xbf16, #tpu.memory_space<vmem>>, %arg3: memref<1x1024xf32, #tpu.memory_space<vmem>>, %arg4: memref<1024x512xbf16, #tpu.memory_space<vmem>>, %arg5: memref<1x512xf32, #tpu.memory_space<vmem>>, %arg6: memref<512x128xbf16, #tpu.memory_space<vmem>>, %arg7: memref<1x128xf32, #tpu.memory_space<vmem>>, %arg8: memref<1x128xf32, #tpu.memory_space<vmem>>, %arg9: memref<1xf32, #tpu.memory_space<smem>>, %arg10: memref<1x16xf32, #tpu.memory_space<vmem>>) attributes {dimension_semantics = [#tpu.dimension_semantics<parallel>], iteration_bounds = array<i64: 1>, scalar_prefetch = 0 : i64, scratch_operands = 0 : i64, tpu.core_type = #tpu.core_type<tc>, window_params = [{transform_indices = @transform_0, window_bounds = array<i64: 16, 896>}, {pipeline_mode = #tpu.pipeline_mode<synchronous>, transform_indices = @transform_1, window_bounds = array<i64: 896, 1024>}, {pipeline_mode = #tpu.pipeline_mode<synchronous>, transform_indices = @transform_2, window_bounds = array<i64: 1, 1024>}, {pipeline_mode = #tpu.pipeline_mode<synchronous>, transform_indices = @transform_3, window_bounds = array<i64: 1024, 512>}, {pipeline_mode = #tpu.pipeline_mode<synchronous>, transform_indices = @transform_4, window_bounds = array<i64: 1, 512>}, {pipeline_mode = #tpu.pipeline_mode<synchronous>, transform_indices = @transform_5, window_bounds = array<i64: 512, 128>}, {pipeline_mode = #tpu.pipeline_mode<synchronous>, transform_indices = @transform_6, window_bounds = array<i64: 1, 128>}, {pipeline_mode = #tpu.pipeline_mode<synchronous>, transform_indices = @transform_7, window_bounds = array<i64: 1, 128>}, {transform_indices = @transform_8, window_bounds = array<i64: 1>}, {transform_indices = @transform_9, window_bounds = array<i64: 1, 16>}]} {
    %c0 = arith.constant 0 : index
    %c0_0 = arith.constant 0 : index
    %0 = vector.load %arg1[%c0, %c0_0] : memref<16x896xbf16, #tpu.memory_space<vmem>>, vector<16x896xbf16>
    %c0_1 = arith.constant 0 : index
    %c0_2 = arith.constant 0 : index
    %1 = vector.load %arg2[%c0_1, %c0_2] : memref<896x1024xbf16, #tpu.memory_space<vmem>>, vector<896x1024xbf16>
    %cst = arith.constant dense<0.000000e+00> : vector<16x1024xf32>
    %2 = tpu.matmul %0, %1, %cst {dimension_numbers = #tpu.dot_dimension_numbers<[1], [0], [0], [1], [0, 0, 1, 1], [], []>} : vector<16x896xbf16>, vector<896x1024xbf16>, vector<16x1024xf32> -> vector<16x1024xf32>
    %c0_3 = arith.constant 0 : index
    %c0_4 = arith.constant 0 : index
    %3 = vector.load %arg3[%c0_3, %c0_4] : memref<1x1024xf32, #tpu.memory_space<vmem>>, vector<1x1024xf32>
    %4 = vector.broadcast %3 : vector<1x1024xf32> to vector<16x1024xf32>
    %5 = arith.addf %2, %4 : vector<16x1024xf32>
    %6 = arith.truncf %5 : vector<16x1024xf32> to vector<16x1024xbf16>
    %cst_5 = arith.constant 2.001950e-01 : bf16
    %7 = vector.broadcast %cst_5 : bf16 to vector<16x1024xbf16>
    %8 = arith.mulf %7, %6 : vector<16x1024xbf16>
    %9 = arith.maximumf %6, %8 : vector<16x1024xbf16>
    %c0_6 = arith.constant 0 : index
    %c0_7 = arith.constant 0 : index
    %10 = vector.load %arg4[%c0_6, %c0_7] : memref<1024x512xbf16, #tpu.memory_space<vmem>>, vector<1024x512xbf16>
    %cst_8 = arith.constant dense<0.000000e+00> : vector<16x512xf32>
    %11 = tpu.matmul %9, %10, %cst_8 {dimension_numbers = #tpu.dot_dimension_numbers<[1], [0], [0], [1], [0, 0, 1, 1], [], []>} : vector<16x1024xbf16>, vector<1024x512xbf16>, vector<16x512xf32> -> vector<16x512xf32>
    %c0_9 = arith.constant 0 : index
    %c0_10 = arith.constant 0 : index
    %12 = vector.load %arg5[%c0_9, %c0_10] : memref<1x512xf32, #tpu.memory_space<vmem>>, vector<1x512xf32>
    %13 = vector.broadcast %12 : vector<1x512xf32> to vector<16x512xf32>
    %14 = arith.addf %11, %13 : vector<16x512xf32>
    %15 = arith.truncf %14 : vector<16x512xf32> to vector<16x512xbf16>
    %cst_11 = arith.constant 2.001950e-01 : bf16
    %16 = vector.broadcast %cst_11 : bf16 to vector<16x512xbf16>
    %17 = arith.mulf %16, %15 : vector<16x512xbf16>
    %18 = arith.maximumf %15, %17 : vector<16x512xbf16>
    %c0_12 = arith.constant 0 : index
    %c0_13 = arith.constant 0 : index
    %19 = vector.load %arg6[%c0_12, %c0_13] : memref<512x128xbf16, #tpu.memory_space<vmem>>, vector<512x128xbf16>
    %cst_14 = arith.constant dense<0.000000e+00> : vector<16x128xf32>
    %20 = tpu.matmul %18, %19, %cst_14 {dimension_numbers = #tpu.dot_dimension_numbers<[1], [0], [0], [1], [0, 0, 1, 1], [], []>} : vector<16x512xbf16>, vector<512x128xbf16>, vector<16x128xf32> -> vector<16x128xf32>
    %c0_15 = arith.constant 0 : index
    %c0_16 = arith.constant 0 : index
    %21 = vector.load %arg7[%c0_15, %c0_16] : memref<1x128xf32, #tpu.memory_space<vmem>>, vector<1x128xf32>
    %22 = vector.broadcast %21 : vector<1x128xf32> to vector<16x128xf32>
    %23 = arith.addf %20, %22 : vector<16x128xf32>
    %24 = arith.truncf %23 : vector<16x128xf32> to vector<16x128xbf16>
    %cst_17 = arith.constant 2.001950e-01 : bf16
    %25 = vector.broadcast %cst_17 : bf16 to vector<16x128xbf16>
    %26 = arith.mulf %25, %24 : vector<16x128xbf16>
    %27 = arith.maximumf %24, %26 : vector<16x128xbf16>
    %28 = arith.extf %27 : vector<16x128xbf16> to vector<16x128xf32>
    %c0_18 = arith.constant 0 : index
    %c0_19 = arith.constant 0 : index
    %29 = vector.load %arg8[%c0_18, %c0_19] : memref<1x128xf32, #tpu.memory_space<vmem>>, vector<1x128xf32>
    %30 = vector.broadcast %29 : vector<1x128xf32> to vector<16x128xf32>
    %31 = arith.mulf %28, %30 : vector<16x128xf32>
    %cst_20 = arith.constant dense<0.000000e+00> : vector<16xf32>
    %32 = vector.multi_reduction <add>, %31, %cst_20 [1] : vector<16x128xf32> to vector<16xf32>
    %c0_21 = arith.constant 0 : index
    %33 = memref.load %arg9[%c0_21] : memref<1xf32, #tpu.memory_space<smem>>
    %34 = vector.broadcast %33 : f32 to vector<16xf32>
    %35 = arith.addf %32, %34 : vector<16xf32>
    %cst_22 = arith.constant 0.000000e+00 : f32
    %36 = vector.broadcast %cst_22 : f32 to vector<16xf32>
    %37 = arith.subf %36, %35 : vector<16xf32>
    %38 = math.exp %37 : vector<16xf32>
    %cst_23 = arith.constant 1.000000e+00 : f32
    %39 = vector.broadcast %cst_23 : f32 to vector<16xf32>
    %40 = arith.addf %39, %38 : vector<16xf32>
    %41 = tpu.reciprocal %40 {approx = true} : vector<16xf32> -> vector<16xf32>
    %42 = vector.shape_cast %41 : vector<16xf32> to vector<1x16xf32>
    %c0_24 = arith.constant 0 : index
    %c0_25 = arith.constant 0 : index
    %43 = vector.load %arg10[%c0_24, %c0_25] : memref<1x16xf32, #tpu.memory_space<vmem>>, vector<1x16xf32>
    tpu.vector_store %arg10[%c0_24, %c0_25], %42 {strides = array<i32>} : memref<1x16xf32, #tpu.memory_space<vmem>>, vector<1x16xf32>,
    return
  }
  func.func @transform_0(%arg0: i32) -> (i32, i32) {
    %c0_i32 = arith.constant 0 : i32
    %c0_i32_0 = arith.constant 0 : i32
    return %arg0, %c0_i32 : i32, i32
  }
  func.func @transform_1(%arg0: i32) -> (i32, i32) {
    %c0_i32 = arith.constant 0 : i32
    %c0_i32_0 = arith.constant 0 : i32
    %c0_i32_1 = arith.constant 0 : i32
    return %c0_i32, %c0_i32_0 : i32, i32
  }
  func.func @transform_2(%arg0: i32) -> (i32, i32) {
    %c0_i32 = arith.constant 0 : i32
    %c0_i32_0 = arith.constant 0 : i32
    %c0_i32_1 = arith.constant 0 : i32
    return %c0_i32, %c0_i32_0 : i32, i32
  }
  func.func @transform_3(%arg0: i32) -> (i32, i32) {
    %c0_i32 = arith.constant 0 : i32
    %c0_i32_0 = arith.constant 0 : i32
    %c0_i32_1 = arith.constant 0 : i32
    return %c0_i32, %c0_i32_0 : i32, i32
  }
  func.func @transform_4(%arg0: i32) -> (i32, i32) {
    %c0_i32 = arith.constant 0 : i32
    %c0_i32_0 = arith.constant 0 : i32
    %c0_i32_1 = arith.constant 0 : i32
    return %c0_i32, %c0_i32_0 : i32, i32
  }
  func.func @transform_5(%arg0: i32) -> (i32, i32) {
    %c0_i32 = arith.constant 0 : i32
    %c0_i32_0 = arith.constant 0 : i32
    %c0_i32_1 = arith.constant 0 : i32
    return %c0_i32, %c0_i32_0 : i32, i32
  }
  func.func @transform_6(%arg0: i32) -> (i32, i32) {
    %c0_i32 = arith.constant 0 : i32
    %c0_i32_0 = arith.constant 0 : i32
    %c0_i32_1 = arith.constant 0 : i32
    return %c0_i32, %c0_i32_0 : i32, i32
  }
  func.func @transform_7(%arg0: i32) -> (i32, i32) {
    %c0_i32 = arith.constant 0 : i32
    %c0_i32_0 = arith.constant 0 : i32
    %c0_i32_1 = arith.constant 0 : i32
    return %c0_i32, %c0_i32_0 : i32, i32
  }
  func.func @transform_8(%arg0: i32) -> i32 {
    %c0_i32 = arith.constant 0 : i32
    %c0_i32_0 = arith.constant 0 : i32
    return %c0_i32 : i32
  }
  func.func @transform_9(%arg0: i32) -> (i32, i32) {
    %c0_i32 = arith.constant 0 : i32
    %c0_i32_0 = arith.constant 0 : i32
    return %c0_i32, %arg0 : i32, i32
  }
}

</mosaic_0001>

<bundles_post_ra>
// kernel: tpu_custom_call.1
= control target key start
LH: loop header
LB: loop body
LE: loop exit
PB: predicated region body
PF: predicated region fallthrough
CT: control target
= control target key end

     0   :  { %15 = vsyncpa [#allocation4], 0  ;;  %s10750_s0 = inlined_call_operand.hbm [shape: bf16[16,896], index: 0, kind: input, shape index: {}]   ;;  %s10751_s1 = inlined_call_operand.hbm [shape: bf16[896,1024], index: 1, kind: input, shape index: {}]   ;;  %s10752_s2 = inlined_call_operand.hbm [shape: f32[1,1024], index: 2, kind: input, shape index: {}]   ;;  %s10753_s3 = inlined_call_operand.hbm [shape: bf16[1024,512], index: 3, kind: input, shape index: {}]   ;;  %s10754_s4 = inlined_call_operand.hbm [shape: f32[1,512], index: 4, kind: input, shape index: {}]   ;;  %s10755_s5 = inlined_call_operand.hbm [shape: bf16[512,128], index: 5, kind: input, shape index: {}]   ;;  %s10756_s6 = inlined_call_operand.hbm [shape: f32[1,128], index: 6, kind: input, shape index: {}]   ;;  %s10757_s7 = inlined_call_operand.hbm [shape: f32[1,128], index: 7, kind: input, shape index: {}]   ;;  %s10758_s8 = inlined_call_operand.<no memory space> [shape: f32[1], index: 8, kind: input, shape index: {}]   ;;  %s10759_s9 = inlined_call_operand.hbm [shape: f32[1,16], index: 9, kind: output, shape index: {}]  }
   0x1   :  { %16 = vsyncpa [#allocation7], 0 }
   0x2   :  { %17 = vsyncpa [#allocation10], 0 }
   0x3   :  { %18 = vsyncpa [#allocation13], 0 }
   0x4   :  { %19 = vsyncpa [#allocation16], 0  ;;  %s38_s11 = sshll.u32 %s10751_s1, 4  ;;  %s39_s11 = int_to_ptr.hbm [resolvable:$true] %s38_s11 }
   0x5   :  { %20 = vsyncpa [#allocation5], 0  ;;  %s10172_s12 = smov [#allocation6]   ;;  %s62_s16 = sshll.u32 %s10753_s3, 4  ;;  %s63_s16 = int_to_ptr.hbm [resolvable:$true] %s62_s16 }
   0x6   :  { %s40_s13 = sshll.u32 %s10172_s12, 4  ;;  %s10173_s17 = smov 512   ;;  %s41_s13 = int_to_ptr.vmem [resolvable:$true] %s40_s13 }
   0x7   :  { %s10174_s18 = smov 32   ;;  %s10175_s19 = smov [#allocation9]  }
   0x8   :  { %46 = dma.hbm_to_vmem [thread:$0]  %s39_s11, 57344, %s41_s13, [#allocation7], %s10173_s17, %s10173_s17, %s10174_s18  }
   0x9   :  { %s64_s20 = sshll.u32 %s10175_s19, 4  ;;  %s10176_s21 = smov 256   ;;  %s65_s20 = int_to_ptr.vmem [resolvable:$true] %s64_s20 }
   0xa   :  { %s10177_s22 = smov 16   ;;  %s86_s24 = sshll.u32 %s10755_s5, 4  ;;  %s87_s24 = int_to_ptr.hbm [resolvable:$true] %s86_s24 }
   0xb   :  { %70 = dma.hbm_to_vmem [thread:$0]  %s63_s16, 32768, %s65_s20, [#allocation10], %s10176_s21, %s10176_s21, %s10177_s22  }
   0xc   :  { %s10178_s25 = smov [#allocation12]   ;;  %s25_s28 = sshll.u32 %s10750_s0, 4  ;;  %s26_s28 = int_to_ptr.hbm [resolvable:$true] %s25_s28 }
   0xd   :  { %s88_s26 = sshll.u32 %s10178_s25, 4  ;;  %s10179_s29 = smov 64   ;;  %s89_s26 = int_to_ptr.vmem [resolvable:$true] %s88_s26 }
   0xe   :  { %s10180_s30 = smov 4   ;;  %s10181_s10 = smov [#allocation3]  }
   0xf   :  { %94 = dma.hbm_to_vmem [thread:$0]  %s87_s24, 4096, %s89_s26, [#allocation13], %s10179_s29, %s10179_s29, %s10180_s30  }
  0x10   :  { %s27_s11 = sshll.u32 %s10181_s10, 4  ;;  %s10182_s12 = smov 448   ;;  %s28_s11 = int_to_ptr.vmem [resolvable:$true] %s27_s11 }
  0x11   :  { %s10183_s13 = smov 28   ;;  %s52_s15 = sshll.u32 %s10752_s2, 4  ;;  %s53_s15 = int_to_ptr.hbm [resolvable:$true] %s52_s15 }
  0x12   :  { %33 = dma.hbm_to_vmem [thread:$0]  %s26_s28, 896, %s28_s11, [#allocation4], %s10182_s12, %s10182_s12, %s10183_s13  }
  0x13   :  { %s10184_s16 = smov [#allocation8]   ;;  %s76_s19 = sshll.u32 %s10754_s4, 4  ;;  %s77_s19 = int_to_ptr.hbm [resolvable:$true] %s76_s19 }
  0x14   :  { %s54_s17 = sshll.u32 %s10184_s16, 4  ;;  %s10185_s20 = smov [#allocation11]   ;;  %s55_s17 = int_to_ptr.vmem [resolvable:$true] %s54_s17 }
  0x15   :  { %57 = dma.hbm_to_vmem [thread:$0]  %s53_s15, 128, %s55_s17, [#allocation7]  }
  0x16   :  { %s78_s21 = sshll.u32 %s10185_s20, 4  ;;  %s100_s23 = sshll.u32 %s10756_s6, 4  ;;  %s79_s21 = int_to_ptr.vmem [resolvable:$true] %s78_s21  ;;  %s101_s23 = int_to_ptr.hbm [resolvable:$true] %s100_s23 }
  0x17   :  { %81 = dma.hbm_to_vmem [thread:$0]  %s77_s19, 64, %s79_s21, [#allocation10]  }
  0x18   :  { %s111_s25 = sshll.u32 %s10757_s7, 4  ;;  %s10186_s26 = smov [#allocation14]   ;;  %s112_s25 = int_to_ptr.hbm [resolvable:$true] %s111_s25 }
  0x19   :  { %s102_s27 = sshll.u32 %s10186_s26, 4  ;;  %s10187_s4 = smov [#allocation15]   ;;  %s103_s27 = int_to_ptr.vmem [resolvable:$true] %s102_s27 }
  0x1a   :  { %105 = dma.hbm_to_vmem [thread:$0]  %s101_s23, 16, %s103_s27, [#allocation13]  }
  0x1b   :  { %s113_s3 = sshll.u32 %s10187_s4, 4  ;;  %s114_s3 = int_to_ptr.vmem [resolvable:$true] %s113_s3 }
  0x1c   :  { %116 = dma.hbm_to_vmem [thread:$0]  %s112_s25, 16, %s114_s3, [#allocation16]  }
  0x1d   :  { %10160 = dma.done.wait [#allocation4], 896  }
  0x1e   :  { %10161 = vsyncadd [#allocation4], 4294966400 }
  0x1f   :  { %10162 = dma.done.wait [#allocation7], 57472  }
  0x20   :  { %10163 = vsyncadd [#allocation7], 4294909824 }
  0x21   :  { %10164 = dma.done.wait [#allocation10], 32832  }
  0x22   :  { %10165 = vsyncadd [#allocation10], 4294934464 }
  0x23   :  { %10166 = dma.done.wait [#allocation13], 4112  }
  0x24   :  { %10167 = vsyncadd [#allocation13], 4294963184 }
  0x25   :  { %10168 = dma.done.wait [#allocation16], 16  }
  0x26   :  { %10169 = vsyncadd [#allocation16], 4294967280  ;;  %v6454_v0 = vld [vmem:[#allocation6 + $0x1c0] sm:$0xf]  ;;  %s6186_s10 = sshll.u32 %s10759_s9, 4  ;;  %vm6174_vm0 = vcmask 130112   ;;  %s6187_s10 = int_to_ptr.hbm [resolvable:$true] %s6186_s10 }
  0x27   :  { %v9239_v1 = vld [vmem:[#allocation6 + $0x1dc] sm:$0xf0]  ;;  %vm6177_vm1 = vcmask 122880  }
  0x28   :  { %v6710_v2 = vld [vmem:[#allocation6 + $0x3c0] sm:$0xf]  ;;  %v6455_v3 = vor.u32 %v9239_v1, %v6454_v0 }
  0x29   :  { %v9303_v4 = vld [vmem:[#allocation6 + $0x3dc] sm:$0xf0] }
  0x2a   :  { %v6966_v5 = vld [vmem:[#allocation6 + $0x5c0] sm:$0xf]  ;;  %v6711_v7 = vor.u32 %v9303_v4, %v6710_v2  ;;  %2901 = vmatpush.bf16.msra.mxu0 %v6455_v3 }
  0x2b   :  { %v9367_v6 = vld [vmem:[#allocation6 + $0x5dc] sm:$0xf0] }
  0x2c   :  { %v6967_v8 = vor.u32 %v9367_v6, %v6966_v5  ;;  %v7222_v9 = vld [vmem:[#allocation6 + $0x7c0] sm:$0xf]  ;;  %2915 = vmatpush.bf16.msra.mxu1 %v6711_v7 }
  0x2d   :  { %v9431_v10 = vld [vmem:[#allocation6 + $0x7dc] sm:$0xf0] }
  0x2e   :  { %v6422_v11 = vld [vmem:[#allocation6 + $0x180] sm:$0xf]  ;;  %v7223_v12 = vor.u32 %v9431_v10, %v7222_v9  ;;  %2929 = vmatpush.bf16.msra.mxu2 %v6967_v8 }
  0x2f   :  { %v9231_v13 = vld [vmem:[#allocation6 + $0x19c] sm:$0xf0] }
  0x30   :  { %v6678_v14 = vld [vmem:[#allocation6 + $0x380] sm:$0xf]  ;;  %v6423_v16 = vor.u32 %v9231_v13, %v6422_v11  ;;  %2943 = vmatpush.bf16.msra.mxu3 %v7223_v12 }
  0x31   :  { %v9295_v15 = vld [vmem:[#allocation6 + $0x39c] sm:$0xf0] }
  0x32   :  { %v6679_v17 = vor.u32 %v9295_v15, %v6678_v14  ;;  %v6934_v18 = vld [vmem:[#allocation6 + $0x580] sm:$0xf]  ;;  %2902 = vmatpush.bf16.msra.mxu0 %v6423_v16 }
  0x33   :  { %v9359_v19 = vld [vmem:[#allocation6 + $0x59c] sm:$0xf0] }
  0x34   :  { %v7190_v20 = vld [vmem:[#allocation6 + $0x780] sm:$0xf]  ;;  %v6935_v21 = vor.u32 %v9359_v19, %v6934_v18  ;;  %2916 = vmatpush.bf16.msra.mxu1 %v6679_v17 }
  0x35   :  { %v9423_v22 = vld [vmem:[#allocation6 + $0x79c] sm:$0xf0] }
  0x36   :  { %v6390_v23 = vld [vmem:[#allocation6 + $0x140] sm:$0xf]  ;;  %v7191_v25 = vor.u32 %v9423_v22, %v7190_v20  ;;  %2930 = vmatpush.bf16.msra.mxu2 %v6935_v21 }
  0x37   :  { %v9223_v24 = vld [vmem:[#allocation6 + $0x15c] sm:$0xf0] }
  0x38   :  { %v6646_v26 = vld [vmem:[#allocation6 + $0x340] sm:$0xf]  ;;  %v6391_v29 = vor.u32 %v9223_v24, %v6390_v23  ;;  %2944 = vmatpush.bf16.msra.mxu3 %v7191_v25 }
  0x39   :  { %v9287_v27 = vld [vmem:[#allocation6 + $0x35c] sm:$0xf0] }
  0x3a   :  { %v6902_v28 = vld [vmem:[#allocation6 + $0x540] sm:$0xf]  ;;  %v6647_v33 = vor.u32 %v9287_v27, %v6646_v26  ;;  %2903 = vmatpush.bf16.msra.mxu0 %v6391_v29 }
  0x3b   :  { %v9351_v30 = vld [vmem:[#allocation6 + $0x55c] sm:$0xf0] }
  0x3c   :  { %v7158_v31 = vld [vmem:[#allocation6 + $0x740] sm:$0xf]  ;;  %v6903_v34 = vor.u32 %v9351_v30, %v6902_v28  ;;  %2917 = vmatpush.bf16.msra.mxu1 %v6647_v33 }
  0x3d   :  { %v9415_v32 = vld [vmem:[#allocation6 + $0x75c] sm:$0xf0] }
  0x3e   :  { %v6358_v35 = vld [vmem:[#allocation6 + $0x100] sm:$0xf]  ;;  %v7159_v38 = vor.u32 %v9415_v32, %v7158_v31  ;;  %2931 = vmatpush.bf16.msra.mxu2 %v6903_v34 }
  0x3f   :  { %v9215_v36 = vld [vmem:[#allocation6 + $0x11c] sm:$0xf0] }
  0x40   :  { %v6614_v37 = vld [vmem:[#allocation6 + $0x300] sm:$0xf]  ;;  %v6359_v44 = vor.u32 %v9215_v36, %v6358_v35  ;;  %2945 = vmatpush.bf16.msra.mxu3 %v7159_v38  ;;  %v6456_v38 = vld [vmem:[#allocation6 + $0x1e0] sm:$0xf0] }
  0x41   :  { %v9279_v39 = vld [vmem:[#allocation6 + $0x31c] sm:$0xf0] }
  0x42   :  { %v6870_v40 = vld [vmem:[#allocation6 + $0x500] sm:$0xf]  ;;  %v6615_v45 = vor.u32 %v9279_v39, %v6614_v37  ;;  %2904 = vmatpush.bf16.msra.mxu0 %v6359_v44  ;;  %v9235_v37 = vld [vmem:[#allocation6 + $0x1c4] sm:$0xf] }
  0x43   :  { %v9343_v41 = vld [vmem:[#allocation6 + $0x51c] sm:$0xf0] }
  0x44   :  { %v7126_v42 = vld [vmem:[#allocation6 + $0x700] sm:$0xf]  ;;  %v6871_v46 = vor.u32 %v9343_v41, %v6870_v40  ;;  %2918 = vmatpush.bf16.msra.mxu1 %v6615_v45 }
  0x45   :  { %v9407_v43 = vld [vmem:[#allocation6 + $0x71c] sm:$0xf0] }
  0x46   :  { %v6326_v47 = vld [vmem:[#allocation6 + $0xc0] sm:$0xf]  ;;  %v7127_v50 = vor.u32 %v9407_v43, %v7126_v42  ;;  %2932 = vmatpush.bf16.msra.mxu2 %v6871_v46 }
  0x47   :  { %v9207_v48 = vld [vmem:[#allocation6 + $0xdc] sm:$0xf0] }
  0x48   :  { %v6582_v49 = vld [vmem:[#allocation6 + $0x2c0] sm:$0xf]  ;;  %v6327_v56 = vor.u32 %v9207_v48, %v6326_v47  ;;  %2946 = vmatpush.bf16.msra.mxu3 %v7127_v50  ;;  %v6459_v48 = vor.u32 %v9235_v37, %v6456_v38  ;;  %v9227_v50 = vld [vmem:[#allocation6 + $0x184] sm:$0xf] }
  0x49   :  { %v9271_v51 = vld [vmem:[#allocation6 + $0x2dc] sm:$0xf0] }
  0x4a   :  { %v6838_v52 = vld [vmem:[#allocation6 + $0x4c0] sm:$0xf]  ;;  %v6583_v57 = vor.u32 %v9271_v51, %v6582_v49  ;;  %2905 = vmatpush.bf16.msra.mxu0 %v6327_v56  ;;  %v6424_v51 = vld [vmem:[#allocation6 + $0x1a0] sm:$0xf0] }
  0x4b   :  { %v9335_v53 = vld [vmem:[#allocation6 + $0x4dc] sm:$0xf0] }
  0x4c   :  { %v7094_v54 = vld [vmem:[#allocation6 + $0x6c0] sm:$0xf]  ;;  %v6839_v58 = vor.u32 %v9335_v53, %v6838_v52  ;;  %2919 = vmatpush.bf16.msra.mxu1 %v6583_v57  ;;  %v6202_v52 = vld [vmem:[#allocation3] sm:$0xf]  ;;  %v9175_v53 = vld [vmem:[#allocation3 + $0x18] sm:$0xf0] }
  0x4d   :  { %v9399_v55 = vld [vmem:[#allocation6 + $0x6dc] sm:$0xf0]  ;;  %v10263_v57 = vor.u32 %v9175_v53, %v6202_v52 }
  0x4e   :  { %v6294_v59 = vld [vmem:[#allocation6 + $0x80] sm:$0xf]  ;;  %v7095_v62 = vor.u32 %v9399_v55, %v7094_v54  ;;  %2933 = vmatpush.bf16.msra.mxu2 %v6839_v58  ;;  %v6210_v54 = vld [vmem:[#allocation3 + $0x8] sm:$0xf]  ;;  %v9176_v58 = vld [vmem:[#allocation3 + $0x20] sm:$0xf0] }
  0x4f   :  { %v9199_v60 = vld [vmem:[#allocation6 + $0x9c] sm:$0xf0] }
  0x50   :  { %v6550_v61 = vld [vmem:[#allocation6 + $0x280] sm:$0xf]  ;;  %v6295_v4 = vor.u32 %v9199_v60, %v6294_v59  ;;  %2947 = vmatpush.bf16.msra.mxu3 %v7095_v62 }
  0x51   :  { %v9263_v63 = vld [vmem:[#allocation6 + $0x29c] sm:$0xf0] }
  0x52   :  { %v6806_v0 = vld [vmem:[#allocation6 + $0x480] sm:$0xf]  ;;  %v6551_v5 = vor.u32 %v9263_v63, %v6550_v61  ;;  %2906 = vmatpush.bf16.msra.mxu0 %v6295_v4  ;;  %v9219_v4 = vld [vmem:[#allocation6 + $0x144] sm:$0xf] }
  0x53   :  { %v9327_v1 = vld [vmem:[#allocation6 + $0x49c] sm:$0xf0] }
  0x54   :  { %v7062_v2 = vld [vmem:[#allocation6 + $0x680] sm:$0xf]  ;;  %v6807_v6 = vor.u32 %v9327_v1, %v6806_v0  ;;  %2920 = vmatpush.bf16.msra.mxu1 %v6551_v5  ;;  %v10265_v0 = vor.u32 %v9176_v58, %v6210_v54  ;;  %v6427_v1 = vor.u32 %v9227_v50, %v6424_v51  ;;  %v6392_v5 = vld [vmem:[#allocation6 + $0x160] sm:$0xf0] }
  0x55   :  { %v9391_v3 = vld [vmem:[#allocation6 + $0x69c] sm:$0xf0] }
  0x56   :  { %v6262_v7 = vld [vmem:[#allocation6 + $0x40] sm:$0xf]  ;;  %v7063_v10 = vor.u32 %v9391_v3, %v7062_v2  ;;  %2934 = vmatpush.bf16.msra.mxu2 %v6807_v6  ;;  %v9172_v6 = vld [vmem:[#allocation3 + $0x4] sm:$0xf] }
  0x57   :  { %v9191_v8 = vld [vmem:[#allocation6 + $0x5c] sm:$0xf0] }
  0x58   :  { %v6518_v9 = vld [vmem:[#allocation6 + $0x240] sm:$0xf]  ;;  %v6263_v16 = vor.u32 %v9191_v8, %v6262_v7  ;;  %2948 = vmatpush.bf16.msra.mxu3 %v7063_v10  ;;  %v6204_v7 = vld [vmem:[#allocation3 + $0x1c] sm:$0xf0] }
  0x59   :  { %v9255_v11 = vld [vmem:[#allocation6 + $0x25c] sm:$0xf0] }
  0x5a   :  { %v6774_v12 = vld [vmem:[#allocation6 + $0x440] sm:$0xf]  ;;  %v6519_v19 = vor.u32 %v9255_v11, %v6518_v9  ;;  %2907 = vmatpush.bf16.msra.mxu0 %v6263_v16  ;;  %v10269_v11 = vor.u32 %v9172_v6, %v6204_v7  ;;  %v9179_v7 = vld [vmem:[#allocation6 + $0x4] sm:$0xf] }
  0x5b   :  { %v9319_v13 = vld [vmem:[#allocation6 + $0x45c] sm:$0xf0] }
  0x5c   :  { %v7030_v14 = vld [vmem:[#allocation6 + $0x640] sm:$0xf]  ;;  %v6775_v20 = vor.u32 %v9319_v13, %v6774_v12  ;;  %2921 = vmatpush.bf16.msra.mxu1 %v6519_v19  ;;  %v9173_v19 = vld [vmem:[#allocation3 + $0xc] sm:$0xf] }
  0x5d   :  { %v9383_v15 = vld [vmem:[#allocation6 + $0x65c] sm:$0xf0] }
  0x5e   :  { %v6230_v17 = vld [vmem:[#allocation6] sm:$0xf]  ;;  %v7031_v24 = vor.u32 %v9383_v15, %v7030_v14  ;;  %2935 = vmatpush.bf16.msra.mxu2 %v6775_v20  ;;  %v6212_v20 = vld [vmem:[#allocation3 + $0x24] sm:$0xf0] }
  0x5f   :  { %v9183_v18 = vld [vmem:[#allocation6 + $0x1c] sm:$0xf0] }
  0x60   :  { %v6486_v21 = vld [vmem:[#allocation6 + $0x200] sm:$0xf]  ;;  %v6231_v31 = vor.u32 %v9183_v18, %v6230_v17  ;;  %2949 = vmatpush.bf16.msra.mxu3 %v7031_v24  ;;  %v6395_v17 = vor.u32 %v9219_v4, %v6392_v5 }
  0x61   :  { %v9247_v22 = vld [vmem:[#allocation6 + $0x21c] sm:$0xf0] }
  0x62   :  { %v6742_v23 = vld [vmem:[#allocation6 + $0x400] sm:$0xf]  ;;  %v6487_v35 = vor.u32 %v9247_v22, %v6486_v21  ;;  %2908 = vmatpush.bf16.msra.mxu0 %v6231_v31  ;;  %v9211_v21 = vld [vmem:[#allocation6 + $0x104] sm:$0xf] }
  0x63   :  { %v9311_v25 = vld [vmem:[#allocation6 + $0x41c] sm:$0xf0]  ;;  %v6360_v22 = vld [vmem:[#allocation6 + $0x120] sm:$0xf0] }
  0x64   :  { %v6998_v26 = vld [vmem:[#allocation6 + $0x600] sm:$0xf]  ;;  %v6743_v36 = vor.u32 %v9311_v25, %v6742_v23  ;;  %2922 = vmatpush.bf16.msra.mxu1 %v6487_v35  ;;  %v10272_v23 = vor.u32 %v9173_v19, %v6212_v20  ;;  %v6328_v35 = vld [vmem:[#allocation6 + $0xe0] sm:$0xf0] }
  0x65   :  { %v9375_v27 = vld [vmem:[#allocation6 + $0x61c] sm:$0xf0]  ;;  %2909 = vmatmul.bf16.vlgmr.msra.gmra.mxu0 %v10263_v57  ;;  %v7480_v19 = vld [vmem:[#allocation6 + $0x9e0] sm:$0xf0] }
  0x66   :  { %v7478_v28 = vld [vmem:[#allocation6 + $0x9c0] sm:$0xf]  ;;  %v6999_v39 = vor.u32 %v9375_v27, %v6998_v26  ;;  %2936 = vmatpush.bf16.msra.mxu2 %v6743_v36 }
  0x67   :  { %v9495_v29 = vld [vmem:[#allocation6 + $0x9dc] sm:$0xf0]  ;;  %2923 = vmatmul.bf16.vlgmr.msra.gmra.mxu1 %v10269_v11 }
  0x68   :  { %v7734_v30 = vld [vmem:[#allocation6 + $0xbc0] sm:$0xf]  ;;  %v7479_v40 = vor.u32 %v9495_v29, %v7478_v28  ;;  %2950 = vmatpush.bf16.msra.mxu3 %v6999_v39 }
  0x69   :  { %v9559_v32 = vld [vmem:[#allocation6 + $0xbdc] sm:$0xf0]  ;;  %2937 = vmatmul.bf16.vlgmr.msra.gmra.mxu2 %v10265_v0 }
  0x6a   :  { %v7990_v33 = vld [vmem:[#allocation6 + $0xdc0] sm:$0xf]  ;;  %v7735_v43 = vor.u32 %v9559_v32, %v7734_v30  ;;  %2957 = vmatpush.bf16.msrb.mxu0 %v7479_v40  ;;  %v6363_v30 = vor.u32 %v9211_v21, %v6360_v22  ;;  %v6218_v22 = vld [vmem:[#allocation3 + $0x10] sm:$0xf] }
  0x6b   :  { %v9623_v34 = vld [vmem:[#allocation6 + $0xddc] sm:$0xf0]  ;;  %2951 = vmatmul.bf16.vlgmr.msra.gmra.mxu3 %v10272_v23 }
  0x6c   :  { %v7446_v41 = vld [vmem:[#allocation6 + $0x980] sm:$0xf]  ;;  %v7991_v44 = vor.u32 %v9623_v34, %v7990_v33  ;;  %2971 = vmatpush.bf16.msrb.mxu1 %v7735_v43  ;;  %2999 = vmatpush.bf16.msrb.mxu3 %v6459_v48  ;;  %v9203_v34 = vld [vmem:[#allocation6 + $0xc4] sm:$0xf] }
  0x6d   :  { %v9487_v42 = vld [vmem:[#allocation6 + $0x99c] sm:$0xf0] }
  0x6e   :  { %v7702_v45 = vld [vmem:[#allocation6 + $0xb80] sm:$0xf]  ;;  %v7447_v55 = vor.u32 %v9487_v42, %v7446_v41  ;;  %2985 = vmatpush.bf16.msrb.mxu2 %v7991_v44  ;;  %v6331_v42 = vor.u32 %v9203_v34, %v6328_v35  ;;  %v6680_v34 = vld [vmem:[#allocation6 + $0x3a0] sm:$0xf0] }
  0x6f   :  { %v9551_v46 = vld [vmem:[#allocation6 + $0xb9c] sm:$0xf0]  ;;  %v9355_v35 = vld [vmem:[#allocation6 + $0x584] sm:$0xf] }
  0x70   :  { %v7958_v47 = vld [vmem:[#allocation6 + $0xd80] sm:$0xf]  ;;  %v7703_v59 = vor.u32 %v9551_v46, %v7702_v45  ;;  %2958 = vmatpush.bf16.msrb.mxu0 %v7447_v55  ;;  %3000 = vmatpush.bf16.msrb.mxu3 %v6427_v1  ;;  %v9195_v46 = vld [vmem:[#allocation6 + $0x84] sm:$0xf] }
  0x71   :  { %v9615_v49 = vld [vmem:[#allocation6 + $0xd9c] sm:$0xf0] }
  0x72   :  { %v7414_v56 = vld [vmem:[#allocation6 + $0x940] sm:$0xf]  ;;  %v7959_v60 = vor.u32 %v9615_v49, %v7958_v47  ;;  %2972 = vmatpush.bf16.msrb.mxu1 %v7703_v59  ;;  %v6296_v47 = vld [vmem:[#allocation6 + $0xa0] sm:$0xf0] }
  0x73   :  { %v9479_v61 = vld [vmem:[#allocation6 + $0x95c] sm:$0xf0]  ;;  %v6299_v54 = vor.u32 %v9195_v46, %v6296_v47  ;;  %v9187_v59 = vld [vmem:[#allocation6 + $0x44] sm:$0xf] }
  0x74   :  { %v7670_v62 = vld [vmem:[#allocation6 + $0xb40] sm:$0xf]  ;;  %v7415_v8 = vor.u32 %v9479_v61, %v7414_v56  ;;  %2986 = vmatpush.bf16.msrb.mxu2 %v7959_v60  ;;  %3001 = vmatpush.bf16.msrb.mxu3 %v6395_v17  ;;  %v6264_v60 = vld [vmem:[#allocation6 + $0x60] sm:$0xf0] }
  0x75   :  { %v9543_v63 = vld [vmem:[#allocation6 + $0xb5c] sm:$0xf0]  ;;  %v7224_v17 = vld [vmem:[#allocation6 + $0x7e0] sm:$0xf0] }
  0x76   :  { %v7926_v2 = vld [vmem:[#allocation6 + $0xd40] sm:$0xf]  ;;  %v7671_v12 = vor.u32 %v9543_v63, %v7670_v62  ;;  %2959 = vmatpush.bf16.msrb.mxu0 %v7415_v8  ;;  %v6267_v8 = vor.u32 %v9187_v59, %v6264_v60 }
  0x77   :  { %v9607_v3 = vld [vmem:[#allocation6 + $0xd5c] sm:$0xf0] }
  0x78   :  { %v7382_v9 = vld [vmem:[#allocation6 + $0x900] sm:$0xf]  ;;  %v7927_v13 = vor.u32 %v9607_v3, %v7926_v2  ;;  %2973 = vmatpush.bf16.msrb.mxu1 %v7671_v12  ;;  %3002 = vmatpush.bf16.msrb.mxu3 %v6363_v30  ;;  %v6712_v12 = vld [vmem:[#allocation6 + $0x3e0] sm:$0xf0]  ;;  %v6220_v30 = vld [vmem:[#allocation3 + $0x2c] sm:$0xf0] }
  0x79   :  { %v9471_v10 = vld [vmem:[#allocation6 + $0x91c] sm:$0xf0] }
  0x7a   :  { %v7638_v14 = vld [vmem:[#allocation6 + $0xb00] sm:$0xf]  ;;  %v7383_v24 = vor.u32 %v9471_v10, %v7382_v9  ;;  %2987 = vmatpush.bf16.msrb.mxu2 %v7927_v13  ;;  %v6232_v9 = vld [vmem:[#allocation6 + $0x20] sm:$0xf0] }
  0x7b   :  { %v9535_v15 = vld [vmem:[#allocation6 + $0xb1c] sm:$0xf0]  ;;  %v9299_v10 = vld [vmem:[#allocation6 + $0x3c4] sm:$0xf] }
  0x7c   :  { %v7894_v16 = vld [vmem:[#allocation6 + $0xd00] sm:$0xf]  ;;  %v7639_v25 = vor.u32 %v9535_v15, %v7638_v14  ;;  %2960 = vmatpush.bf16.msrb.mxu0 %v7383_v24  ;;  %3003 = vmatpush.bf16.msrb.mxu3 %v6331_v42  ;;  %v9363_v13 = vld [vmem:[#allocation6 + $0x5c4] sm:$0xf]  ;;  %v9177_v24 = vld [vmem:[#allocation3 + $0x28] sm:$0xf0] }
  0x7d   :  { %v9599_v18 = vld [vmem:[#allocation6 + $0xd1c] sm:$0xf0]  ;;  %v6968_v14 = vld [vmem:[#allocation6 + $0x5e0] sm:$0xf0] }
  0x7e   :  { %v7895_v26 = vor.u32 %v9599_v18, %v7894_v16  ;;  %v7350_v27 = vld [vmem:[#allocation6 + $0x8c0] sm:$0xf]  ;;  %2974 = vmatpush.bf16.msrb.mxu1 %v7639_v25  ;;  %v9427_v15 = vld [vmem:[#allocation6 + $0x7c4] sm:$0xf] }
  0x7f   :  { %v9463_v28 = vld [vmem:[#allocation6 + $0x8dc] sm:$0xf0]  ;;  %v9491_v18 = vld [vmem:[#allocation6 + $0x9c4] sm:$0xf] }
  0x80   :  { %v7606_v29 = vld [vmem:[#allocation6 + $0xac0] sm:$0xf]  ;;  %v7351_v36 = vor.u32 %v9463_v28, %v7350_v27  ;;  %2988 = vmatpush.bf16.msrb.mxu2 %v7895_v26  ;;  %3004 = vmatpush.bf16.msrb.mxu3 %v6299_v54  ;;  %v6235_v26 = vor.u32 %v9179_v7, %v6232_v9  ;;  %v6715_v27 = vor.u32 %v9299_v10, %v6712_v12  ;;  %v9178_v28 = vld [vmem:[#allocation3 + $0x30] sm:$0xf0]  ;;  %v7160_v54 = vld [vmem:[#allocation6 + $0x760] sm:$0xf0] }
  0x81   :  { %v9527_v31 = vld [vmem:[#allocation6 + $0xadc] sm:$0xf0]  ;;  %v9267_v10 = vld [vmem:[#allocation6 + $0x2c4] sm:$0xf] }
  0x82   :  { %v7862_v32 = vld [vmem:[#allocation6 + $0xcc0] sm:$0xf]  ;;  %v7607_v37 = vor.u32 %v9527_v31, %v7606_v29  ;;  %2961 = vmatpush.bf16.msrb.mxu0 %v7351_v36  ;;  %v9174_v29 = vld [vmem:[#allocation3 + $0x14] sm:$0xf]  ;;  %v6971_v31 = vor.u32 %v9363_v13, %v6968_v14  ;;  %v7483_v36 = vor.u32 %v9491_v18, %v7480_v19  ;;  %v6584_v12 = vld [vmem:[#allocation6 + $0x2e0] sm:$0xf0] }
  0x83   :  { %v9591_v33 = vld [vmem:[#allocation6 + $0xcdc] sm:$0xf0]  ;;  %v10279_v42 = vor.u32 %v9174_v29, %v6220_v30  ;;  %v9331_v13 = vld [vmem:[#allocation6 + $0x4c4] sm:$0xf] }
  0x84   :  { %v7863_v38 = vor.u32 %v9591_v33, %v7862_v32  ;;  %v7318_v39 = vld [vmem:[#allocation6 + $0x880] sm:$0xf]  ;;  %2975 = vmatpush.bf16.msrb.mxu1 %v7607_v37  ;;  %3005 = vmatpush.bf16.msrb.mxu3 %v6267_v8  ;;  %v7227_v32 = vor.u32 %v9427_v15, %v7224_v17  ;;  %v9291_v33 = vld [vmem:[#allocation6 + $0x384] sm:$0xf]  ;;  %v10275_v37 = vor.u32 %v9177_v24, %v6218_v22 }
  0x85   :  { %v9455_v40 = vld [vmem:[#allocation6 + $0x89c] sm:$0xf0]  ;;  %10767 = vst [vmem:[#allocation25_spill] sm:$0xff] %v10279_v42  ;;  %v6840_v15 = vld [vmem:[#allocation6 + $0x4e0] sm:$0xf0] }
  0x86   :  { %v7574_v41 = vld [vmem:[#allocation6 + $0xa80] sm:$0xf]  ;;  %v7319_v48 = vor.u32 %v9455_v40, %v7318_v39  ;;  %2989 = vmatpush.bf16.msrb.mxu2 %v7863_v38  ;;  %10766 = vst [vmem:[#allocation24_spill] sm:$0xff] %v10275_v37  ;;  %v6936_v38 = vld [vmem:[#allocation6 + $0x5a0] sm:$0xf0] }
  0x87   :  { %v9519_v43 = vld [vmem:[#allocation6 + $0xa9c] sm:$0xf0]  ;;  %v9419_v39 = vld [vmem:[#allocation6 + $0x784] sm:$0xf]  ;;  %v6939_v46 = vor.u32 %v9355_v35, %v6936_v38 }
  0x88   :  { %v7830_v44 = vld [vmem:[#allocation6 + $0xc80] sm:$0xf]  ;;  %v7575_v49 = vor.u32 %v9519_v43, %v7574_v41  ;;  %2962 = vmatpush.bf16.msrb.mxu0 %v7319_v48  ;;  %v7192_v40 = vld [vmem:[#allocation6 + $0x7a0] sm:$0xf0]  ;;  %3006 = vmatpush.bf16.msrb.mxu3 %v6235_v26 }
  0x89   :  { %v9583_v45 = vld [vmem:[#allocation6 + $0xc9c] sm:$0xf0]  ;;  %v9483_v43 = vld [vmem:[#allocation6 + $0x984] sm:$0xf]  ;;  %v7195_v47 = vor.u32 %v9419_v39, %v7192_v40 }
  0x8a   :  { %v7831_v50 = vor.u32 %v9583_v45, %v7830_v44  ;;  %v7286_v51 = vld [vmem:[#allocation6 + $0x840] sm:$0xf]  ;;  %2976 = vmatpush.bf16.msrb.mxu1 %v7575_v49  ;;  %v7448_v44 = vld [vmem:[#allocation6 + $0x9a0] sm:$0xf0]  ;;  %v6683_v45 = vor.u32 %v9291_v33, %v6680_v34 }
  0x8b   :  { %v9447_v52 = vld [vmem:[#allocation6 + $0x85c] sm:$0xf0]  ;;  %v9283_v48 = vld [vmem:[#allocation6 + $0x344] sm:$0xf]  ;;  %3007 = vmatmul.bf16.vlgmr.msrb.gmra.mxu3 %v10263_v57 }
  0x8c   :  { %v7542_v53 = vld [vmem:[#allocation6 + $0xa40] sm:$0xf]  ;;  %v7287_v62 = vor.u32 %v9447_v52, %v7286_v51  ;;  %2990 = vmatpush.bf16.msrb.mxu2 %v7831_v50  ;;  %v6648_v49 = vld [vmem:[#allocation6 + $0x360] sm:$0xf0]  ;;  %3055 = vmatpush.bf16.msra.mxu3 %v7483_v36  ;;  %v7451_v51 = vor.u32 %v9483_v43, %v7448_v44 }
  0x8d   :  { %v9511_v55 = vld [vmem:[#allocation6 + $0xa5c] sm:$0xf0]  ;;  %v9347_v50 = vld [vmem:[#allocation6 + $0x544] sm:$0xf] }
  0x8e   :  { %v7798_v56 = vld [vmem:[#allocation6 + $0xc40] sm:$0xf]  ;;  %v7543_v3 = vor.u32 %v9511_v55, %v7542_v53  ;;  %2963 = vmatpush.bf16.msrb.mxu0 %v7287_v62  ;;  %v6904_v52 = vld [vmem:[#allocation6 + $0x560] sm:$0xf0] }
  0x8f   :  { %v9575_v58 = vld [vmem:[#allocation6 + $0xc5c] sm:$0xf0]  ;;  %v9411_v53 = vld [vmem:[#allocation6 + $0x744] sm:$0xf]  ;;  %v6907_v59 = vor.u32 %v9347_v50, %v6904_v52 }
  0x90   :  { %v7254_v61 = vld [vmem:[#allocation6 + $0x800] sm:$0xf]  ;;  %v7799_v4 = vor.u32 %v9575_v58, %v7798_v56  ;;  %2977 = vmatpush.bf16.msrb.mxu1 %v7543_v3  ;;  %v9475_v55 = vld [vmem:[#allocation6 + $0x944] sm:$0xf]  ;;  %v6651_v58 = vor.u32 %v9283_v48, %v6648_v49  ;;  %v7163_v60 = vor.u32 %v9411_v53, %v7160_v54  ;;  %3056 = vmatpush.bf16.msra.mxu3 %v7451_v51 }
  0x91   :  { %v9439_v63 = vld [vmem:[#allocation6 + $0x81c] sm:$0xf0]  ;;  %v7416_v56 = vld [vmem:[#allocation6 + $0x960] sm:$0xf0] }
  0x92   :  { %v7510_v1 = vld [vmem:[#allocation6 + $0xa00] sm:$0xf]  ;;  %v7255_v16 = vor.u32 %v9439_v63, %v7254_v61  ;;  %2991 = vmatpush.bf16.msrb.mxu2 %v7799_v4  ;;  %v9275_v61 = vld [vmem:[#allocation6 + $0x304] sm:$0xf] }
  0x93   :  { %v9503_v2 = vld [vmem:[#allocation6 + $0xa1c] sm:$0xf0]  ;;  %v6616_v62 = vld [vmem:[#allocation6 + $0x320] sm:$0xf0] }
  0x94   :  { %v7766_v5 = vld [vmem:[#allocation6 + $0xc00] sm:$0xf]  ;;  %v7511_v20 = vor.u32 %v9503_v2, %v7510_v1  ;;  %2964 = vmatpush.bf16.msrb.mxu0 %v7255_v16  ;;  %v9339_v63 = vld [vmem:[#allocation6 + $0x504] sm:$0xf]  ;;  %v7419_v1 = vor.u32 %v9475_v55, %v7416_v56  ;;  %v6619_v7 = vor.u32 %v9275_v61, %v6616_v62 }
  0x95   :  { %v9567_v6 = vld [vmem:[#allocation6 + $0xc1c] sm:$0xf0]  ;;  %v6872_v2 = vld [vmem:[#allocation6 + $0x520] sm:$0xf0] }
  0x96   :  { %v7767_v21 = vor.u32 %v9567_v6, %v7766_v5  ;;  %v6226_v25 = vld [vmem:[#allocation3 + $0x18] sm:$0xf]  ;;  %2978 = vmatpush.bf16.msrb.mxu1 %v7511_v20  ;;  %v9403_v3 = vld [vmem:[#allocation6 + $0x704] sm:$0xf]  ;;  %v6875_v8 = vor.u32 %v9339_v63, %v6872_v2  ;;  %3057 = vmatpush.bf16.msra.mxu3 %v7419_v1  ;;  %v6587_v20 = vor.u32 %v9267_v10, %v6584_v12 }
  0x97   :  { %v10277_v41 = vor.u32 %v9178_v28, %v6226_v25  ;;  %2965 = vmatmul.bf16.vlgmr.msrb.gmra.mxu0 %v10275_v37  ;;  %v7128_v4 = vld [vmem:[#allocation6 + $0x720] sm:$0xf0] }
  0x98   :  { %2992 = vmatpush.bf16.msrb.mxu2 %v7767_v21  ;;  %3013 = vmatpush.bf16.msra.mxu0 %v6715_v27  ;;  %v9467_v5 = vld [vmem:[#allocation6 + $0x904] sm:$0xf]  ;;  %v7131_v9 = vor.u32 %v9403_v3, %v7128_v4  ;;  %v6843_v21 = vor.u32 %v9331_v13, %v6840_v15  ;;  %v6462_v3 = vld [vmem:[#allocation6 + $0x1c8] sm:$0xf] }
  0x99   :  { %2979 = vmatmul.bf16.vlgmr.msrb.gmra.mxu1 %v10279_v42  ;;  %v7384_v6 = vld [vmem:[#allocation6 + $0x920] sm:$0xf0]  ;;  %v9240_v4 = vld [vmem:[#allocation6 + $0x1e4] sm:$0xf0] }
  0x9a   :  { %3027 = vmatpush.bf16.msra.mxu1 %v6971_v31  ;;  %v7387_v14 = vor.u32 %v9467_v5, %v7384_v6  ;;  %v9395_v16 = vld [vmem:[#allocation6 + $0x6c4] sm:$0xf]  ;;  %v6463_v13 = vor.u32 %v9240_v4, %v6462_v3 }
  0x9b   :  { %2993 = vmatmul.bf16.vlgmr.msrb.gmra.mxu2 %v10277_v41  ;;  %v7096_v17 = vld [vmem:[#allocation6 + $0x6e0] sm:$0xf0] }
  0x9c   :  { %3041 = vmatpush.bf16.msra.mxu2 %v7227_v32  ;;  %3014 = vmatpush.bf16.msra.mxu0 %v6683_v45  ;;  %v9459_v18 = vld [vmem:[#allocation6 + $0x8c4] sm:$0xf]  ;;  %v7099_v22 = vor.u32 %v9395_v16, %v7096_v17 }
  0x9d   :  { %v7352_v19 = vld [vmem:[#allocation6 + $0x8e0] sm:$0xf0]  ;;  %3058 = vmatpush.bf16.msra.mxu3 %v7387_v14 }
  0x9e   :  { %3028 = vmatpush.bf16.msra.mxu1 %v6939_v46  ;;  %v9259_v24 = vld [vmem:[#allocation6 + $0x284] sm:$0xf]  ;;  %v7355_v27 = vor.u32 %v9459_v18, %v7352_v19  ;;  %v6430_v19 = vld [vmem:[#allocation6 + $0x188] sm:$0xf] }
  0x9f   :  { %v6552_v25 = vld [vmem:[#allocation6 + $0x2a0] sm:$0xf0] }
  0xa0   :  { %3042 = vmatpush.bf16.msra.mxu2 %v7195_v47  ;;  %3015 = vmatpush.bf16.msra.mxu0 %v6651_v58  ;;  %v9323_v26 = vld [vmem:[#allocation6 + $0x484] sm:$0xf]  ;;  %v6555_v33 = vor.u32 %v9259_v24, %v6552_v25 }
  0xa1   :  { %v6808_v28 = vld [vmem:[#allocation6 + $0x4a0] sm:$0xf0]  ;;  %3059 = vmatpush.bf16.msra.mxu3 %v7355_v27 }
  0xa2   :  { %3029 = vmatpush.bf16.msra.mxu1 %v6907_v59  ;;  %v9387_v29 = vld [vmem:[#allocation6 + $0x684] sm:$0xf]  ;;  %v6811_v34 = vor.u32 %v9323_v26, %v6808_v28 }
  0xa3   :  { %v7064_v30 = vld [vmem:[#allocation6 + $0x6a0] sm:$0xf0] }
  0xa4   :  { %3043 = vmatpush.bf16.msra.mxu2 %v7163_v60  ;;  %3016 = vmatpush.bf16.msra.mxu0 %v6619_v7  ;;  %v9451_v31 = vld [vmem:[#allocation6 + $0x884] sm:$0xf]  ;;  %v7067_v35 = vor.u32 %v9387_v29, %v7064_v30  ;;  %v6718_v7 = vld [vmem:[#allocation6 + $0x3c8] sm:$0xf] }
  0xa5   :  { %v7320_v32 = vld [vmem:[#allocation6 + $0x8a0] sm:$0xf0] }
  0xa6   :  { %3030 = vmatpush.bf16.msra.mxu1 %v6875_v8  ;;  %v9251_v36 = vld [vmem:[#allocation6 + $0x244] sm:$0xf]  ;;  %v7323_v40 = vor.u32 %v9451_v31, %v7320_v32  ;;  %v9304_v8 = vld [vmem:[#allocation6 + $0x3e4] sm:$0xf0] }
  0xa7   :  { %v6520_v38 = vld [vmem:[#allocation6 + $0x260] sm:$0xf0]  ;;  %v6719_v17 = vor.u32 %v9304_v8, %v6718_v7  ;;  %v6398_v32 = vld [vmem:[#allocation6 + $0x148] sm:$0xf] }
  0xa8   :  { %3044 = vmatpush.bf16.msra.mxu2 %v7131_v9  ;;  %3017 = vmatpush.bf16.msra.mxu0 %v6587_v20  ;;  %v9315_v39 = vld [vmem:[#allocation6 + $0x444] sm:$0xf]  ;;  %v6523_v48 = vor.u32 %v9251_v36, %v6520_v38  ;;  %v9232_v20 = vld [vmem:[#allocation6 + $0x1a4] sm:$0xf0] }
  0xa9   :  { %v6776_v43 = vld [vmem:[#allocation6 + $0x460] sm:$0xf0]  ;;  %3060 = vmatpush.bf16.msra.mxu3 %v7323_v40  ;;  %v6431_v26 = vor.u32 %v9232_v20, %v6430_v19 }
  0xaa   :  { %3031 = vmatpush.bf16.msra.mxu1 %v6843_v21  ;;  %v9379_v44 = vld [vmem:[#allocation6 + $0x644] sm:$0xf]  ;;  %v6779_v51 = vor.u32 %v9315_v39, %v6776_v43  ;;  %v6686_v21 = vld [vmem:[#allocation6 + $0x388] sm:$0xf] }
  0xab   :  { %v7032_v45 = vld [vmem:[#allocation6 + $0x660] sm:$0xf0] }
  0xac   :  { %3045 = vmatpush.bf16.msra.mxu2 %v7099_v22  ;;  %v9443_v46 = vld [vmem:[#allocation6 + $0x844] sm:$0xf]  ;;  %3018 = vmatpush.bf16.msra.mxu0 %v6555_v33  ;;  %v7035_v52 = vor.u32 %v9379_v44, %v7032_v45  ;;  %v9296_v22 = vld [vmem:[#allocation6 + $0x3a4] sm:$0xf0] }
  0xad   :  { %v7288_v47 = vld [vmem:[#allocation6 + $0x860] sm:$0xf0]  ;;  %v6687_v30 = vor.u32 %v9296_v22, %v6686_v21  ;;  %v9224_v33 = vld [vmem:[#allocation6 + $0x164] sm:$0xf0] }
  0xae   :  { %v9243_v49 = vld [vmem:[#allocation6 + $0x204] sm:$0xf]  ;;  %3032 = vmatpush.bf16.msra.mxu1 %v6811_v34  ;;  %v7291_v56 = vor.u32 %v9443_v46, %v7288_v47  ;;  %v6654_v34 = vld [vmem:[#allocation6 + $0x348] sm:$0xf]  ;;  %v6399_v39 = vor.u32 %v9224_v33, %v6398_v32 }
  0xaf   :  { %v6488_v50 = vld [vmem:[#allocation6 + $0x220] sm:$0xf0]  ;;  %v6366_v47 = vld [vmem:[#allocation6 + $0x108] sm:$0xf] }
  0xb0   :  { %3046 = vmatpush.bf16.msra.mxu2 %v7067_v35  ;;  %v9307_v53 = vld [vmem:[#allocation6 + $0x404] sm:$0xf]  ;;  %3019 = vmatpush.bf16.msra.mxu0 %v6523_v48  ;;  %v6491_v1 = vor.u32 %v9243_v49, %v6488_v50  ;;  %v9288_v35 = vld [vmem:[#allocation6 + $0x364] sm:$0xf0] }
  0xb1   :  { %v6744_v54 = vld [vmem:[#allocation6 + $0x420] sm:$0xf0]  ;;  %3061 = vmatpush.bf16.msra.mxu3 %v7291_v56  ;;  %v6655_v45 = vor.u32 %v9288_v35, %v6654_v34  ;;  %v9216_v48 = vld [vmem:[#allocation6 + $0x124] sm:$0xf0] }
  0xb2   :  { %v9371_v55 = vld [vmem:[#allocation6 + $0x604] sm:$0xf]  ;;  %3033 = vmatpush.bf16.msra.mxu1 %v6779_v51  ;;  %v6747_v5 = vor.u32 %v9307_v53, %v6744_v54  ;;  %v6622_v49 = vld [vmem:[#allocation6 + $0x308] sm:$0xf]  ;;  %v6367_v53 = vor.u32 %v9216_v48, %v6366_v47 }
  0xb3   :  { %v7000_v58 = vld [vmem:[#allocation6 + $0x620] sm:$0xf0]  ;;  %v9280_v50 = vld [vmem:[#allocation6 + $0x324] sm:$0xf0] }
  0xb4   :  { %v9435_v59 = vld [vmem:[#allocation6 + $0x804] sm:$0xf]  ;;  %3047 = vmatpush.bf16.msra.mxu2 %v7035_v52  ;;  %v7003_v6 = vor.u32 %v9371_v55, %v7000_v58  ;;  %3020 = vmatpush.bf16.msra.mxu0 %v6491_v1  ;;  %v6623_v58 = vor.u32 %v9280_v50, %v6622_v49  ;;  %v6270_v22 = vld [vmem:[#allocation6 + $0x48] sm:$0xf] }
  0xb5   :  { %v7256_v60 = vld [vmem:[#allocation6 + $0x820] sm:$0xf0]  ;;  %v6238_v34 = vld [vmem:[#allocation6 + $0x8] sm:$0xf] }
  0xb6   :  { %v9555_v61 = vld [vmem:[#allocation6 + $0xbc4] sm:$0xf]  ;;  %v7259_v9 = vor.u32 %v9435_v59, %v7256_v60  ;;  %3034 = vmatpush.bf16.msra.mxu1 %v6747_v5  ;;  %v6334_v60 = vld [vmem:[#allocation6 + $0xc8] sm:$0xf] }
  0xb7   :  { %v7736_v62 = vld [vmem:[#allocation6 + $0xbe0] sm:$0xf0]  ;;  %3021 = vmatmul.bf16.vlgmr.msra.gmra.mxu0 %v10269_v11  ;;  %v7486_v47 = vld [vmem:[#allocation6 + $0x9c8] sm:$0xf] }
  0xb8   :  { %v9619_v63 = vld [vmem:[#allocation6 + $0xdc4] sm:$0xf]  ;;  %v7739_v10 = vor.u32 %v9555_v61, %v7736_v62  ;;  %3048 = vmatpush.bf16.msra.mxu2 %v7003_v6  ;;  %3062 = vmatpush.bf16.msra.mxu3 %v7259_v9  ;;  %v9208_v61 = vld [vmem:[#allocation6 + $0xe4] sm:$0xf0] }
  0xb9   :  { %v7992_v2 = vld [vmem:[#allocation6 + $0xde0] sm:$0xf0]  ;;  %3035 = vmatmul.bf16.vlgmr.msra.gmra.mxu1 %v10265_v0  ;;  %v6590_v62 = vld [vmem:[#allocation6 + $0x2c8] sm:$0xf]  ;;  %v6335_v3 = vor.u32 %v9208_v61, %v6334_v60 }
  0xba   :  { %v7995_v12 = vor.u32 %v9619_v63, %v7992_v2  ;;  %v9547_v14 = vld [vmem:[#allocation6 + $0xb84] sm:$0xf]  ;;  %3069 = vmatpush.bf16.msrb.mxu0 %v7739_v10  ;;  %v9272_v63 = vld [vmem:[#allocation6 + $0x2e4] sm:$0xf0] }
  0xbb   :  { %v7704_v15 = vld [vmem:[#allocation6 + $0xba0] sm:$0xf0]  ;;  %3049 = vmatmul.bf16.vlgmr.msra.gmra.mxu2 %v10272_v23  ;;  %3063 = vmatmul.bf16.vlgmr.msra.gmra.mxu3 %v10275_v37  ;;  %v6591_v7 = vor.u32 %v9272_v63, %v6590_v62  ;;  %v6302_v9 = vld [vmem:[#allocation6 + $0x88] sm:$0xf] }
  0xbc   :  { %v9611_v16 = vld [vmem:[#allocation6 + $0xd84] sm:$0xf]  ;;  %v7707_v24 = vor.u32 %v9547_v14, %v7704_v15  ;;  %3083 = vmatpush.bf16.msrb.mxu1 %v7995_v12  ;;  %3097 = vmatpush.bf16.msrb.mxu2 %v6463_v13  ;;  %v9200_v10 = vld [vmem:[#allocation6 + $0xa4] sm:$0xf0] }
  0xbd   :  { %v7960_v18 = vld [vmem:[#allocation6 + $0xda0] sm:$0xf0]  ;;  %3111 = vmatpush.bf16.msrb.mxu3 %v6719_v17  ;;  %v6558_v12 = vld [vmem:[#allocation6 + $0x288] sm:$0xf] }
  0xbe   :  { %v7963_v25 = vor.u32 %v9611_v16, %v7960_v18  ;;  %v9539_v27 = vld [vmem:[#allocation6 + $0xb44] sm:$0xf]  ;;  %3070 = vmatpush.bf16.msrb.mxu0 %v7707_v24  ;;  %v9264_v13 = vld [vmem:[#allocation6 + $0x2a4] sm:$0xf0]  ;;  %v6303_v16 = vor.u32 %v9200_v10, %v6302_v9 }
  0xbf   :  { %v7672_v28 = vld [vmem:[#allocation6 + $0xb60] sm:$0xf0]  ;;  %v6559_v20 = vor.u32 %v9264_v13, %v6558_v12  ;;  %v9192_v24 = vld [vmem:[#allocation6 + $0x64] sm:$0xf0] }
  0xc0   :  { %v9603_v29 = vld [vmem:[#allocation6 + $0xd44] sm:$0xf]  ;;  %v7675_v36 = vor.u32 %v9539_v27, %v7672_v28  ;;  %3084 = vmatpush.bf16.msrb.mxu1 %v7963_v25  ;;  %3098 = vmatpush.bf16.msrb.mxu2 %v6431_v26  ;;  %v6526_v25 = vld [vmem:[#allocation6 + $0x248] sm:$0xf] }
  0xc1   :  { %v7928_v31 = vld [vmem:[#allocation6 + $0xd60] sm:$0xf0]  ;;  %3112 = vmatpush.bf16.msrb.mxu3 %v6687_v30  ;;  %v9256_v26 = vld [vmem:[#allocation6 + $0x264] sm:$0xf0] }
  0xc2   :  { %v7931_v38 = vor.u32 %v9603_v29, %v7928_v31  ;;  %v9531_v40 = vld [vmem:[#allocation6 + $0xb04] sm:$0xf]  ;;  %3071 = vmatpush.bf16.msrb.mxu0 %v7675_v36  ;;  %v6271_v31 = vor.u32 %v9192_v24, %v6270_v22  ;;  %v6527_v35 = vor.u32 %v9256_v26, %v6526_v25  ;;  %v9184_v36 = vld [vmem:[#allocation6 + $0x24] sm:$0xf0] }
  0xc3   :  { %v7640_v43 = vld [vmem:[#allocation6 + $0xb20] sm:$0xf0]  ;;  %v9496_v48 = vld [vmem:[#allocation6 + $0x9e4] sm:$0xf0]  ;;  %v6239_v50 = vor.u32 %v9184_v36, %v6238_v34 }
  0xc4   :  { %v9595_v44 = vld [vmem:[#allocation6 + $0xd04] sm:$0xf]  ;;  %v7643_v51 = vor.u32 %v9531_v40, %v7640_v43  ;;  %3085 = vmatpush.bf16.msrb.mxu1 %v7931_v38  ;;  %3099 = vmatpush.bf16.msrb.mxu2 %v6399_v39  ;;  %v6494_v38 = vld [vmem:[#allocation6 + $0x208] sm:$0xf] }
  0xc5   :  { %v7896_v46 = vld [vmem:[#allocation6 + $0xd20] sm:$0xf0]  ;;  %3113 = vmatpush.bf16.msrb.mxu3 %v6655_v45  ;;  %v9248_v39 = vld [vmem:[#allocation6 + $0x224] sm:$0xf0] }
  0xc6   :  { %v7899_v52 = vor.u32 %v9595_v44, %v7896_v46  ;;  %v9523_v54 = vld [vmem:[#allocation6 + $0xac4] sm:$0xf]  ;;  %3072 = vmatpush.bf16.msrb.mxu0 %v7643_v51  ;;  %v6974_v40 = vld [vmem:[#allocation6 + $0x5c8] sm:$0xf] }
  0xc7   :  { %v7608_v55 = vld [vmem:[#allocation6 + $0xae0] sm:$0xf0]  ;;  %v9368_v43 = vld [vmem:[#allocation6 + $0x5e4] sm:$0xf0] }
  0xc8   :  { %v9587_v56 = vld [vmem:[#allocation6 + $0xcc4] sm:$0xf]  ;;  %v7611_v1 = vor.u32 %v9523_v54, %v7608_v55  ;;  %3086 = vmatpush.bf16.msrb.mxu1 %v7899_v52  ;;  %3100 = vmatpush.bf16.msrb.mxu2 %v6367_v53  ;;  %v7230_v44 = vld [vmem:[#allocation6 + $0x7c8] sm:$0xf]  ;;  %v6495_v53 = vor.u32 %v9248_v39, %v6494_v38  ;;  %v6975_v54 = vor.u32 %v9368_v43, %v6974_v40 }
  0xc9   :  { %v7864_v59 = vld [vmem:[#allocation6 + $0xce0] sm:$0xf0]  ;;  %3114 = vmatpush.bf16.msrb.mxu3 %v6623_v58  ;;  %v9432_v46 = vld [vmem:[#allocation6 + $0x7e4] sm:$0xf0] }
  0xca   :  { %v7867_v2 = vor.u32 %v9587_v56, %v7864_v59  ;;  %v9515_v4 = vld [vmem:[#allocation6 + $0xa84] sm:$0xf]  ;;  %3073 = vmatpush.bf16.msrb.mxu0 %v7611_v1  ;;  %v7742_v51 = vld [vmem:[#allocation6 + $0xbc8] sm:$0xf]  ;;  %v7231_v55 = vor.u32 %v9432_v46, %v7230_v44  ;;  %v7487_v56 = vor.u32 %v9496_v48, %v7486_v47 }
  0xcb   :  { %v7576_v5 = vld [vmem:[#allocation6 + $0xaa0] sm:$0xf0]  ;;  %v9560_v52 = vld [vmem:[#allocation6 + $0xbe4] sm:$0xf0] }
  0xcc   :  { %v9579_v6 = vld [vmem:[#allocation6 + $0xc84] sm:$0xf]  ;;  %v7579_v14 = vor.u32 %v9515_v4, %v7576_v5  ;;  %3087 = vmatpush.bf16.msrb.mxu1 %v7867_v2  ;;  %3101 = vmatpush.bf16.msrb.mxu2 %v6335_v3  ;;  %v6942_v58 = vld [vmem:[#allocation6 + $0x588] sm:$0xf]  ;;  %v7743_v61 = vor.u32 %v9560_v52, %v7742_v51 }
  0xcd   :  { %v7832_v8 = vld [vmem:[#allocation6 + $0xca0] sm:$0xf0]  ;;  %3115 = vmatpush.bf16.msrb.mxu3 %v6591_v7  ;;  %v9360_v59 = vld [vmem:[#allocation6 + $0x5a4] sm:$0xf0] }
  0xce   :  { %v7835_v15 = vor.u32 %v9579_v6, %v7832_v8  ;;  %v9507_v17 = vld [vmem:[#allocation6 + $0xa44] sm:$0xf]  ;;  %3074 = vmatpush.bf16.msrb.mxu0 %v7579_v14  ;;  %v7198_v60 = vld [vmem:[#allocation6 + $0x788] sm:$0xf]  ;;  %v6943_v4 = vor.u32 %v9360_v59, %v6942_v58 }
  0xcf   :  { %v7544_v18 = vld [vmem:[#allocation6 + $0xa60] sm:$0xf0]  ;;  %v9424_v62 = vld [vmem:[#allocation6 + $0x7a4] sm:$0xf0] }
  0xd0   :  { %v9571_v19 = vld [vmem:[#allocation6 + $0xc44] sm:$0xf]  ;;  %v7547_v27 = vor.u32 %v9507_v17, %v7544_v18  ;;  %3088 = vmatpush.bf16.msrb.mxu1 %v7835_v15  ;;  %3102 = vmatpush.bf16.msrb.mxu2 %v6303_v16  ;;  %v7454_v63 = vld [vmem:[#allocation6 + $0x988] sm:$0xf]  ;;  %v7199_v5 = vor.u32 %v9424_v62, %v7198_v60 }
  0xd1   :  { %v7800_v21 = vld [vmem:[#allocation6 + $0xc60] sm:$0xf0]  ;;  %3116 = vmatpush.bf16.msrb.mxu3 %v6559_v20  ;;  %v9488_v1 = vld [vmem:[#allocation6 + $0x9a4] sm:$0xf0] }
  0xd2   :  { %v9499_v28 = vld [vmem:[#allocation6 + $0xa04] sm:$0xf]  ;;  %v7803_v30 = vor.u32 %v9571_v19, %v7800_v21  ;;  %3075 = vmatpush.bf16.msrb.mxu0 %v7547_v27  ;;  %v7710_v2 = vld [vmem:[#allocation6 + $0xb88] sm:$0xf]  ;;  %v7455_v6 = vor.u32 %v9488_v1, %v7454_v63 }
  0xd3   :  { %v7512_v29 = vld [vmem:[#allocation6 + $0xa20] sm:$0xf0]  ;;  %v9552_v3 = vld [vmem:[#allocation6 + $0xba4] sm:$0xf0] }
  0xd4   :  { %v9563_v32 = vld [vmem:[#allocation6 + $0xc04] sm:$0xf]  ;;  %v7515_v45 = vor.u32 %v9499_v28, %v7512_v29  ;;  %3089 = vmatpush.bf16.msrb.mxu1 %v7803_v30  ;;  %3103 = vmatpush.bf16.msrb.mxu2 %v6271_v31  ;;  %v6910_v7 = vld [vmem:[#allocation6 + $0x548] sm:$0xf]  ;;  %v7711_v10 = vor.u32 %v9552_v3, %v7710_v2 }
  0xd5   :  { %v7768_v33 = vld [vmem:[#allocation6 + $0xc20] sm:$0xf0]  ;;  %3117 = vmatpush.bf16.msrb.mxu3 %v6527_v35  ;;  %v9352_v8 = vld [vmem:[#allocation6 + $0x564] sm:$0xf0] }
  0xd6   :  { %v7771_v49 = vor.u32 %v9563_v32, %v7768_v33  ;;  %3076 = vmatpush.bf16.msrb.mxu0 %v7515_v45  ;;  %v7166_v9 = vld [vmem:[#allocation6 + $0x748] sm:$0xf]  ;;  %v6911_v17 = vor.u32 %v9352_v8, %v6910_v7 }
  0xd7   :  { %v9416_v12 = vld [vmem:[#allocation6 + $0x764] sm:$0xf0] }
  0xd8   :  { %3090 = vmatpush.bf16.msrb.mxu1 %v7771_v49  ;;  %3104 = vmatpush.bf16.msrb.mxu2 %v6239_v50  ;;  %v7422_v13 = vld [vmem:[#allocation6 + $0x948] sm:$0xf]  ;;  %v7167_v18 = vor.u32 %v9416_v12, %v7166_v9 }
  0xd9   :  { %3118 = vmatpush.bf16.msrb.mxu3 %v6495_v53  ;;  %3077 = vmatmul.bf16.vlgmr.msrb.gmra.mxu0 %v10279_v42  ;;  %v9480_v14 = vld [vmem:[#allocation6 + $0x964] sm:$0xf0] }
  0xda   :  { %3125 = vmatpush.bf16.msra.mxu0 %v6975_v54  ;;  %v7678_v15 = vld [vmem:[#allocation6 + $0xb48] sm:$0xf]  ;;  %v7423_v19 = vor.u32 %v9480_v14, %v7422_v13 }
  0xdb   :  { %3091 = vmatmul.bf16.vlgmr.msrb.gmra.mxu1 %v10277_v41  ;;  %v9544_v16 = vld [vmem:[#allocation6 + $0xb64] sm:$0xf0]  ;;  %3105 = vmatmul.bf16.vlgmr.msrb.gmra.mxu2 %v10263_v57 }
  0xdc   :  { %3139 = vmatpush.bf16.msra.mxu1 %v7231_v55  ;;  %3153 = vmatpush.bf16.msra.mxu2 %v7487_v56  ;;  %v6878_v20 = vld [vmem:[#allocation6 + $0x508] sm:$0xf]  ;;  %v7679_v24 = vor.u32 %v9544_v16, %v7678_v15 }
  0xdd   :  { %3167 = vmatpush.bf16.msra.mxu3 %v7743_v61  ;;  %v9344_v21 = vld [vmem:[#allocation6 + $0x524] sm:$0xf0] }
  0xde   :  { %3126 = vmatpush.bf16.msra.mxu0 %v6943_v4  ;;  %3119 = vmatmul.bf16.vlgmr.msrb.gmra.mxu3 %v10269_v11  ;;  %v7134_v22 = vld [vmem:[#allocation6 + $0x708] sm:$0xf]  ;;  %v6879_v30 = vor.u32 %v9344_v21, %v6878_v20 }
  0xdf   :  { %v9408_v25 = vld [vmem:[#allocation6 + $0x724] sm:$0xf0] }
  0xe0   :  { %3140 = vmatpush.bf16.msra.mxu1 %v7199_v5  ;;  %3154 = vmatpush.bf16.msra.mxu2 %v7455_v6  ;;  %v7390_v26 = vld [vmem:[#allocation6 + $0x908] sm:$0xf]  ;;  %v7135_v31 = vor.u32 %v9408_v25, %v7134_v22  ;;  %v9236_v22 = vld [vmem:[#allocation6 + $0x1cc] sm:$0xf] }
  0xe1   :  { %3168 = vmatpush.bf16.msra.mxu3 %v7711_v10  ;;  %v9472_v27 = vld [vmem:[#allocation6 + $0x924] sm:$0xf0]  ;;  %v6464_v25 = vld [vmem:[#allocation6 + $0x1e8] sm:$0xf0] }
  0xe2   :  { %v7646_v28 = vld [vmem:[#allocation6 + $0xb08] sm:$0xf]  ;;  %3127 = vmatpush.bf16.msra.mxu0 %v6911_v17  ;;  %v7391_v32 = vor.u32 %v9472_v27, %v7390_v26  ;;  %v9300_v26 = vld [vmem:[#allocation6 + $0x3cc] sm:$0xf] }
  0xe3   :  { %v9536_v29 = vld [vmem:[#allocation6 + $0xb24] sm:$0xf0]  ;;  %v6720_v27 = vld [vmem:[#allocation6 + $0x3e8] sm:$0xf0] }
  0xe4   :  { %3141 = vmatpush.bf16.msra.mxu1 %v7167_v18  ;;  %3155 = vmatpush.bf16.msra.mxu2 %v7423_v19  ;;  %v6846_v33 = vld [vmem:[#allocation6 + $0x4c8] sm:$0xf]  ;;  %v7647_v36 = vor.u32 %v9536_v29, %v7646_v28 }
  0xe5   :  { %v9336_v34 = vld [vmem:[#allocation6 + $0x4e4] sm:$0xf0]  ;;  %3169 = vmatpush.bf16.msra.mxu3 %v7679_v24 }
  0xe6   :  { %v7102_v35 = vld [vmem:[#allocation6 + $0x6c8] sm:$0xf]  ;;  %3128 = vmatpush.bf16.msra.mxu0 %v6879_v30  ;;  %v6847_v45 = vor.u32 %v9336_v34, %v6846_v33  ;;  %v9364_v30 = vld [vmem:[#allocation6 + $0x5cc] sm:$0xf]  ;;  %v6467_v34 = vor.u32 %v9236_v22, %v6464_v25 }
  0xe7   :  { %v9400_v38 = vld [vmem:[#allocation6 + $0x6e4] sm:$0xf0]  ;;  %v6336_v22 = vld [vmem:[#allocation6 + $0xe8] sm:$0xf0] }
  0xe8   :  { %v7358_v39 = vld [vmem:[#allocation6 + $0x8c8] sm:$0xf]  ;;  %3142 = vmatpush.bf16.msra.mxu1 %v7135_v31  ;;  %3156 = vmatpush.bf16.msra.mxu2 %v7391_v32  ;;  %v7103_v46 = vor.u32 %v9400_v38, %v7102_v35  ;;  %v6976_v31 = vld [vmem:[#allocation6 + $0x5e8] sm:$0xf0]  ;;  %v6723_v35 = vor.u32 %v9300_v26, %v6720_v27 }
  0xe9   :  { %v9464_v40 = vld [vmem:[#allocation6 + $0x8e4] sm:$0xf0]  ;;  %3170 = vmatpush.bf16.msra.mxu3 %v7647_v36  ;;  %v6592_v25 = vld [vmem:[#allocation6 + $0x2e8] sm:$0xf0] }
  0xea   :  { %v7614_v43 = vld [vmem:[#allocation6 + $0xac8] sm:$0xf]  ;;  %v7359_v47 = vor.u32 %v9464_v40, %v7358_v39  ;;  %3129 = vmatpush.bf16.msra.mxu0 %v6847_v45  ;;  %v9228_v39 = vld [vmem:[#allocation6 + $0x18c] sm:$0xf]  ;;  %v6979_v40 = vor.u32 %v9364_v30, %v6976_v31 }
  0xeb   :  { %v9528_v44 = vld [vmem:[#allocation6 + $0xae4] sm:$0xf0]  ;;  %v6688_v45 = vld [vmem:[#allocation6 + $0x3a8] sm:$0xf0] }
  0xec   :  { %v6814_v48 = vld [vmem:[#allocation6 + $0x488] sm:$0xf]  ;;  %v7615_v51 = vor.u32 %v9528_v44, %v7614_v43  ;;  %3143 = vmatpush.bf16.msra.mxu1 %v7103_v46  ;;  %3157 = vmatpush.bf16.msra.mxu2 %v7359_v47  ;;  %v6432_v43 = vld [vmem:[#allocation6 + $0x1a8] sm:$0xf0] }
  0xed   :  { %v9328_v49 = vld [vmem:[#allocation6 + $0x4a4] sm:$0xf0]  ;;  %v9292_v44 = vld [vmem:[#allocation6 + $0x38c] sm:$0xf] }
  0xee   :  { %v7070_v50 = vld [vmem:[#allocation6 + $0x688] sm:$0xf]  ;;  %v6815_v58 = vor.u32 %v9328_v49, %v6814_v48  ;;  %3171 = vmatpush.bf16.msra.mxu3 %v7615_v51  ;;  %v9356_v46 = vld [vmem:[#allocation6 + $0x58c] sm:$0xf]  ;;  %v6691_v51 = vor.u32 %v9292_v44, %v6688_v45 }
  0xef   :  { %v9392_v52 = vld [vmem:[#allocation6 + $0x6a4] sm:$0xf0]  ;;  %v6944_v47 = vld [vmem:[#allocation6 + $0x5a8] sm:$0xf0] }
  0xf0   :  { %v7326_v53 = vld [vmem:[#allocation6 + $0x888] sm:$0xf]  ;;  %v7071_v59 = vor.u32 %v9392_v52, %v7070_v50  ;;  %3130 = vmatpush.bf16.msra.mxu0 %v6815_v58  ;;  %v6435_v50 = vor.u32 %v9228_v39, %v6432_v43  ;;  %v9284_v58 = vld [vmem:[#allocation6 + $0x34c] sm:$0xf]  ;;  %v2938_v43 = vpop.f32.mrf.mxu2 }
  0xf1   :  { %v9456_v54 = vld [vmem:[#allocation6 + $0x8a4] sm:$0xf0]  ;;  %v9332_v26 = vld [vmem:[#allocation6 + $0x4cc] sm:$0xf] }
  0xf2   :  { %v7582_v55 = vld [vmem:[#allocation6 + $0xa88] sm:$0xf]  ;;  %v7327_v60 = vor.u32 %v9456_v54, %v7326_v53  ;;  %3144 = vmatpush.bf16.msra.mxu1 %v7071_v59  ;;  %v9220_v53 = vld [vmem:[#allocation6 + $0x14c] sm:$0xf]  ;;  %v10293_v54 = vld [vmem:[#allocation8] sm:$0xff] }
  0xf3   :  { %v9520_v56 = vld [vmem:[#allocation6 + $0xaa4] sm:$0xf0]  ;;  %v6656_v59 = vld [vmem:[#allocation6 + $0x368] sm:$0xf0] }
  0xf4   :  { %v6782_v61 = vld [vmem:[#allocation6 + $0x448] sm:$0xf]  ;;  %v7583_v1 = vor.u32 %v9520_v56, %v7582_v55  ;;  %3158 = vmatpush.bf16.msra.mxu2 %v7327_v60  ;;  %v6947_v55 = vor.u32 %v9356_v46, %v6944_v47  ;;  %v6400_v56 = vld [vmem:[#allocation6 + $0x168] sm:$0xf0] }
  0xf5   :  { %v9320_v62 = vld [vmem:[#allocation6 + $0x464] sm:$0xf0]  ;;  %v9348_v60 = vld [vmem:[#allocation6 + $0x54c] sm:$0xf] }
  0xf6   :  { %v7038_v63 = vld [vmem:[#allocation6 + $0x648] sm:$0xf]  ;;  %v6783_v7 = vor.u32 %v9320_v62, %v6782_v61  ;;  %3172 = vmatpush.bf16.msra.mxu3 %v7583_v1  ;;  %v6912_v61 = vld [vmem:[#allocation6 + $0x568] sm:$0xf0]  ;;  %v6403_v1 = vor.u32 %v9220_v53, %v6400_v56 }
  0xf7   :  { %v9384_v2 = vld [vmem:[#allocation6 + $0x664] sm:$0xf0]  ;;  %v6848_v27 = vld [vmem:[#allocation6 + $0x4e8] sm:$0xf0] }
  0xf8   :  { %v7294_v3 = vld [vmem:[#allocation6 + $0x848] sm:$0xf]  ;;  %v7039_v10 = vor.u32 %v9384_v2, %v7038_v63  ;;  %3131 = vmatpush.bf16.msra.mxu0 %v6783_v7  ;;  %v10762_v63 = vperm.slane %v10293_v54, 0  ;;  %v6659_v2 = vor.u32 %v9284_v58, %v6656_v59  ;;  %v6368_v7 = vld [vmem:[#allocation6 + $0x128] sm:$0xf0] }
  0xf9   :  { %v9448_v4 = vld [vmem:[#allocation6 + $0x864] sm:$0xf0]  ;;  %v9260_v39 = vld [vmem:[#allocation6 + $0x28c] sm:$0xf] }
  0xfa   :  { %v7550_v5 = vld [vmem:[#allocation6 + $0xa48] sm:$0xf]  ;;  %v7295_v12 = vor.u32 %v9448_v4, %v7294_v3  ;;  %3145 = vmatpush.bf16.msra.mxu1 %v7039_v10  ;;  %v9340_v10 = vld [vmem:[#allocation6 + $0x50c] sm:$0xf] }
  0xfb   :  { %v9512_v6 = vld [vmem:[#allocation6 + $0xa64] sm:$0xf0]  ;;  %v9324_v44 = vld [vmem:[#allocation6 + $0x48c] sm:$0xf] }
  0xfc   :  { %v6750_v8 = vld [vmem:[#allocation6 + $0x408] sm:$0xf]  ;;  %v7551_v16 = vor.u32 %v9512_v6, %v7550_v5  ;;  %3159 = vmatpush.bf16.msra.mxu2 %v7295_v12  ;;  %v9212_v5 = vld [vmem:[#allocation6 + $0x10c] sm:$0xf]  ;;  %v6915_v6 = vor.u32 %v9348_v60, %v6912_v61 }
  0xfd   :  { %v9312_v9 = vld [vmem:[#allocation6 + $0x424] sm:$0xf0]  ;;  %v6880_v12 = vld [vmem:[#allocation6 + $0x528] sm:$0xf0] }
  0xfe   :  { %v7006_v13 = vld [vmem:[#allocation6 + $0x608] sm:$0xf]  ;;  %v6751_v24 = vor.u32 %v9312_v9, %v6750_v8  ;;  %3173 = vmatpush.bf16.msra.mxu3 %v7551_v16  ;;  %v9276_v8 = vld [vmem:[#allocation6 + $0x30c] sm:$0xf]  ;;  %v6371_v16 = vor.u32 %v9212_v5, %v6368_v7 }
  0xff   :  { %v9376_v14 = vld [vmem:[#allocation6 + $0x624] sm:$0xf0]  ;;  %v6624_v9 = vld [vmem:[#allocation6 + $0x328] sm:$0xf0] }
 0x100   :  { %v7262_v15 = vld [vmem:[#allocation6 + $0x808] sm:$0xf]  ;;  %v7007_v28 = vor.u32 %v9376_v14, %v7006_v13  ;;  %3132 = vmatpush.bf16.msra.mxu0 %v6751_v24  ;;  %v2910_v13 = vpop.f32.mrf.mxu0  ;;  %v9268_v24 = vld [vmem:[#allocation6 + $0x2cc] sm:$0xf] }
 0x101   :  { %v9440_v17 = vld [vmem:[#allocation6 + $0x824] sm:$0xf0]  ;;  %v6816_v45 = vld [vmem:[#allocation6 + $0x4a8] sm:$0xf0] }
 0x102   :  { %v7518_v18 = vld [vmem:[#allocation6 + $0xa08] sm:$0xf]  ;;  %v7263_v29 = vor.u32 %v9440_v17, %v7262_v15  ;;  %3146 = vmatpush.bf16.msra.mxu1 %v7007_v28  ;;  %v2911_v15 = vadd.f32 %v2910_v13, %v10762_v63  ;;  %v6627_v17 = vor.u32 %v9276_v8, %v6624_v9  ;;  %v2924_v28 = vpop.f32.mrf.mxu1  ;;  %v6819_v53 = vor.u32 %v9324_v44, %v6816_v45  ;;  %v9252_v56 = vld [vmem:[#allocation6 + $0x24c] sm:$0xf]  ;;  %v7790_v63 = vld [vmem:[#allocation6 + $0xc18] sm:$0xf] }
 0x103   :  { %v9504_v19 = vld [vmem:[#allocation6 + $0xa24] sm:$0xf0]  ;;  %3133 = vmatmul.bf16.vlgmr.msra.gmra.mxu0 %v10265_v0  ;;  %v6528_v58 = vld [vmem:[#allocation6 + $0x268] sm:$0xf0] }
 0x104   :  { %v7998_v20 = vld [vmem:[#allocation6 + $0xdc8] sm:$0xf]  ;;  %v7519_v32 = vor.u32 %v9504_v19, %v7518_v18  ;;  %3160 = vmatpush.bf16.msra.mxu2 %v7263_v29  ;;  %v2925_v30 = vadd.f32 %v2924_v28, %v2911_v15  ;;  %v9316_v59 = vld [vmem:[#allocation6 + $0x44c] sm:$0xf] }
 0x105   :  { %v9624_v21 = vld [vmem:[#allocation6 + $0xde4] sm:$0xf0]  ;;  %3147 = vmatmul.bf16.vlgmr.msra.gmra.mxu1 %v10272_v23  ;;  %v6784_v60 = vld [vmem:[#allocation6 + $0x468] sm:$0xf0] }
 0x106   :  { %v7999_v33 = vor.u32 %v9624_v21, %v7998_v20  ;;  %v7966_v36 = vld [vmem:[#allocation6 + $0xd88] sm:$0xf]  ;;  %3174 = vmatpush.bf16.msra.mxu3 %v7519_v32  ;;  %3195 = vmatpush.bf16.msrb.mxu1 %v6467_v34  ;;  %v9204_v20 = vld [vmem:[#allocation6 + $0xcc] sm:$0xf]  ;;  %v6883_v21 = vor.u32 %v9340_v10, %v6880_v12  ;;  %v6595_v32 = vor.u32 %v9268_v24, %v6592_v25  ;;  %v2952_v12 = vpop.f32.mrf.mxu3 }
 0x107   :  { %v9616_v38 = vld [vmem:[#allocation6 + $0xda4] sm:$0xf0]  ;;  %3161 = vmatmul.bf16.vlgmr.msra.gmra.mxu2 %v10275_v37  ;;  %v6339_v31 = vor.u32 %v9204_v20, %v6336_v22  ;;  %v2939_v46 = vadd.f32 %v2938_v43, %v2925_v30  ;;  %v6240_v5 = vld [vmem:[#allocation6 + $0x28] sm:$0xf0]  ;;  %v6787_v7 = vor.u32 %v9316_v59, %v6784_v60  ;;  %v10311_v59 = vpop.f32.mrf.mxu2 }
 0x108   :  { %3181 = vmatpush.bf16.msrb.mxu0 %v7999_v33  ;;  %v7967_v48 = vor.u32 %v9616_v38, %v7966_v36  ;;  %v7934_v49 = vld [vmem:[#allocation6 + $0xd48] sm:$0xf]  ;;  %3209 = vmatpush.bf16.msrb.mxu2 %v6723_v35  ;;  %v9196_v35 = vld [vmem:[#allocation6 + $0x8c] sm:$0xf]  ;;  %v6851_v36 = vor.u32 %v9332_v26, %v6848_v27  ;;  %v10304_v30 = vpop.f32.mrf.mxu0 }
 0x109   :  { %v9608_v52 = vld [vmem:[#allocation6 + $0xd64] sm:$0xf0]  ;;  %3175 = vmatmul.bf16.vlgmr.msra.gmra.mxu3 %v10279_v42  ;;  %v6304_v38 = vld [vmem:[#allocation6 + $0xa8] sm:$0xf0] }
 0x10a   :  { %3223 = vmatpush.bf16.msrb.mxu3 %v6979_v40  ;;  %v7935_v62 = vor.u32 %v9608_v52, %v7934_v49  ;;  %3196 = vmatpush.bf16.msrb.mxu1 %v6435_v50  ;;  %v7902_v3 = vld [vmem:[#allocation6 + $0xd08] sm:$0xf]  ;;  %v6560_v40 = vld [vmem:[#allocation6 + $0x2a8] sm:$0xf0]  ;;  %v10306_v43 = vpop.f32.mrf.mxu1 }
 0x10b   :  { %v9600_v4 = vld [vmem:[#allocation6 + $0xd24] sm:$0xf0]  ;;  %v6563_v49 = vor.u32 %v9260_v39, %v6560_v40  ;;  %v9188_v52 = vld [vmem:[#allocation6 + $0x4c] sm:$0xf] }
 0x10c   :  { %3182 = vmatpush.bf16.msrb.mxu0 %v7967_v48  ;;  %3210 = vmatpush.bf16.msrb.mxu2 %v6691_v51  ;;  %v7903_v14 = vor.u32 %v9600_v4, %v7902_v3  ;;  %v7870_v18 = vld [vmem:[#allocation6 + $0xcc8] sm:$0xf]  ;;  %v6307_v48 = vor.u32 %v9196_v35, %v6304_v38  ;;  %v6531_v3 = vor.u32 %v9252_v56, %v6528_v58  ;;  %v9180_v4 = vld [vmem:[#allocation6 + $0xc] sm:$0xf] }
 0x10d   :  { %v9592_v19 = vld [vmem:[#allocation6 + $0xce4] sm:$0xf0]  ;;  %v6496_v8 = vld [vmem:[#allocation6 + $0x228] sm:$0xf0] }
 0x10e   :  { %3224 = vmatpush.bf16.msrb.mxu3 %v6947_v55  ;;  %3197 = vmatpush.bf16.msrb.mxu1 %v6403_v1  ;;  %v7871_v29 = vor.u32 %v9592_v19, %v7870_v18  ;;  %v7838_v33 = vld [vmem:[#allocation6 + $0xc88] sm:$0xf]  ;;  %v6272_v55 = vld [vmem:[#allocation6 + $0x68] sm:$0xf0] }
 0x10f   :  { %v9584_v34 = vld [vmem:[#allocation6 + $0xca4] sm:$0xf0]  ;;  %v9308_v9 = vld [vmem:[#allocation6 + $0x40c] sm:$0xf] }
 0x110   :  { %3183 = vmatpush.bf16.msrb.mxu0 %v7935_v62  ;;  %3211 = vmatpush.bf16.msrb.mxu2 %v6659_v2  ;;  %v7839_v47 = vor.u32 %v9584_v34, %v7838_v33  ;;  %v7806_v50 = vld [vmem:[#allocation6 + $0xc48] sm:$0xf]  ;;  %v6275_v2 = vor.u32 %v9188_v52, %v6272_v55  ;;  %v6752_v10 = vld [vmem:[#allocation6 + $0x428] sm:$0xf0] }
 0x111   :  { %v9576_v51 = vld [vmem:[#allocation6 + $0xc64] sm:$0xf0]  ;;  %v9428_v13 = vld [vmem:[#allocation6 + $0x7cc] sm:$0xf]  ;;  %v6755_v26 = vor.u32 %v9308_v9, %v6752_v10 }
 0x112   :  { %3225 = vmatpush.bf16.msrb.mxu3 %v6915_v6  ;;  %3198 = vmatpush.bf16.msrb.mxu1 %v6371_v16  ;;  %v7807_v61 = vor.u32 %v9576_v51, %v7806_v50  ;;  %v7774_v62 = vld [vmem:[#allocation6 + $0xc08] sm:$0xf]  ;;  %v9244_v6 = vld [vmem:[#allocation6 + $0x20c] sm:$0xf]  ;;  %v10302_v16 = vadd.f32 %v2952_v12, %v2939_v46 }
 0x113   :  { %v9568_v1 = vld [vmem:[#allocation6 + $0xc24] sm:$0xf0]  ;;  %v9492_v15 = vld [vmem:[#allocation6 + $0x9cc] sm:$0xf]  ;;  %v6499_v22 = vor.u32 %v9244_v6, %v6496_v8 }
 0x114   :  { %3184 = vmatpush.bf16.msrb.mxu0 %v7903_v14  ;;  %3212 = vmatpush.bf16.msrb.mxu2 %v6627_v17  ;;  %v7232_v14 = vld [vmem:[#allocation6 + $0x7e8] sm:$0xf0]  ;;  %v7775_v17 = vor.u32 %v9568_v1, %v7774_v62 }
 0x115   :  { %v7488_v18 = vld [vmem:[#allocation6 + $0x9e8] sm:$0xf0]  ;;  %v7235_v27 = vor.u32 %v9428_v13, %v7232_v14 }
 0x116   :  { %3226 = vmatpush.bf16.msrb.mxu3 %v6883_v21  ;;  %3199 = vmatpush.bf16.msrb.mxu1 %v6339_v31  ;;  %v9556_v19 = vld [vmem:[#allocation6 + $0xbcc] sm:$0xf]  ;;  %v6243_v21 = vor.u32 %v9180_v4, %v6240_v5  ;;  %v7491_v28 = vor.u32 %v9492_v15, %v7488_v18  ;;  %v2980_v15 = vpop.f32.mrf.mxu1 }
 0x117   :  { %v7744_v20 = vld [vmem:[#allocation6 + $0xbe8] sm:$0xf0] }
 0x118   :  { %3185 = vmatpush.bf16.msrb.mxu0 %v7871_v29  ;;  %3213 = vmatpush.bf16.msrb.mxu2 %v6595_v32  ;;  %v9620_v24 = vld [vmem:[#allocation6 + $0xdcc] sm:$0xf]  ;;  %v7747_v29 = vor.u32 %v9556_v19, %v7744_v20 }
 0x119   :  { %v8000_v25 = vld [vmem:[#allocation6 + $0xde8] sm:$0xf0] }
 0x11a   :  { %3227 = vmatpush.bf16.msrb.mxu3 %v6851_v36  ;;  %3200 = vmatpush.bf16.msrb.mxu1 %v6307_v48  ;;  %v9420_v31 = vld [vmem:[#allocation6 + $0x78c] sm:$0xf]  ;;  %v8003_v34 = vor.u32 %v9620_v24, %v8000_v25 }
 0x11b   :  { %v7200_v32 = vld [vmem:[#allocation6 + $0x7a8] sm:$0xf0] }
 0x11c   :  { %3186 = vmatpush.bf16.msrb.mxu0 %v7839_v47  ;;  %3214 = vmatpush.bf16.msrb.mxu2 %v6563_v49  ;;  %v9484_v33 = vld [vmem:[#allocation6 + $0x98c] sm:$0xf]  ;;  %v7203_v44 = vor.u32 %v9420_v31, %v7200_v32 }
 0x11d   :  { %v7456_v35 = vld [vmem:[#allocation6 + $0x9a8] sm:$0xf0] }
 0x11e   :  { %3228 = vmatpush.bf16.msrb.mxu3 %v6819_v53  ;;  %3201 = vmatpush.bf16.msrb.mxu1 %v6275_v2  ;;  %v9548_v36 = vld [vmem:[#allocation6 + $0xb8c] sm:$0xf]  ;;  %v7459_v45 = vor.u32 %v9484_v33, %v7456_v35  ;;  %v2994_v35 = vpop.f32.mrf.mxu2 }
 0x11f   :  { %v7712_v38 = vld [vmem:[#allocation6 + $0xba8] sm:$0xf0] }
 0x120   :  { %3187 = vmatpush.bf16.msrb.mxu0 %v7807_v61  ;;  %3215 = vmatpush.bf16.msrb.mxu2 %v6531_v3  ;;  %v9612_v39 = vld [vmem:[#allocation6 + $0xd8c] sm:$0xf]  ;;  %v7715_v46 = vor.u32 %v9548_v36, %v7712_v38 }
 0x121   :  { %v7968_v40 = vld [vmem:[#allocation6 + $0xda8] sm:$0xf0] }
 0x122   :  { %3229 = vmatpush.bf16.msrb.mxu3 %v6787_v7  ;;  %3202 = vmatpush.bf16.msrb.mxu1 %v6243_v21  ;;  %v9412_v47 = vld [vmem:[#allocation6 + $0x74c] sm:$0xf]  ;;  %v7971_v50 = vor.u32 %v9612_v39, %v7968_v40  ;;  %v2966_v7 = vpop.f32.mrf.mxu0 }
 0x123   :  { %v7168_v48 = vld [vmem:[#allocation6 + $0x768] sm:$0xf0]  ;;  %v2967_v10 = vadd.f32 %v2966_v7, %v10302_v16 }
 0x124   :  { %3188 = vmatpush.bf16.msrb.mxu0 %v7775_v17  ;;  %3216 = vmatpush.bf16.msrb.mxu2 %v6499_v22  ;;  %v9476_v49 = vld [vmem:[#allocation6 + $0x94c] sm:$0xf]  ;;  %v7171_v58 = vor.u32 %v9412_v47, %v7168_v48 }
 0x125   :  { %v7424_v51 = vld [vmem:[#allocation6 + $0x968] sm:$0xf0]  ;;  %3203 = vmatmul.bf16.vlgmr.msrb.gmra.mxu1 %v10263_v57  ;;  %v2981_v21 = vadd.f32 %v2980_v15, %v2967_v10  ;;  %v6726_v15 = vld [vmem:[#allocation6 + $0x3d0] sm:$0xf] }
 0x126   :  { %3230 = vmatpush.bf16.msrb.mxu3 %v6755_v26  ;;  %3251 = vmatpush.bf16.msra.mxu1 %v7491_v28  ;;  %v9540_v52 = vld [vmem:[#allocation6 + $0xb4c] sm:$0xf]  ;;  %v7427_v60 = vor.u32 %v9476_v49, %v7424_v51 }
 0x127   :  { %3189 = vmatmul.bf16.vlgmr.msrb.gmra.mxu0 %v10277_v41  ;;  %v7680_v53 = vld [vmem:[#allocation6 + $0xb68] sm:$0xf0]  ;;  %3217 = vmatmul.bf16.vlgmr.msrb.gmra.mxu2 %v10269_v11  ;;  %v10315_v40 = vadd.f32 %v2994_v35, %v2981_v21  ;;  %v9297_v35 = vld [vmem:[#allocation6 + $0x3ac] sm:$0xf0] }
 0x128   :  { %3237 = vmatpush.bf16.msra.mxu0 %v7235_v27  ;;  %3265 = vmatpush.bf16.msra.mxu2 %v7747_v29  ;;  %v9604_v55 = vld [vmem:[#allocation6 + $0xd4c] sm:$0xf]  ;;  %v7683_v61 = vor.u32 %v9540_v52, %v7680_v53  ;;  %v10317_v52 = vpop.f32.mrf.mxu3 }
 0x129   :  { %v7936_v56 = vld [vmem:[#allocation6 + $0xd68] sm:$0xf0]  ;;  %3231 = vmatmul.bf16.vlgmr.msrb.gmra.mxu3 %v10265_v0 }
 0x12a   :  { %3279 = vmatpush.bf16.msra.mxu3 %v8003_v34  ;;  %3252 = vmatpush.bf16.msra.mxu1 %v7459_v45  ;;  %v9404_v62 = vld [vmem:[#allocation6 + $0x70c] sm:$0xf]  ;;  %v7939_v3 = vor.u32 %v9604_v55, %v7936_v56 }
 0x12b   :  { %v7136_v1 = vld [vmem:[#allocation6 + $0x728] sm:$0xf0] }
 0x12c   :  { %3238 = vmatpush.bf16.msra.mxu0 %v7203_v44  ;;  %3266 = vmatpush.bf16.msra.mxu2 %v7715_v46  ;;  %v9468_v2 = vld [vmem:[#allocation6 + $0x90c] sm:$0xf]  ;;  %v7139_v12 = vor.u32 %v9404_v62, %v7136_v1 }
 0x12d   :  { %v7392_v4 = vld [vmem:[#allocation6 + $0x928] sm:$0xf0] }
 0x12e   :  { %3280 = vmatpush.bf16.msra.mxu3 %v7971_v50  ;;  %v9532_v5 = vld [vmem:[#allocation6 + $0xb0c] sm:$0xf]  ;;  %3253 = vmatpush.bf16.msra.mxu1 %v7427_v60  ;;  %v7395_v13 = vor.u32 %v9468_v2, %v7392_v4 }
 0x12f   :  { %v7648_v6 = vld [vmem:[#allocation6 + $0xb28] sm:$0xf0] }
 0x130   :  { %v9596_v8 = vld [vmem:[#allocation6 + $0xd0c] sm:$0xf]  ;;  %3239 = vmatpush.bf16.msra.mxu0 %v7171_v58  ;;  %3267 = vmatpush.bf16.msra.mxu2 %v7683_v61  ;;  %v7651_v14 = vor.u32 %v9532_v5, %v7648_v6 }
 0x131   :  { %v7904_v9 = vld [vmem:[#allocation6 + $0xd28] sm:$0xf0] }
 0x132   :  { %v9396_v17 = vld [vmem:[#allocation6 + $0x6cc] sm:$0xf]  ;;  %3281 = vmatpush.bf16.msra.mxu3 %v7939_v3  ;;  %v7907_v20 = vor.u32 %v9596_v8, %v7904_v9  ;;  %3254 = vmatpush.bf16.msra.mxu1 %v7395_v13  ;;  %v6470_v13 = vld [vmem:[#allocation6 + $0x1d0] sm:$0xf] }
 0x133   :  { %v7104_v18 = vld [vmem:[#allocation6 + $0x6e8] sm:$0xf0] }
 0x134   :  { %v9460_v19 = vld [vmem:[#allocation6 + $0x8cc] sm:$0xf]  ;;  %3240 = vmatpush.bf16.msra.mxu0 %v7139_v12  ;;  %v7107_v28 = vor.u32 %v9396_v17, %v7104_v18  ;;  %3268 = vmatpush.bf16.msra.mxu2 %v7651_v14  ;;  %v9241_v14 = vld [vmem:[#allocation6 + $0x1ec] sm:$0xf0] }
 0x135   :  { %v7360_v22 = vld [vmem:[#allocation6 + $0x8e8] sm:$0xf0]  ;;  %v9305_v18 = vld [vmem:[#allocation6 + $0x3ec] sm:$0xf0] }
 0x136   :  { %v9524_v24 = vld [vmem:[#allocation6 + $0xacc] sm:$0xf]  ;;  %v7363_v16 = vor.u32 %v9460_v19, %v7360_v22  ;;  %3282 = vmatpush.bf16.msra.mxu3 %v7907_v20  ;;  %v6982_v19 = vld [vmem:[#allocation6 + $0x5d0] sm:$0xf] }
 0x137   :  { %v7616_v25 = vld [vmem:[#allocation6 + $0xae8] sm:$0xf0]  ;;  %v9369_v20 = vld [vmem:[#allocation6 + $0x5ec] sm:$0xf0] }
 0x138   :  { %v9588_v26 = vld [vmem:[#allocation6 + $0xccc] sm:$0xf]  ;;  %v7619_v29 = vor.u32 %v9524_v24, %v7616_v25  ;;  %3241 = vmatpush.bf16.msra.mxu0 %v7107_v28  ;;  %3255 = vmatpush.bf16.msra.mxu1 %v7363_v16  ;;  %v7238_v24 = vld [vmem:[#allocation6 + $0x7d0] sm:$0xf]  ;;  %v3008_v28 = vpop.f32.mrf.mxu3  ;;  %v6727_v16 = vor.u32 %v9305_v18, %v6726_v15 }
 0x139   :  { %v7872_v27 = vld [vmem:[#allocation6 + $0xce8] sm:$0xf0]  ;;  %v9433_v25 = vld [vmem:[#allocation6 + $0x7ec] sm:$0xf0] }
 0x13a   :  { %v9388_v31 = vld [vmem:[#allocation6 + $0x68c] sm:$0xf]  ;;  %v7875_v34 = vor.u32 %v9588_v26, %v7872_v27  ;;  %3269 = vmatpush.bf16.msra.mxu2 %v7619_v29  ;;  %v6471_v27 = vor.u32 %v9241_v14, %v6470_v13  ;;  %v6983_v29 = vor.u32 %v9369_v20, %v6982_v19  ;;  %v9281_v13 = vld [vmem:[#allocation6 + $0x32c] sm:$0xf0] }
 0x13b   :  { %v7072_v32 = vld [vmem:[#allocation6 + $0x6a8] sm:$0xf0]  ;;  %v6886_v14 = vld [vmem:[#allocation6 + $0x510] sm:$0xf] }
 0x13c   :  { %v9452_v33 = vld [vmem:[#allocation6 + $0x88c] sm:$0xf]  ;;  %v7075_v46 = vor.u32 %v9388_v31, %v7072_v32  ;;  %3283 = vmatpush.bf16.msra.mxu3 %v7875_v34  ;;  %v6438_v31 = vld [vmem:[#allocation6 + $0x190] sm:$0xf]  ;;  %v7239_v34 = vor.u32 %v9433_v25, %v7238_v24 }
 0x13d   :  { %v7328_v36 = vld [vmem:[#allocation6 + $0x8a8] sm:$0xf0]  ;;  %v9233_v32 = vld [vmem:[#allocation6 + $0x1ac] sm:$0xf0] }
 0x13e   :  { %v9516_v38 = vld [vmem:[#allocation6 + $0xa8c] sm:$0xf]  ;;  %v7331_v47 = vor.u32 %v9452_v33, %v7328_v36  ;;  %3242 = vmatpush.bf16.msra.mxu0 %v7075_v46  ;;  %v6694_v33 = vld [vmem:[#allocation6 + $0x390] sm:$0xf]  ;;  %v10761_v46 = vperm.slane %v10293_v54, 1 }
 0x13f   :  { %v7584_v39 = vld [vmem:[#allocation6 + $0xaa8] sm:$0xf0]  ;;  %v6950_v36 = vld [vmem:[#allocation6 + $0x590] sm:$0xf] }
 0x140   :  { %v9580_v44 = vld [vmem:[#allocation6 + $0xc8c] sm:$0xf]  ;;  %v7587_v48 = vor.u32 %v9516_v38, %v7584_v39  ;;  %3256 = vmatpush.bf16.msra.mxu1 %v7331_v47  ;;  %v9361_v38 = vld [vmem:[#allocation6 + $0x5ac] sm:$0xf0]  ;;  %v10319_v39 = vpop.f32.mrf.mxu0  ;;  %v6439_v47 = vor.u32 %v9233_v32, %v6438_v31 }
 0x141   :  { %v7840_v45 = vld [vmem:[#allocation6 + $0xca8] sm:$0xf0]  ;;  %v9345_v15 = vld [vmem:[#allocation6 + $0x52c] sm:$0xf0] }
 0x142   :  { %v9380_v49 = vld [vmem:[#allocation6 + $0x64c] sm:$0xf]  ;;  %v7843_v53 = vor.u32 %v9580_v44, %v7840_v45  ;;  %3270 = vmatpush.bf16.msra.mxu2 %v7587_v48  ;;  %v7206_v44 = vld [vmem:[#allocation6 + $0x790] sm:$0xf]  ;;  %v10322_v48 = vpop.f32.mrf.mxu1  ;;  %v6887_v24 = vor.u32 %v9345_v15, %v6886_v14 }
 0x143   :  { %v7040_v50 = vld [vmem:[#allocation6 + $0x668] sm:$0xf0]  ;;  %v9425_v45 = vld [vmem:[#allocation6 + $0x7ac] sm:$0xf0] }
 0x144   :  { %v9444_v51 = vld [vmem:[#allocation6 + $0x84c] sm:$0xf]  ;;  %v7043_v62 = vor.u32 %v9380_v49, %v7040_v50  ;;  %3284 = vmatpush.bf16.msra.mxu3 %v7843_v53  ;;  %v6695_v49 = vor.u32 %v9297_v35, %v6694_v33  ;;  %v6951_v50 = vor.u32 %v9361_v38, %v6950_v36  ;;  %v9225_v53 = vld [vmem:[#allocation6 + $0x16c] sm:$0xf0] }
 0x145   :  { %v7296_v55 = vld [vmem:[#allocation6 + $0x868] sm:$0xf0]  ;;  %v7142_v18 = vld [vmem:[#allocation6 + $0x710] sm:$0xf] }
 0x146   :  { %v9508_v56 = vld [vmem:[#allocation6 + $0xa4c] sm:$0xf]  ;;  %v7299_v3 = vor.u32 %v9444_v51, %v7296_v55  ;;  %3243 = vmatpush.bf16.msra.mxu0 %v7043_v62  ;;  %v6406_v51 = vld [vmem:[#allocation6 + $0x150] sm:$0xf] }
 0x147   :  { %v7552_v58 = vld [vmem:[#allocation6 + $0xa68] sm:$0xf0]  ;;  %v6662_v55 = vld [vmem:[#allocation6 + $0x350] sm:$0xf] }
 0x148   :  { %v9572_v60 = vld [vmem:[#allocation6 + $0xc4c] sm:$0xf]  ;;  %v7555_v4 = vor.u32 %v9508_v56, %v7552_v58  ;;  %3257 = vmatpush.bf16.msra.mxu1 %v7299_v3  ;;  %v7207_v56 = vor.u32 %v9425_v45, %v7206_v44  ;;  %v9289_v58 = vld [vmem:[#allocation6 + $0x36c] sm:$0xf0]  ;;  %v6407_v3 = vor.u32 %v9225_v53, %v6406_v51 }
 0x149   :  { %v7808_v61 = vld [vmem:[#allocation6 + $0xc68] sm:$0xf0]  ;;  %v7174_v62 = vld [vmem:[#allocation6 + $0x750] sm:$0xf] }
 0x14a   :  { %v9372_v1 = vld [vmem:[#allocation6 + $0x60c] sm:$0xf]  ;;  %v7811_v8 = vor.u32 %v9572_v60, %v7808_v61  ;;  %3271 = vmatpush.bf16.msra.mxu2 %v7555_v4  ;;  %v6918_v60 = vld [vmem:[#allocation6 + $0x550] sm:$0xf]  ;;  %v6663_v4 = vor.u32 %v9289_v58, %v6662_v55  ;;  %v3036_v25 = vpop.f32.mrf.mxu1 }
 0x14b   :  { %v7008_v2 = vld [vmem:[#allocation6 + $0x628] sm:$0xf0]  ;;  %v9353_v61 = vld [vmem:[#allocation6 + $0x56c] sm:$0xf0] }
 0x14c   :  { %v9436_v5 = vld [vmem:[#allocation6 + $0x80c] sm:$0xf]  ;;  %v7011_v17 = vor.u32 %v9372_v1, %v7008_v2  ;;  %3285 = vmatpush.bf16.msra.mxu3 %v7811_v8  ;;  %v9417_v1 = vld [vmem:[#allocation6 + $0x76c] sm:$0xf0]  ;;  %v3009_v2 = vadd.f32 %v3008_v28, %v10761_v46 }
 0x14d   :  { %v7264_v6 = vld [vmem:[#allocation6 + $0x828] sm:$0xf0]  ;;  %v6630_v8 = vld [vmem:[#allocation6 + $0x310] sm:$0xf] }
 0x14e   :  { %v9500_v7 = vld [vmem:[#allocation6 + $0xa0c] sm:$0xf]  ;;  %v7267_v21 = vor.u32 %v9436_v5, %v7264_v6  ;;  %3244 = vmatpush.bf16.msra.mxu0 %v7011_v17  ;;  %v6919_v5 = vor.u32 %v9353_v61, %v6918_v60  ;;  %v6374_v6 = vld [vmem:[#allocation6 + $0x110] sm:$0xf]  ;;  %v3022_v17 = vpop.f32.mrf.mxu0 }
 0x14f   :  { %v7520_v9 = vld [vmem:[#allocation6 + $0xa28] sm:$0xf0]  ;;  %v9409_v19 = vld [vmem:[#allocation6 + $0x72c] sm:$0xf0]  ;;  %v3023_v20 = vadd.f32 %v3022_v17, %v3009_v2 }
 0x150   :  { %v9564_v10 = vld [vmem:[#allocation6 + $0xc0c] sm:$0xf]  ;;  %v7523_v22 = vor.u32 %v9500_v7, %v7520_v9  ;;  %3258 = vmatpush.bf16.msra.mxu1 %v7267_v21  ;;  %v9217_v7 = vld [vmem:[#allocation6 + $0x12c] sm:$0xf0]  ;;  %v10330_v9 = vpop.f32.mrf.mxu2 }
 0x151   :  { %v7776_v12 = vld [vmem:[#allocation6 + $0xc28] sm:$0xf0]  ;;  %3245 = vmatmul.bf16.vlgmr.msra.gmra.mxu0 %v10272_v23  ;;  %10768 = vst [vmem:[#allocation26_spill] sm:$0xff] %v10330_v9  ;;  %v6375_v21 = vor.u32 %v9217_v7, %v6374_v6  ;;  %v6598_v28 = vld [vmem:[#allocation6 + $0x2d0] sm:$0xf] }
 0x152   :  { %v7779_v26 = vor.u32 %v9564_v10, %v7776_v12  ;;  %3272 = vmatpush.bf16.msra.mxu2 %v7523_v22  ;;  %3293 = vmatpush.bf16.msrb.mxu0 %v6471_v27  ;;  %v7175_v10 = vor.u32 %v9417_v1, %v7174_v62  ;;  %v10332_v12 = vpop.f32.mrf.mxu3  ;;  %v6631_v22 = vor.u32 %v9281_v13, %v6630_v8  ;;  %v9209_v27 = vld [vmem:[#allocation6 + $0xec] sm:$0xf0]  ;;  %v9422_v9 = vld [vmem:[#allocation6 + $0x79c] sm:$0xf] }
 0x153   :  { %3259 = vmatmul.bf16.vlgmr.msra.gmra.mxu1 %v10275_v37  ;;  %v9273_v31 = vld [vmem:[#allocation6 + $0x2ec] sm:$0xf0] }
 0x154   :  { %3286 = vmatpush.bf16.msra.mxu3 %v7779_v26  ;;  %3307 = vmatpush.bf16.msrb.mxu1 %v6727_v16  ;;  %v6342_v26 = vld [vmem:[#allocation6 + $0xd0] sm:$0xf]  ;;  %v7143_v16 = vor.u32 %v9409_v19, %v7142_v18  ;;  %v6599_v38 = vor.u32 %v9273_v31, %v6598_v28 }
 0x155   :  { %3273 = vmatmul.bf16.vlgmr.msra.gmra.mxu2 %v10279_v42  ;;  %v6854_v32 = vld [vmem:[#allocation6 + $0x4d0] sm:$0xf]  ;;  %v6343_v36 = vor.u32 %v9209_v27, %v6342_v26 }
 0x156   :  { %3321 = vmatpush.bf16.msrb.mxu2 %v6983_v29  ;;  %3294 = vmatpush.bf16.msrb.mxu0 %v6439_v47  ;;  %v3037_v29 = vadd.f32 %v3036_v25, %v3023_v20  ;;  %v9337_v33 = vld [vmem:[#allocation6 + $0x4ec] sm:$0xf0] }
 0x157   :  { %3287 = vmatmul.bf16.vlgmr.msra.gmra.mxu3 %v10277_v41  ;;  %v9401_v35 = vld [vmem:[#allocation6 + $0x6ec] sm:$0xf0]  ;;  %v6855_v44 = vor.u32 %v9337_v33, %v6854_v32 }
 0x158   :  { %3335 = vmatpush.bf16.msrb.mxu3 %v7239_v34  ;;  %3308 = vmatpush.bf16.msrb.mxu1 %v6695_v49  ;;  %v7110_v34 = vld [vmem:[#allocation6 + $0x6d0] sm:$0xf]  ;;  %v3050_v51 = vpop.f32.mrf.mxu2 }
 0x159   :  { %v6310_v45 = vld [vmem:[#allocation6 + $0x90] sm:$0xf]  ;;  %v3051_v58 = vadd.f32 %v3050_v51, %v3037_v29 }
 0x15a   :  { %3322 = vmatpush.bf16.msrb.mxu2 %v6951_v50  ;;  %3295 = vmatpush.bf16.msrb.mxu0 %v6407_v3  ;;  %v9201_v47 = vld [vmem:[#allocation6 + $0xac] sm:$0xf0]  ;;  %v7111_v50 = vor.u32 %v9401_v35, %v7110_v34  ;;  %v3064_v62 = vpop.f32.mrf.mxu3 }
 0x15b   :  { %v6566_v49 = vld [vmem:[#allocation6 + $0x290] sm:$0xf]  ;;  %v6311_v1 = vor.u32 %v9201_v47, %v6310_v45  ;;  %v10334_v2 = vadd.f32 %v3064_v62, %v3051_v58  ;;  %v9237_v47 = vld [vmem:[#allocation6 + $0x1d4] sm:$0xf] }
 0x15c   :  { %3336 = vmatpush.bf16.msrb.mxu3 %v7207_v56  ;;  %3309 = vmatpush.bf16.msrb.mxu1 %v6663_v4  ;;  %v9265_v53 = vld [vmem:[#allocation6 + $0x2ac] sm:$0xf0] }
 0x15d   :  { %v6822_v55 = vld [vmem:[#allocation6 + $0x490] sm:$0xf]  ;;  %v6567_v3 = vor.u32 %v9265_v53, %v6566_v49  ;;  %v6472_v49 = vld [vmem:[#allocation6 + $0x1f0] sm:$0xf0] }
 0x15e   :  { %3323 = vmatpush.bf16.msrb.mxu2 %v6919_v5  ;;  %3296 = vmatpush.bf16.msrb.mxu0 %v6375_v21  ;;  %v9329_v56 = vld [vmem:[#allocation6 + $0x4ac] sm:$0xf0] }
 0x15f   :  { %v7078_v60 = vld [vmem:[#allocation6 + $0x690] sm:$0xf]  ;;  %v6823_v4 = vor.u32 %v9329_v56, %v6822_v55 }
 0x160   :  { %3337 = vmatpush.bf16.msrb.mxu3 %v7175_v10  ;;  %3310 = vmatpush.bf16.msrb.mxu1 %v6631_v22  ;;  %v9393_v61 = vld [vmem:[#allocation6 + $0x6ac] sm:$0xf0] }
 0x161   :  { %v6278_v5 = vld [vmem:[#allocation6 + $0x50] sm:$0xf]  ;;  %v7079_v8 = vor.u32 %v9393_v61, %v7078_v60  ;;  %v6475_v61 = vor.u32 %v9237_v47, %v6472_v49 }
 0x162   :  { %3324 = vmatpush.bf16.msrb.mxu2 %v6887_v24  ;;  %3297 = vmatpush.bf16.msrb.mxu0 %v6343_v36  ;;  %v9193_v6 = vld [vmem:[#allocation6 + $0x6c] sm:$0xf0] }
 0x163   :  { %v6534_v7 = vld [vmem:[#allocation6 + $0x250] sm:$0xf]  ;;  %v6279_v18 = vor.u32 %v9193_v6, %v6278_v5  ;;  %v9229_v5 = vld [vmem:[#allocation6 + $0x194] sm:$0xf] }
 0x164   :  { %3338 = vmatpush.bf16.msrb.mxu3 %v7143_v16  ;;  %3311 = vmatpush.bf16.msrb.mxu1 %v6599_v38  ;;  %v9257_v10 = vld [vmem:[#allocation6 + $0x26c] sm:$0xf0]  ;;  %v6440_v6 = vld [vmem:[#allocation6 + $0x1b0] sm:$0xf0] }
 0x165   :  { %v6790_v13 = vld [vmem:[#allocation6 + $0x450] sm:$0xf]  ;;  %v6535_v21 = vor.u32 %v9257_v10, %v6534_v7  ;;  %v10338_v7 = vpop.f32.mrf.mxu1 }
 0x166   :  { %3325 = vmatpush.bf16.msrb.mxu2 %v6855_v44  ;;  %v9321_v14 = vld [vmem:[#allocation6 + $0x46c] sm:$0xf0]  ;;  %3298 = vmatpush.bf16.msrb.mxu0 %v6311_v1 }
 0x167   :  { %v7046_v15 = vld [vmem:[#allocation6 + $0x650] sm:$0xf]  ;;  %v6791_v22 = vor.u32 %v9321_v14, %v6790_v13 }
 0x168   :  { %3339 = vmatpush.bf16.msrb.mxu3 %v7111_v50  ;;  %v9385_v17 = vld [vmem:[#allocation6 + $0x66c] sm:$0xf0]  ;;  %3312 = vmatpush.bf16.msrb.mxu1 %v6567_v3 }
 0x169   :  { %v6246_v19 = vld [vmem:[#allocation6 + $0x10] sm:$0xf]  ;;  %v7047_v27 = vor.u32 %v9385_v17, %v7046_v15 }
 0x16a   :  { %v9185_v20 = vld [vmem:[#allocation6 + $0x2c] sm:$0xf0]  ;;  %3326 = vmatpush.bf16.msrb.mxu2 %v6823_v4  ;;  %3299 = vmatpush.bf16.msrb.mxu0 %v6279_v18  ;;  %v10336_v4 = vpop.f32.mrf.mxu0  ;;  %v6443_v18 = vor.u32 %v9229_v5, %v6440_v6  ;;  %v9205_v5 = vld [vmem:[#allocation6 + $0xd4] sm:$0xf] }
 0x16b   :  { %v6502_v24 = vld [vmem:[#allocation6 + $0x210] sm:$0xf]  ;;  %v6247_v34 = vor.u32 %v9185_v20, %v6246_v19  ;;  %v6344_v6 = vld [vmem:[#allocation6 + $0xf0] sm:$0xf0] }
 0x16c   :  { %v9249_v25 = vld [vmem:[#allocation6 + $0x22c] sm:$0xf0]  ;;  %3340 = vmatpush.bf16.msrb.mxu3 %v7079_v8  ;;  %3313 = vmatpush.bf16.msrb.mxu1 %v6535_v21 }
 0x16d   :  { %v6758_v26 = vld [vmem:[#allocation6 + $0x410] sm:$0xf]  ;;  %v6503_v44 = vor.u32 %v9249_v25, %v6502_v24  ;;  %v6408_v24 = vld [vmem:[#allocation6 + $0x170] sm:$0xf0] }
 0x16e   :  { %v9313_v28 = vld [vmem:[#allocation6 + $0x42c] sm:$0xf0]  ;;  %3327 = vmatpush.bf16.msrb.mxu2 %v6791_v22  ;;  %3300 = vmatpush.bf16.msrb.mxu0 %v6247_v34  ;;  %v9221_v22 = vld [vmem:[#allocation6 + $0x154] sm:$0xf] }
 0x16f   :  { %v7014_v16 = vld [vmem:[#allocation6 + $0x610] sm:$0xf]  ;;  %v6759_v45 = vor.u32 %v9313_v28, %v6758_v26 }
 0x170   :  { %v9377_v29 = vld [vmem:[#allocation6 + $0x62c] sm:$0xf0]  ;;  %3341 = vmatpush.bf16.msrb.mxu3 %v7047_v27  ;;  %3314 = vmatpush.bf16.msrb.mxu1 %v6503_v44  ;;  %v6376_v44 = vld [vmem:[#allocation6 + $0x130] sm:$0xf0] }
 0x171   :  { %v7494_v31 = vld [vmem:[#allocation6 + $0x9d0] sm:$0xf]  ;;  %v7015_v50 = vor.u32 %v9377_v29, %v7014_v16  ;;  %3301 = vmatmul.bf16.vlgmr.msrb.gmra.mxu0 %v10263_v57 }
 0x172   :  { %v9497_v32 = vld [vmem:[#allocation6 + $0x9ec] sm:$0xf0]  ;;  %3328 = vmatpush.bf16.msrb.mxu2 %v6759_v45  ;;  %v10346_v45 = vpop.f32.mrf.mxu3 }
 0x173   :  { %v7750_v33 = vld [vmem:[#allocation6 + $0xbd0] sm:$0xf]  ;;  %v7495_v51 = vor.u32 %v9497_v32, %v7494_v31  ;;  %3315 = vmatmul.bf16.vlgmr.msrb.gmra.mxu1 %v10269_v11  ;;  %v10344_v31 = vpop.f32.mrf.mxu2  ;;  %v6411_v32 = vor.u32 %v9221_v22, %v6408_v24 }
 0x174   :  { %v9561_v35 = vld [vmem:[#allocation6 + $0xbec] sm:$0xf0]  ;;  %3342 = vmatpush.bf16.msrb.mxu3 %v7015_v50  ;;  %v3092_v50 = vpop.f32.mrf.mxu1 }
 0x175   :  { %v8006_v36 = vld [vmem:[#allocation6 + $0xdd0] sm:$0xf]  ;;  %v7751_v53 = vor.u32 %v9561_v35, %v7750_v33  ;;  %3349 = vmatpush.bf16.msra.mxu0 %v7495_v51  ;;  %3329 = vmatmul.bf16.vlgmr.msrb.gmra.mxu2 %v10265_v0 }
 0x176   :  { %v9625_v38 = vld [vmem:[#allocation6 + $0xdec] sm:$0xf0] }
 0x177   :  { %v8007_v55 = vor.u32 %v9625_v38, %v8006_v36  ;;  %v7462_v56 = vld [vmem:[#allocation6 + $0x990] sm:$0xf]  ;;  %3363 = vmatpush.bf16.msra.mxu1 %v7751_v53  ;;  %3343 = vmatmul.bf16.vlgmr.msrb.gmra.mxu3 %v10272_v23  ;;  %v3078_v36 = vpop.f32.mrf.mxu0  ;;  %v9213_v38 = vld [vmem:[#allocation6 + $0x114] sm:$0xf] }
 0x178   :  { %v9489_v58 = vld [vmem:[#allocation6 + $0x9ac] sm:$0xf0]  ;;  %3391 = vmatpush.bf16.msra.mxu3 %v6475_v61  ;;  %v3079_v47 = vadd.f32 %v3078_v36, %v10334_v2 }
 0x179   :  { %v7718_v60 = vld [vmem:[#allocation6 + $0xb90] sm:$0xf]  ;;  %v7463_v8 = vor.u32 %v9489_v58, %v7462_v56  ;;  %3377 = vmatpush.bf16.msra.mxu2 %v8007_v55 }
 0x17a   :  { %v9553_v62 = vld [vmem:[#allocation6 + $0xbac] sm:$0xf0]  ;;  %v3093_v61 = vadd.f32 %v3092_v50, %v3079_v47  ;;  %v6280_v50 = vld [vmem:[#allocation6 + $0x70] sm:$0xf0] }
 0x17b   :  { %v7974_v1 = vld [vmem:[#allocation6 + $0xd90] sm:$0xf]  ;;  %v7719_v10 = vor.u32 %v9553_v62, %v7718_v60  ;;  %3350 = vmatpush.bf16.msra.mxu0 %v7463_v8  ;;  %v6379_v60 = vor.u32 %v9213_v38, %v6376_v44  ;;  %v10760_v8 = vperm.slane %v10293_v54, 2  ;;  %v3106_v24 = vpop.f32.mrf.mxu2 }
 0x17c   :  { %v9617_v3 = vld [vmem:[#allocation6 + $0xdac] sm:$0xf0]  ;;  %3392 = vmatpush.bf16.msra.mxu3 %v6443_v18  ;;  %v10351_v2 = vpack.c.bf16 %v3093_v61, %v10315_v40 }
 0x17d   :  { %v7975_v13 = vor.u32 %v9617_v3, %v7974_v1  ;;  %v7430_v14 = vld [vmem:[#allocation6 + $0x950] sm:$0xf]  ;;  %3364 = vmatpush.bf16.msra.mxu1 %v7719_v10  ;;  %v3107_v40 = vadd.f32 %v3106_v24, %v10760_v8  ;;  %v7496_v24 = vld [vmem:[#allocation6 + $0x9f0] sm:$0xf0]  ;;  %v6800_v8 = vld [vmem:[#allocation6 + $0x478] sm:$0xf0] }
 0x17e   :  { %v9481_v15 = vld [vmem:[#allocation6 + $0x96c] sm:$0xf0]  ;;  %10769 = vst [vmem:[#allocation27_spill] sm:$0xff] %v10351_v2 }
 0x17f   :  { %v7686_v17 = vld [vmem:[#allocation6 + $0xb50] sm:$0xf]  ;;  %v7431_v25 = vor.u32 %v9481_v15, %v7430_v14  ;;  %3378 = vmatpush.bf16.msra.mxu2 %v7975_v13 }
 0x180   :  { %v9545_v19 = vld [vmem:[#allocation6 + $0xb6c] sm:$0xf0]  ;;  %3393 = vmatpush.bf16.msra.mxu3 %v6411_v32 }
 0x181   :  { %v7942_v20 = vld [vmem:[#allocation6 + $0xd50] sm:$0xf]  ;;  %v7687_v26 = vor.u32 %v9545_v19, %v7686_v17  ;;  %3351 = vmatpush.bf16.msra.mxu0 %v7431_v25  ;;  %v6347_v19 = vor.u32 %v9205_v5, %v6344_v6  ;;  %v9197_v25 = vld [vmem:[#allocation6 + $0x94] sm:$0xf] }
 0x182   :  { %v9609_v21 = vld [vmem:[#allocation6 + $0xd6c] sm:$0xf0]  ;;  %v9181_v5 = vld [vmem:[#allocation6 + $0x14] sm:$0xf] }
 0x183   :  { %v7943_v27 = vor.u32 %v9609_v21, %v7942_v20  ;;  %v7398_v28 = vld [vmem:[#allocation6 + $0x910] sm:$0xf]  ;;  %3365 = vmatpush.bf16.msra.mxu1 %v7687_v26  ;;  %v6312_v26 = vld [vmem:[#allocation6 + $0xb0] sm:$0xf0] }
 0x184   :  { %v9473_v16 = vld [vmem:[#allocation6 + $0x92c] sm:$0xf0]  ;;  %3394 = vmatpush.bf16.msra.mxu3 %v6379_v60  ;;  %v6315_v36 = vor.u32 %v9197_v25, %v6312_v26  ;;  %v6248_v6 = vld [vmem:[#allocation6 + $0x30] sm:$0xf0] }
 0x185   :  { %v7654_v29 = vld [vmem:[#allocation6 + $0xb10] sm:$0xf]  ;;  %v7399_v49 = vor.u32 %v9473_v16, %v7398_v28  ;;  %3379 = vmatpush.bf16.msra.mxu2 %v7943_v27  ;;  %v3120_v28 = vpop.f32.mrf.mxu3  ;;  %v6251_v25 = vor.u32 %v9181_v5, %v6248_v6  ;;  %v7432_v5 = vld [vmem:[#allocation6 + $0x970] sm:$0xf0] }
 0x186   :  { %v9537_v33 = vld [vmem:[#allocation6 + $0xb2c] sm:$0xf0] }
 0x187   :  { %v7910_v34 = vld [vmem:[#allocation6 + $0xd10] sm:$0xf]  ;;  %v7655_v51 = vor.u32 %v9537_v33, %v7654_v29  ;;  %3352 = vmatpush.bf16.msra.mxu0 %v7399_v49  ;;  %v9189_v49 = vld [vmem:[#allocation6 + $0x54] sm:$0xf] }
 0x188   :  { %v9601_v35 = vld [vmem:[#allocation6 + $0xd2c] sm:$0xf0]  ;;  %3395 = vmatpush.bf16.msra.mxu3 %v6347_v19  ;;  %v7240_v19 = vld [vmem:[#allocation6 + $0x7f0] sm:$0xf0] }
 0x189   :  { %v7911_v53 = vor.u32 %v9601_v35, %v7910_v34  ;;  %v7366_v55 = vld [vmem:[#allocation6 + $0x8d0] sm:$0xf]  ;;  %3366 = vmatpush.bf16.msra.mxu1 %v7655_v51  ;;  %v10355_v35 = vadd.f32 %v3120_v28, %v3107_v40  ;;  %v9293_v28 = vld [vmem:[#allocation6 + $0x394] sm:$0xf] }
 0x18a   :  { %v9465_v56 = vld [vmem:[#allocation6 + $0x8ec] sm:$0xf0] }
 0x18b   :  { %v7622_v58 = vld [vmem:[#allocation6 + $0xad0] sm:$0xf]  ;;  %v7367_v10 = vor.u32 %v9465_v56, %v7366_v55  ;;  %3380 = vmatpush.bf16.msra.mxu2 %v7911_v53 }
 0x18c   :  { %v9529_v62 = vld [vmem:[#allocation6 + $0xaec] sm:$0xf0]  ;;  %3396 = vmatpush.bf16.msra.mxu3 %v6315_v36  ;;  %v7208_v36 = vld [vmem:[#allocation6 + $0x7b0] sm:$0xf0] }
 0x18d   :  { %v7878_v1 = vld [vmem:[#allocation6 + $0xcd0] sm:$0xf]  ;;  %v7623_v13 = vor.u32 %v9529_v62, %v7622_v58  ;;  %3353 = vmatpush.bf16.msra.mxu0 %v7367_v10  ;;  %v9301_v10 = vld [vmem:[#allocation6 + $0x3d4] sm:$0xf] }
 0x18e   :  { %v9593_v3 = vld [vmem:[#allocation6 + $0xcec] sm:$0xf0] }
 0x18f   :  { %v7879_v14 = vor.u32 %v9593_v3, %v7878_v1  ;;  %v7334_v15 = vld [vmem:[#allocation6 + $0x890] sm:$0xf]  ;;  %3367 = vmatpush.bf16.msra.mxu1 %v7623_v13  ;;  %v6283_v1 = vor.u32 %v9189_v49, %v6280_v50  ;;  %v6728_v13 = vld [vmem:[#allocation6 + $0x3f0] sm:$0xf0]  ;;  %v10359_v50 = vpop.f32.mrf.mxu1 }
 0x190   :  { %v9457_v17 = vld [vmem:[#allocation6 + $0x8ac] sm:$0xf0]  ;;  %v6731_v26 = vor.u32 %v9301_v10, %v6728_v13 }
 0x191   :  { %v7590_v18 = vld [vmem:[#allocation6 + $0xa90] sm:$0xf]  ;;  %v7335_v27 = vor.u32 %v9457_v17, %v7334_v15  ;;  %3381 = vmatpush.bf16.msra.mxu2 %v7879_v14  ;;  %v9365_v14 = vld [vmem:[#allocation6 + $0x5d4] sm:$0xf]  ;;  %3397 = vmatpush.bf16.msra.mxu3 %v6283_v1 }
 0x192   :  { %v9521_v20 = vld [vmem:[#allocation6 + $0xaac] sm:$0xf0]  ;;  %v6984_v17 = vld [vmem:[#allocation6 + $0x5f0] sm:$0xf0] }
 0x193   :  { %v7846_v21 = vld [vmem:[#allocation6 + $0xc90] sm:$0xf]  ;;  %v7591_v16 = vor.u32 %v9521_v20, %v7590_v18  ;;  %3354 = vmatpush.bf16.msra.mxu0 %v7335_v27  ;;  %v9429_v18 = vld [vmem:[#allocation6 + $0x7d4] sm:$0xf]  ;;  %v6987_v40 = vor.u32 %v9365_v14, %v6984_v17 }
 0x194   :  { %v9585_v22 = vld [vmem:[#allocation6 + $0xcac] sm:$0xf0]  ;;  %v7243_v27 = vor.u32 %v9429_v18, %v7240_v19  ;;  %v7176_v1 = vld [vmem:[#allocation6 + $0x770] sm:$0xf0] }
 0x195   :  { %v7847_v29 = vor.u32 %v9585_v22, %v7846_v21  ;;  %v7302_v32 = vld [vmem:[#allocation6 + $0x850] sm:$0xf]  ;;  %3368 = vmatpush.bf16.msra.mxu1 %v7591_v16  ;;  %v9493_v22 = vld [vmem:[#allocation6 + $0x9d4] sm:$0xf]  ;;  %3398 = vmatpush.bf16.msra.mxu3 %v6251_v25 }
 0x196   :  { %v9449_v33 = vld [vmem:[#allocation6 + $0x86c] sm:$0xf0]  ;;  %v6696_v16 = vld [vmem:[#allocation6 + $0x3b0] sm:$0xf0] }
 0x197   :  { %v7558_v34 = vld [vmem:[#allocation6 + $0xa50] sm:$0xf]  ;;  %v7303_v51 = vor.u32 %v9449_v33, %v7302_v32  ;;  %3382 = vmatpush.bf16.msra.mxu2 %v7847_v29  ;;  %v9357_v29 = vld [vmem:[#allocation6 + $0x594] sm:$0xf]  ;;  %v7499_v32 = vor.u32 %v9493_v22, %v7496_v24  ;;  %v6699_v49 = vor.u32 %v9293_v28, %v6696_v16  ;;  %v3148_v16 = vpop.f32.mrf.mxu1 }
 0x198   :  { %v9513_v38 = vld [vmem:[#allocation6 + $0xa6c] sm:$0xf0]  ;;  %v6952_v33 = vld [vmem:[#allocation6 + $0x5b0] sm:$0xf0]  ;;  %3399 = vmatmul.bf16.vlgmr.msra.gmra.mxu3 %v10263_v57 }
 0x199   :  { %v7814_v44 = vld [vmem:[#allocation6 + $0xc50] sm:$0xf]  ;;  %v7559_v56 = vor.u32 %v9513_v38, %v7558_v34  ;;  %3355 = vmatpush.bf16.msra.mxu0 %v7303_v51  ;;  %v9421_v34 = vld [vmem:[#allocation6 + $0x794] sm:$0xf]  ;;  %v10357_v38 = vpop.f32.mrf.mxu0  ;;  %v6955_v51 = vor.u32 %v9357_v29, %v6952_v33  ;;  %3447 = vmatpush.bf16.msrb.mxu3 %v7499_v32 }
 0x19a   :  { %v9577_v47 = vld [vmem:[#allocation6 + $0xc6c] sm:$0xf0]  ;;  %v9277_v14 = vld [vmem:[#allocation6 + $0x314] sm:$0xf] }
 0x19b   :  { %v7270_v53 = vld [vmem:[#allocation6 + $0x810] sm:$0xf]  ;;  %v7815_v58 = vor.u32 %v9577_v47, %v7814_v44  ;;  %3369 = vmatpush.bf16.msra.mxu1 %v7559_v56  ;;  %v9485_v44 = vld [vmem:[#allocation6 + $0x994] sm:$0xf] }
 0x19c   :  { %v9441_v55 = vld [vmem:[#allocation6 + $0x82c] sm:$0xf0]  ;;  %v7464_v47 = vld [vmem:[#allocation6 + $0x9b0] sm:$0xf0] }
 0x19d   :  { %v7526_v60 = vld [vmem:[#allocation6 + $0xa10] sm:$0xf]  ;;  %v7271_v15 = vor.u32 %v9441_v55, %v7270_v53  ;;  %3383 = vmatpush.bf16.msra.mxu2 %v7815_v58  ;;  %v7211_v53 = vor.u32 %v9421_v34, %v7208_v36  ;;  %v9285_v55 = vld [vmem:[#allocation6 + $0x354] sm:$0xf] }
 0x19e   :  { %v9505_v61 = vld [vmem:[#allocation6 + $0xa2c] sm:$0xf0]  ;;  %v6664_v56 = vld [vmem:[#allocation6 + $0x370] sm:$0xf0] }
 0x19f   :  { %v7782_v62 = vld [vmem:[#allocation6 + $0xc10] sm:$0xf]  ;;  %v7527_v20 = vor.u32 %v9505_v61, %v7526_v60  ;;  %3356 = vmatpush.bf16.msra.mxu0 %v7271_v15  ;;  %v9349_v58 = vld [vmem:[#allocation6 + $0x554] sm:$0xf]  ;;  %v7467_v60 = vor.u32 %v9485_v44, %v7464_v47  ;;  %v6667_v6 = vor.u32 %v9285_v55, %v6664_v56 }
 0x1a0   :  { %v9569_v3 = vld [vmem:[#allocation6 + $0xc2c] sm:$0xf0]  ;;  %v6920_v61 = vld [vmem:[#allocation6 + $0x570] sm:$0xf0] }
 0x1a1   :  { %v7783_v21 = vor.u32 %v9569_v3, %v7782_v62  ;;  %3370 = vmatpush.bf16.msra.mxu1 %v7527_v20  ;;  %v9413_v62 = vld [vmem:[#allocation6 + $0x754] sm:$0xf]  ;;  %v6923_v10 = vor.u32 %v9349_v58, %v6920_v61  ;;  %3448 = vmatpush.bf16.msrb.mxu3 %v7467_v60  ;;  %v3134_v22 = vpop.f32.mrf.mxu0 }
 0x1a2   :  { %3357 = vmatmul.bf16.vlgmr.msra.gmra.mxu0 %v10275_v37  ;;  %v9477_v3 = vld [vmem:[#allocation6 + $0x954] sm:$0xf]  ;;  %v7179_v13 = vor.u32 %v9413_v62, %v7176_v1 }
 0x1a3   :  { %3384 = vmatpush.bf16.msra.mxu2 %v7783_v21  ;;  %3405 = vmatpush.bf16.msrb.mxu0 %v6731_v26  ;;  %v6632_v15 = vld [vmem:[#allocation6 + $0x330] sm:$0xf0]  ;;  %v7435_v18 = vor.u32 %v9477_v3, %v7432_v5  ;;  %v3135_v26 = vadd.f32 %v3134_v22, %v10355_v35 }
 0x1a4   :  { %3371 = vmatmul.bf16.vlgmr.msra.gmra.mxu1 %v10279_v42  ;;  %v9341_v17 = vld [vmem:[#allocation6 + $0x514] sm:$0xf] }
 0x1a5   :  { %3419 = vmatpush.bf16.msrb.mxu1 %v6987_v40  ;;  %v6888_v19 = vld [vmem:[#allocation6 + $0x530] sm:$0xf0]  ;;  %v6635_v40 = vor.u32 %v9277_v14, %v6632_v15  ;;  %3449 = vmatpush.bf16.msrb.mxu3 %v7435_v18  ;;  %v10366_v36 = vadd.f32 %v3148_v16, %v3135_v26 }
 0x1a6   :  { %3385 = vmatmul.bf16.vlgmr.msra.gmra.mxu2 %v10277_v41  ;;  %v9405_v20 = vld [vmem:[#allocation6 + $0x714] sm:$0xf] }
 0x1a7   :  { %3433 = vmatpush.bf16.msrb.mxu2 %v7243_v27  ;;  %3406 = vmatpush.bf16.msrb.mxu0 %v6699_v49  ;;  %v7144_v21 = vld [vmem:[#allocation6 + $0x730] sm:$0xf0]  ;;  %v6891_v27 = vor.u32 %v9341_v17, %v6888_v19 }
 0x1a8   :  { %v9469_v24 = vld [vmem:[#allocation6 + $0x914] sm:$0xf]  ;;  %v7147_v28 = vor.u32 %v9405_v20, %v7144_v21 }
 0x1a9   :  { %3420 = vmatpush.bf16.msrb.mxu1 %v6955_v51  ;;  %v7400_v25 = vld [vmem:[#allocation6 + $0x930] sm:$0xf0] }
 0x1aa   :  { %v9269_v29 = vld [vmem:[#allocation6 + $0x2d4] sm:$0xf]  ;;  %v7403_v34 = vor.u32 %v9469_v24, %v7400_v25 }
 0x1ab   :  { %3434 = vmatpush.bf16.msrb.mxu2 %v7211_v53  ;;  %3407 = vmatpush.bf16.msrb.mxu0 %v6667_v6  ;;  %v6600_v32 = vld [vmem:[#allocation6 + $0x2f0] sm:$0xf0] }
 0x1ac   :  { %v9333_v33 = vld [vmem:[#allocation6 + $0x4d4] sm:$0xf]  ;;  %v6603_v35 = vor.u32 %v9269_v29, %v6600_v32  ;;  %3450 = vmatpush.bf16.msrb.mxu3 %v7403_v34 }
 0x1ad   :  { %3421 = vmatpush.bf16.msrb.mxu1 %v6923_v10  ;;  %v6856_v44 = vld [vmem:[#allocation6 + $0x4f0] sm:$0xf0] }
 0x1ae   :  { %v9397_v47 = vld [vmem:[#allocation6 + $0x6d4] sm:$0xf]  ;;  %v6859_v55 = vor.u32 %v9333_v33, %v6856_v44 }
 0x1af   :  { %3435 = vmatpush.bf16.msrb.mxu2 %v7179_v13  ;;  %v7112_v49 = vld [vmem:[#allocation6 + $0x6f0] sm:$0xf0]  ;;  %3408 = vmatpush.bf16.msrb.mxu0 %v6635_v40 }
 0x1b0   :  { %v9461_v51 = vld [vmem:[#allocation6 + $0x8d4] sm:$0xf]  ;;  %v7115_v56 = vor.u32 %v9397_v47, %v7112_v49 }
 0x1b1   :  { %v7368_v53 = vld [vmem:[#allocation6 + $0x8f0] sm:$0xf0]  ;;  %3422 = vmatpush.bf16.msrb.mxu1 %v6891_v27 }
 0x1b2   :  { %v9261_v58 = vld [vmem:[#allocation6 + $0x294] sm:$0xf]  ;;  %v7371_v62 = vor.u32 %v9461_v51, %v7368_v53 }
 0x1b3   :  { %3436 = vmatpush.bf16.msrb.mxu2 %v7147_v28  ;;  %v6568_v60 = vld [vmem:[#allocation6 + $0x2b0] sm:$0xf0]  ;;  %3409 = vmatpush.bf16.msrb.mxu0 %v6603_v35 }
 0x1b4   :  { %v9325_v61 = vld [vmem:[#allocation6 + $0x494] sm:$0xf]  ;;  %v6571_v13 = vor.u32 %v9261_v58, %v6568_v60  ;;  %3451 = vmatpush.bf16.msrb.mxu3 %v7371_v62  ;;  %v6478_v60 = vld [vmem:[#allocation6 + $0x1d8] sm:$0xf] }
 0x1b5   :  { %v6824_v1 = vld [vmem:[#allocation6 + $0x4b0] sm:$0xf0]  ;;  %3423 = vmatpush.bf16.msrb.mxu1 %v6859_v55 }
 0x1b6   :  { %v9389_v3 = vld [vmem:[#allocation6 + $0x694] sm:$0xf]  ;;  %v6827_v14 = vor.u32 %v9325_v61, %v6824_v1  ;;  %v9242_v61 = vld [vmem:[#allocation6 + $0x1f4] sm:$0xf0] }
 0x1b7   :  { %v7080_v5 = vld [vmem:[#allocation6 + $0x6b0] sm:$0xf0]  ;;  %3437 = vmatpush.bf16.msrb.mxu2 %v7115_v56  ;;  %3410 = vmatpush.bf16.msrb.mxu0 %v6571_v13 }
 0x1b8   :  { %v9453_v6 = vld [vmem:[#allocation6 + $0x894] sm:$0xf]  ;;  %v7083_v15 = vor.u32 %v9389_v3, %v7080_v5  ;;  %v6734_v3 = vld [vmem:[#allocation6 + $0x3d8] sm:$0xf] }
 0x1b9   :  { %v7336_v10 = vld [vmem:[#allocation6 + $0x8b0] sm:$0xf0]  ;;  %3424 = vmatpush.bf16.msrb.mxu1 %v6827_v14  ;;  %v9306_v5 = vld [vmem:[#allocation6 + $0x3f4] sm:$0xf0]  ;;  %v6479_v14 = vor.u32 %v9242_v61, %v6478_v60 }
 0x1ba   :  { %v9253_v17 = vld [vmem:[#allocation6 + $0x254] sm:$0xf]  ;;  %v7339_v20 = vor.u32 %v9453_v6, %v7336_v10 }
 0x1bb   :  { %v6536_v18 = vld [vmem:[#allocation6 + $0x270] sm:$0xf0]  ;;  %3438 = vmatpush.bf16.msrb.mxu2 %v7083_v15 }
 0x1bc   :  { %v9317_v19 = vld [vmem:[#allocation6 + $0x454] sm:$0xf]  ;;  %v6539_v40 = vor.u32 %v9253_v17, %v6536_v18  ;;  %3452 = vmatpush.bf16.msrb.mxu3 %v7339_v20 }
 0x1bd   :  { %v6792_v21 = vld [vmem:[#allocation6 + $0x470] sm:$0xf0] }
 0x1be   :  { %v9381_v22 = vld [vmem:[#allocation6 + $0x654] sm:$0xf]  ;;  %v6795_v16 = vor.u32 %v9317_v19, %v6792_v21  ;;  %3411 = vmatpush.bf16.msrb.mxu0 %v6539_v40  ;;  %v6735_v19 = vor.u32 %v9306_v5, %v6734_v3  ;;  %v6446_v21 = vld [vmem:[#allocation6 + $0x198] sm:$0xf] }
 0x1bf   :  { %v7048_v24 = vld [vmem:[#allocation6 + $0x670] sm:$0xf0]  ;;  %v6638_v3 = vld [vmem:[#allocation6 + $0x318] sm:$0xf] }
 0x1c0   :  { %v9445_v25 = vld [vmem:[#allocation6 + $0x854] sm:$0xf]  ;;  %v7051_v29 = vor.u32 %v9381_v22, %v7048_v24  ;;  %3425 = vmatpush.bf16.msrb.mxu1 %v6795_v16  ;;  %v9234_v22 = vld [vmem:[#allocation6 + $0x1b4] sm:$0xf0] }
 0x1c1   :  { %v7304_v26 = vld [vmem:[#allocation6 + $0x870] sm:$0xf0]  ;;  %v6702_v24 = vld [vmem:[#allocation6 + $0x398] sm:$0xf] }
 0x1c2   :  { %v9245_v27 = vld [vmem:[#allocation6 + $0x214] sm:$0xf]  ;;  %v7307_v44 = vor.u32 %v9445_v25, %v7304_v26  ;;  %3439 = vmatpush.bf16.msrb.mxu2 %v7051_v29  ;;  %v9298_v25 = vld [vmem:[#allocation6 + $0x3b4] sm:$0xf0] }
 0x1c3   :  { %v6504_v28 = vld [vmem:[#allocation6 + $0x230] sm:$0xf0]  ;;  %v9282_v5 = vld [vmem:[#allocation6 + $0x334] sm:$0xf0] }
 0x1c4   :  { %v9309_v32 = vld [vmem:[#allocation6 + $0x414] sm:$0xf]  ;;  %v6507_v56 = vor.u32 %v9245_v27, %v6504_v28  ;;  %3453 = vmatpush.bf16.msrb.mxu3 %v7307_v44  ;;  %v6447_v27 = vor.u32 %v9234_v22, %v6446_v21  ;;  %v9226_v44 = vld [vmem:[#allocation6 + $0x174] sm:$0xf0] }
 0x1c5   :  { %v6760_v33 = vld [vmem:[#allocation6 + $0x430] sm:$0xf0]  ;;  %v9210_v21 = vld [vmem:[#allocation6 + $0xf4] sm:$0xf0] }
 0x1c6   :  { %v9373_v34 = vld [vmem:[#allocation6 + $0x614] sm:$0xf]  ;;  %v6763_v62 = vor.u32 %v9309_v32, %v6760_v33  ;;  %3412 = vmatpush.bf16.msrb.mxu0 %v6507_v56  ;;  %v6703_v32 = vor.u32 %v9298_v25, %v6702_v24  ;;  %v6606_v22 = vld [vmem:[#allocation6 + $0x2d8] sm:$0xf] }
 0x1c7   :  { %v7016_v47 = vld [vmem:[#allocation6 + $0x630] sm:$0xf0]  ;;  %v9274_v24 = vld [vmem:[#allocation6 + $0x2f4] sm:$0xf0] }
 0x1c8   :  { %v9437_v49 = vld [vmem:[#allocation6 + $0x814] sm:$0xf]  ;;  %v7019_v1 = vor.u32 %v9373_v34, %v7016_v47  ;;  %3426 = vmatpush.bf16.msrb.mxu1 %v6763_v62  ;;  %v6414_v34 = vld [vmem:[#allocation6 + $0x158] sm:$0xf] }
 0x1c9   :  { %v7272_v51 = vld [vmem:[#allocation6 + $0x830] sm:$0xf0]  ;;  %3413 = vmatmul.bf16.vlgmr.msrb.gmra.mxu0 %v10269_v11  ;;  %v6670_v47 = vld [vmem:[#allocation6 + $0x358] sm:$0xf] }
 0x1ca   :  { %v9557_v53 = vld [vmem:[#allocation6 + $0xbd4] sm:$0xf]  ;;  %v7275_v6 = vor.u32 %v9437_v49, %v7272_v51  ;;  %3440 = vmatpush.bf16.msrb.mxu2 %v7019_v1  ;;  %v9290_v49 = vld [vmem:[#allocation6 + $0x374] sm:$0xf0] }
 0x1cb   :  { %v7752_v35 = vld [vmem:[#allocation6 + $0xbf0] sm:$0xf0]  ;;  %3427 = vmatmul.bf16.vlgmr.msrb.gmra.mxu1 %v10265_v0  ;;  %v6671_v60 = vor.u32 %v9290_v49, %v6670_v47  ;;  %v6382_v62 = vld [vmem:[#allocation6 + $0x118] sm:$0xf] }
 0x1cc   :  { %v9621_v55 = vld [vmem:[#allocation6 + $0xdd4] sm:$0xf]  ;;  %v7755_v10 = vor.u32 %v9557_v53, %v7752_v35  ;;  %3454 = vmatpush.bf16.msrb.mxu3 %v7275_v6  ;;  %v6415_v35 = vor.u32 %v9226_v44, %v6414_v34  ;;  %v9218_v1 = vld [vmem:[#allocation6 + $0x134] sm:$0xf0] }
 0x1cd   :  { %v8008_v58 = vld [vmem:[#allocation6 + $0xdf0] sm:$0xf0]  ;;  %3441 = vmatmul.bf16.vlgmr.msrb.gmra.mxu2 %v10272_v23  ;;  %v9202_v34 = vld [vmem:[#allocation6 + $0xb4] sm:$0xf0] }
 0x1ce   :  { %v8011_v13 = vor.u32 %v9621_v55, %v8008_v58  ;;  %v9549_v15 = vld [vmem:[#allocation6 + $0xb94] sm:$0xf]  ;;  %3461 = vmatpush.bf16.msra.mxu0 %v7755_v10  ;;  %3489 = vmatpush.bf16.msra.mxu2 %v6479_v14  ;;  %v6574_v44 = vld [vmem:[#allocation6 + $0x298] sm:$0xf] }
 0x1cf   :  { %v7720_v17 = vld [vmem:[#allocation6 + $0xbb0] sm:$0xf0]  ;;  %3455 = vmatmul.bf16.vlgmr.msrb.gmra.mxu3 %v10275_v37  ;;  %v9266_v47 = vld [vmem:[#allocation6 + $0x2b4] sm:$0xf0] }
 0x1d0   :  { %v9613_v18 = vld [vmem:[#allocation6 + $0xd94] sm:$0xf]  ;;  %v7723_v26 = vor.u32 %v9549_v15, %v7720_v17  ;;  %3475 = vmatpush.bf16.msra.mxu1 %v8011_v13  ;;  %3503 = vmatpush.bf16.msra.mxu3 %v6735_v19  ;;  %v6383_v13 = vor.u32 %v9218_v1, %v6382_v62  ;;  %v9194_v62 = vld [vmem:[#allocation6 + $0x74] sm:$0xf0] }
 0x1d1   :  { %v7976_v20 = vld [vmem:[#allocation6 + $0xdb0] sm:$0xf0]  ;;  %v6542_v1 = vld [vmem:[#allocation6 + $0x258] sm:$0xf] }
 0x1d2   :  { %v7979_v40 = vor.u32 %v9613_v18, %v7976_v20  ;;  %v9541_v28 = vld [vmem:[#allocation6 + $0xb54] sm:$0xf]  ;;  %3462 = vmatpush.bf16.msra.mxu0 %v7723_v26  ;;  %3490 = vmatpush.bf16.msra.mxu2 %v6447_v27  ;;  %v6639_v18 = vor.u32 %v9282_v5, %v6638_v3  ;;  %v6350_v20 = vld [vmem:[#allocation6 + $0xd8] sm:$0xf] }
 0x1d3   :  { %v7688_v16 = vld [vmem:[#allocation6 + $0xb70] sm:$0xf0]  ;;  %v9258_v3 = vld [vmem:[#allocation6 + $0x274] sm:$0xf0] }
 0x1d4   :  { %v9605_v29 = vld [vmem:[#allocation6 + $0xd54] sm:$0xf]  ;;  %v7691_v51 = vor.u32 %v9541_v28, %v7688_v16  ;;  %3476 = vmatpush.bf16.msra.mxu1 %v7979_v40  ;;  %3504 = vmatpush.bf16.msra.mxu3 %v6703_v32  ;;  %v6351_v40 = vor.u32 %v9210_v21, %v6350_v20  ;;  %v9186_v20 = vld [vmem:[#allocation6 + $0x34] sm:$0xf0] }
 0x1d5   :  { %v7944_v33 = vld [vmem:[#allocation6 + $0xd70] sm:$0xf0]  ;;  %v6510_v21 = vld [vmem:[#allocation6 + $0x218] sm:$0xf] }
 0x1d6   :  { %v7947_v53 = vor.u32 %v9605_v29, %v7944_v33  ;;  %v9533_v55 = vld [vmem:[#allocation6 + $0xb14] sm:$0xf]  ;;  %3463 = vmatpush.bf16.msra.mxu0 %v7691_v51  ;;  %3491 = vmatpush.bf16.msra.mxu2 %v6415_v35  ;;  %v6607_v29 = vor.u32 %v9274_v24, %v6606_v22  ;;  %v6318_v33 = vld [vmem:[#allocation6 + $0x98] sm:$0xf] }
 0x1d7   :  { %v7656_v56 = vld [vmem:[#allocation6 + $0xb30] sm:$0xf0]  ;;  %v9250_v22 = vld [vmem:[#allocation6 + $0x234] sm:$0xf0] }
 0x1d8   :  { %v9597_v58 = vld [vmem:[#allocation6 + $0xd14] sm:$0xf]  ;;  %v7659_v6 = vor.u32 %v9533_v55, %v7656_v56  ;;  %3477 = vmatpush.bf16.msra.mxu1 %v7947_v53  ;;  %3505 = vmatpush.bf16.msra.mxu3 %v6671_v60  ;;  %v6319_v53 = vor.u32 %v9202_v34, %v6318_v33  ;;  %v6990_v24 = vld [vmem:[#allocation6 + $0x5d8] sm:$0xf] }
 0x1d9   :  { %v7912_v61 = vld [vmem:[#allocation6 + $0xd30] sm:$0xf0]  ;;  %v7758_v33 = vld [vmem:[#allocation6 + $0xbd8] sm:$0xf] }
 0x1da   :  { %v7915_v10 = vor.u32 %v9597_v58, %v7912_v61  ;;  %v9525_v14 = vld [vmem:[#allocation6 + $0xad4] sm:$0xf]  ;;  %3464 = vmatpush.bf16.msra.mxu0 %v7659_v6  ;;  %3492 = vmatpush.bf16.msra.mxu2 %v6383_v13  ;;  %v6575_v58 = vor.u32 %v9266_v47, %v6574_v44  ;;  %v6286_v61 = vld [vmem:[#allocation6 + $0x58] sm:$0xf]  ;;  %v6511_v44 = vor.u32 %v9250_v22, %v6510_v21 }
 0x1db   :  { %v7624_v15 = vld [vmem:[#allocation6 + $0xaf0] sm:$0xf0]  ;;  %v9562_v34 = vld [vmem:[#allocation6 + $0xbf4] sm:$0xf0] }
 0x1dc   :  { %v9589_v17 = vld [vmem:[#allocation6 + $0xcd4] sm:$0xf]  ;;  %v7627_v25 = vor.u32 %v9525_v14, %v7624_v15  ;;  %3478 = vmatpush.bf16.msra.mxu1 %v7915_v10  ;;  %3506 = vmatpush.bf16.msra.mxu3 %v6639_v18  ;;  %v6287_v14 = vor.u32 %v9194_v62, %v6286_v61  ;;  %v6254_v18 = vld [vmem:[#allocation6 + $0x18] sm:$0xf] }
 0x1dd   :  { %v7880_v19 = vld [vmem:[#allocation6 + $0xcf0] sm:$0xf0]  ;;  %v9490_v61 = vld [vmem:[#allocation6 + $0x9b4] sm:$0xf0] }
 0x1de   :  { %v7883_v26 = vor.u32 %v9589_v17, %v7880_v19  ;;  %v9517_v27 = vld [vmem:[#allocation6 + $0xa94] sm:$0xf]  ;;  %3465 = vmatpush.bf16.msra.mxu0 %v7627_v25  ;;  %3493 = vmatpush.bf16.msra.mxu2 %v6351_v40  ;;  %v6543_v19 = vor.u32 %v9258_v3, %v6542_v1  ;;  %v9370_v25 = vld [vmem:[#allocation6 + $0x5f4] sm:$0xf0] }
 0x1df   :  { %v7592_v28 = vld [vmem:[#allocation6 + $0xab0] sm:$0xf0]  ;;  %v6991_v47 = vor.u32 %v9370_v25, %v6990_v24  ;;  %v7726_v62 = vld [vmem:[#allocation6 + $0xb98] sm:$0xf] }
 0x1e0   :  { %v9581_v16 = vld [vmem:[#allocation6 + $0xc94] sm:$0xf]  ;;  %v7595_v49 = vor.u32 %v9517_v27, %v7592_v28  ;;  %3479 = vmatpush.bf16.msra.mxu1 %v7883_v26  ;;  %3507 = vmatpush.bf16.msra.mxu3 %v6607_v29  ;;  %v7246_v26 = vld [vmem:[#allocation6 + $0x7d8] sm:$0xf] }
 0x1e1   :  { %v7848_v32 = vld [vmem:[#allocation6 + $0xcb0] sm:$0xf0]  ;;  %v9434_v27 = vld [vmem:[#allocation6 + $0x7f4] sm:$0xf0] }
 0x1e2   :  { %v7851_v51 = vor.u32 %v9581_v16, %v7848_v32  ;;  %v9509_v35 = vld [vmem:[#allocation6 + $0xa54] sm:$0xf]  ;;  %3466 = vmatpush.bf16.msra.mxu0 %v7595_v49  ;;  %3494 = vmatpush.bf16.msra.mxu2 %v6319_v53  ;;  %v7502_v28 = vld [vmem:[#allocation6 + $0x9d8] sm:$0xf]  ;;  %v6255_v32 = vor.u32 %v9186_v20, %v6254_v18  ;;  %v7247_v49 = vor.u32 %v9434_v27, %v7246_v26 }
 0x1e3   :  { %v7560_v55 = vld [vmem:[#allocation6 + $0xa70] sm:$0xf0]  ;;  %v9498_v16 = vld [vmem:[#allocation6 + $0x9f4] sm:$0xf0] }
 0x1e4   :  { %v9573_v56 = vld [vmem:[#allocation6 + $0xc54] sm:$0xf]  ;;  %v7563_v5 = vor.u32 %v9509_v35, %v7560_v55  ;;  %3480 = vmatpush.bf16.msra.mxu1 %v7851_v51  ;;  %3508 = vmatpush.bf16.msra.mxu3 %v6575_v58  ;;  %v7503_v51 = vor.u32 %v9498_v16, %v7502_v28  ;;  %v6958_v53 = vld [vmem:[#allocation6 + $0x598] sm:$0xf] }
 0x1e5   :  { %v7816_v60 = vld [vmem:[#allocation6 + $0xc70] sm:$0xf0]  ;;  %v9362_v35 = vld [vmem:[#allocation6 + $0x5b4] sm:$0xf0] }
 0x1e6   :  { %v9501_v6 = vld [vmem:[#allocation6 + $0xa14] sm:$0xf]  ;;  %v7819_v13 = vor.u32 %v9573_v56, %v7816_v60  ;;  %3467 = vmatpush.bf16.msra.mxu0 %v7563_v5  ;;  %3495 = vmatpush.bf16.msra.mxu2 %v6287_v14  ;;  %v7214_v55 = vld [vmem:[#allocation6 + $0x798] sm:$0xf]  ;;  %v7759_v56 = vor.u32 %v9562_v34, %v7758_v33  ;;  %v6959_v3 = vor.u32 %v9362_v35, %v6958_v53 }
 0x1e7   :  { %v7528_v10 = vld [vmem:[#allocation6 + $0xa30] sm:$0xf0]  ;;  %v9426_v58 = vld [vmem:[#allocation6 + $0x7b4] sm:$0xf0] }
 0x1e8   :  { %v9565_v15 = vld [vmem:[#allocation6 + $0xc14] sm:$0xf]  ;;  %v7531_v40 = vor.u32 %v9501_v6, %v7528_v10  ;;  %3481 = vmatpush.bf16.msra.mxu1 %v7819_v13  ;;  %3509 = vmatpush.bf16.msra.mxu3 %v6543_v19  ;;  %v7470_v60 = vld [vmem:[#allocation6 + $0x998] sm:$0xf]  ;;  %v7215_v5 = vor.u32 %v9426_v58, %v7214_v55 }
 0x1e9   :  { %v7784_v17 = vld [vmem:[#allocation6 + $0xc30] sm:$0xf0]  ;;  %v9554_v1 = vld [vmem:[#allocation6 + $0xbb4] sm:$0xf0]  ;;  %v7471_v6 = vor.u32 %v9490_v61, %v7470_v60 }
 0x1ea   :  { %v7787_v29 = vor.u32 %v9565_v15, %v7784_v17  ;;  %3468 = vmatpush.bf16.msra.mxu0 %v7531_v40  ;;  %3496 = vmatpush.bf16.msra.mxu2 %v6255_v32  ;;  %v6926_v10 = vld [vmem:[#allocation6 + $0x558] sm:$0xf]  ;;  %v7727_v15 = vor.u32 %v9554_v1, %v7726_v62 }
 0x1eb   :  { %v9354_v13 = vld [vmem:[#allocation6 + $0x574] sm:$0xf0] }
 0x1ec   :  { %3482 = vmatpush.bf16.msra.mxu1 %v7787_v29  ;;  %3510 = vmatpush.bf16.msra.mxu3 %v6511_v44  ;;  %v7182_v14 = vld [vmem:[#allocation6 + $0x758] sm:$0xf]  ;;  %v6927_v22 = vor.u32 %v9354_v13, %v6926_v10 }
 0x1ed   :  { %3469 = vmatmul.bf16.vlgmr.msra.gmra.mxu0 %v10279_v42  ;;  %v9418_v17 = vld [vmem:[#allocation6 + $0x774] sm:$0xf0]  ;;  %3497 = vmatmul.bf16.vlgmr.msra.gmra.mxu2 %v10263_v57 }
 0x1ee   :  { %3517 = vmatpush.bf16.msrb.mxu0 %v6991_v47  ;;  %3545 = vmatpush.bf16.msrb.mxu2 %v7503_v51  ;;  %v7438_v18 = vld [vmem:[#allocation6 + $0x958] sm:$0xf]  ;;  %v7183_v24 = vor.u32 %v9418_v17, %v7182_v14 }
 0x1ef   :  { %v9482_v19 = vld [vmem:[#allocation6 + $0x974] sm:$0xf0]  ;;  %3483 = vmatmul.bf16.vlgmr.msra.gmra.mxu1 %v10277_v41  ;;  %3511 = vmatmul.bf16.vlgmr.msra.gmra.mxu3 %v10269_v11 }
 0x1f0   :  { %3531 = vmatpush.bf16.msrb.mxu1 %v7247_v49  ;;  %3559 = vmatpush.bf16.msrb.mxu3 %v7759_v56  ;;  %v7694_v20 = vld [vmem:[#allocation6 + $0xb58] sm:$0xf]  ;;  %v7439_v25 = vor.u32 %v9482_v19, %v7438_v18 }
 0x1f1   :  { %v9546_v21 = vld [vmem:[#allocation6 + $0xb74] sm:$0xf0] }
 0x1f2   :  { %3518 = vmatpush.bf16.msrb.mxu0 %v6959_v3  ;;  %3546 = vmatpush.bf16.msrb.mxu2 %v7471_v6  ;;  %v6894_v26 = vld [vmem:[#allocation6 + $0x518] sm:$0xf]  ;;  %v7695_v28 = vor.u32 %v9546_v21, %v7694_v20  ;;  %v10376_v3 = vpop.f32.mrf.mxu2 }
 0x1f3   :  { %v9346_v40 = vld [vmem:[#allocation6 + $0x534] sm:$0xf0] }
 0x1f4   :  { %3532 = vmatpush.bf16.msrb.mxu1 %v7215_v5  ;;  %v7150_v27 = vld [vmem:[#allocation6 + $0x718] sm:$0xf]  ;;  %3560 = vmatpush.bf16.msrb.mxu3 %v7727_v15  ;;  %v6895_v44 = vor.u32 %v9346_v40, %v6894_v26 }
 0x1f5   :  { %v9410_v16 = vld [vmem:[#allocation6 + $0x734] sm:$0xf0] }
 0x1f6   :  { %v7406_v29 = vld [vmem:[#allocation6 + $0x918] sm:$0xf]  ;;  %3519 = vmatpush.bf16.msrb.mxu0 %v6927_v22  ;;  %3547 = vmatpush.bf16.msrb.mxu2 %v7439_v25  ;;  %v7151_v47 = vor.u32 %v9410_v16, %v7150_v27 }
 0x1f7   :  { %v9474_v32 = vld [vmem:[#allocation6 + $0x934] sm:$0xf0] }
 0x1f8   :  { %v7662_v33 = vld [vmem:[#allocation6 + $0xb18] sm:$0xf]  ;;  %3533 = vmatpush.bf16.msrb.mxu1 %v7183_v24  ;;  %v7407_v49 = vor.u32 %v9474_v32, %v7406_v29  ;;  %3561 = vmatpush.bf16.msrb.mxu3 %v7695_v28  ;;  %v10378_v24 = vpop.f32.mrf.mxu3 }
 0x1f9   :  { %v9538_v34 = vld [vmem:[#allocation6 + $0xb34] sm:$0xf0] }
 0x1fa   :  { %v6862_v51 = vld [vmem:[#allocation6 + $0x4d8] sm:$0xf]  ;;  %v7663_v55 = vor.u32 %v9538_v34, %v7662_v33  ;;  %3520 = vmatpush.bf16.msrb.mxu0 %v6895_v44  ;;  %3548 = vmatpush.bf16.msrb.mxu2 %v7407_v49 }
 0x1fb   :  { %v9338_v53 = vld [vmem:[#allocation6 + $0x4f4] sm:$0xf0] }
 0x1fc   :  { %v7118_v35 = vld [vmem:[#allocation6 + $0x6d8] sm:$0xf]  ;;  %v6863_v1 = vor.u32 %v9338_v53, %v6862_v51  ;;  %3534 = vmatpush.bf16.msrb.mxu1 %v7151_v47  ;;  %3562 = vmatpush.bf16.msrb.mxu3 %v7663_v55 }
 0x1fd   :  { %v9402_v56 = vld [vmem:[#allocation6 + $0x6f4] sm:$0xf0] }
 0x1fe   :  { %v7374_v58 = vld [vmem:[#allocation6 + $0x8d8] sm:$0xf]  ;;  %v7119_v5 = vor.u32 %v9402_v56, %v7118_v35  ;;  %3521 = vmatpush.bf16.msrb.mxu0 %v6863_v1 }
 0x1ff   :  { %v9466_v60 = vld [vmem:[#allocation6 + $0x8f4] sm:$0xf0] }
 0x200   :  { %v7630_v61 = vld [vmem:[#allocation6 + $0xad8] sm:$0xf]  ;;  %v7375_v6 = vor.u32 %v9466_v60, %v7374_v58  ;;  %3535 = vmatpush.bf16.msrb.mxu1 %v7119_v5  ;;  %v10380_v5 = vpop.f32.mrf.mxu2 }
 0x201   :  { %v9530_v62 = vld [vmem:[#allocation6 + $0xaf4] sm:$0xf0] }
 0x202   :  { %v6830_v10 = vld [vmem:[#allocation6 + $0x498] sm:$0xf]  ;;  %v7631_v15 = vor.u32 %v9530_v62, %v7630_v61  ;;  %3549 = vmatpush.bf16.msrb.mxu2 %v7375_v6 }
 0x203   :  { %v9330_v13 = vld [vmem:[#allocation6 + $0x4b4] sm:$0xf0] }
 0x204   :  { %v7086_v14 = vld [vmem:[#allocation6 + $0x698] sm:$0xf]  ;;  %v6831_v22 = vor.u32 %v9330_v13, %v6830_v10  ;;  %3563 = vmatpush.bf16.msrb.mxu3 %v7631_v15  ;;  %v9238_v13 = vld [vmem:[#allocation6 + $0x1dc] sm:$0xf] }
 0x205   :  { %v9394_v17 = vld [vmem:[#allocation6 + $0x6b4] sm:$0xf0]  ;;  %v6480_v15 = vld [vmem:[#allocation6 + $0x1f8] sm:$0xf0] }
 0x206   :  { %v7342_v18 = vld [vmem:[#allocation6 + $0x898] sm:$0xf]  ;;  %v7087_v25 = vor.u32 %v9394_v17, %v7086_v14  ;;  %3522 = vmatpush.bf16.msrb.mxu0 %v6831_v22  ;;  %v9302_v17 = vld [vmem:[#allocation6 + $0x3dc] sm:$0xf] }
 0x207   :  { %v9458_v19 = vld [vmem:[#allocation6 + $0x8b4] sm:$0xf0]  ;;  %v6992_v22 = vld [vmem:[#allocation6 + $0x5f8] sm:$0xf0] }
 0x208   :  { %v7598_v20 = vld [vmem:[#allocation6 + $0xa98] sm:$0xf]  ;;  %v7343_v26 = vor.u32 %v9458_v19, %v7342_v18  ;;  %3536 = vmatpush.bf16.msrb.mxu1 %v7087_v25  ;;  %v6736_v18 = vld [vmem:[#allocation6 + $0x3f8] sm:$0xf0]  ;;  %v10382_v25 = vpop.f32.mrf.mxu1 }
 0x209   :  { %v9522_v21 = vld [vmem:[#allocation6 + $0xab4] sm:$0xf0] }
 0x20a   :  { %v6798_v40 = vld [vmem:[#allocation6 + $0x458] sm:$0xf]  ;;  %v7599_v16 = vor.u32 %v9522_v21, %v7598_v20  ;;  %3550 = vmatpush.bf16.msrb.mxu2 %v7343_v26  ;;  %v9366_v21 = vld [vmem:[#allocation6 + $0x5dc] sm:$0xf] }
 0x20b   :  { %v9322_v27 = vld [vmem:[#allocation6 + $0x474] sm:$0xf0] }
 0x20c   :  { %v7054_v28 = vld [vmem:[#allocation6 + $0x658] sm:$0xf]  ;;  %v6799_v47 = vor.u32 %v9322_v27, %v6798_v40  ;;  %3564 = vmatpush.bf16.msrb.mxu3 %v7599_v16  ;;  %v10384_v27 = vpop.f32.mrf.mxu0  ;;  %v6483_v16 = vor.u32 %v9238_v13, %v6480_v15  ;;  %v6672_v13 = vld [vmem:[#allocation6 + $0x378] sm:$0xf0] }
 0x20d   :  { %v9386_v29 = vld [vmem:[#allocation6 + $0x674] sm:$0xf0]  ;;  %v9350_v15 = vld [vmem:[#allocation6 + $0x55c] sm:$0xf] }
 0x20e   :  { %v7310_v32 = vld [vmem:[#allocation6 + $0x858] sm:$0xf]  ;;  %v7055_v53 = vor.u32 %v9386_v29, %v7054_v28  ;;  %3523 = vmatpush.bf16.msrb.mxu0 %v6799_v47  ;;  %v10386_v28 = vpop.f32.mrf.mxu3  ;;  %v6739_v29 = vor.u32 %v9302_v17, %v6736_v18  ;;  %v6448_v47 = vld [vmem:[#allocation6 + $0x1b8] sm:$0xf0] }
 0x20f   :  { %v9450_v33 = vld [vmem:[#allocation6 + $0x874] sm:$0xf0]  ;;  %10770 = vst [vmem:[#allocation28_spill] sm:$0xff] %v10386_v28  ;;  %v6928_v17 = vld [vmem:[#allocation6 + $0x578] sm:$0xf0] }
 0x210   :  { %v7566_v34 = vld [vmem:[#allocation6 + $0xa58] sm:$0xf]  ;;  %v7311_v35 = vor.u32 %v9450_v33, %v7310_v32  ;;  %3537 = vmatpush.bf16.msrb.mxu1 %v7055_v53  ;;  %v9358_v53 = vld [vmem:[#allocation6 + $0x59c] sm:$0xf]  ;;  %v10393_v18 = vpop.f32.mrf.mxu1 }
 0x211   :  { %v9514_v44 = vld [vmem:[#allocation6 + $0xa74] sm:$0xf0] }
 0x212   :  { %v6766_v49 = vld [vmem:[#allocation6 + $0x418] sm:$0xf]  ;;  %v7567_v60 = vor.u32 %v9514_v44, %v7566_v34  ;;  %3551 = vmatpush.bf16.msrb.mxu2 %v7311_v35  ;;  %v9230_v34 = vld [vmem:[#allocation6 + $0x19c] sm:$0xf]  ;;  %v6995_v44 = vor.u32 %v9366_v21, %v6992_v22 }
 0x213   :  { %v9314_v51 = vld [vmem:[#allocation6 + $0x434] sm:$0xf0]  ;;  %v6960_v35 = vld [vmem:[#allocation6 + $0x5b8] sm:$0xf0] }
 0x214   :  { %v7022_v55 = vld [vmem:[#allocation6 + $0x618] sm:$0xf]  ;;  %v6767_v14 = vor.u32 %v9314_v51, %v6766_v49  ;;  %3565 = vmatpush.bf16.msrb.mxu3 %v7567_v60  ;;  %v9294_v49 = vld [vmem:[#allocation6 + $0x39c] sm:$0xf] }
 0x215   :  { %v9378_v56 = vld [vmem:[#allocation6 + $0x634] sm:$0xf0]  ;;  %v6704_v51 = vld [vmem:[#allocation6 + $0x3b8] sm:$0xf0] }
 0x216   :  { %v7278_v58 = vld [vmem:[#allocation6 + $0x818] sm:$0xf]  ;;  %v7023_v19 = vor.u32 %v9378_v56, %v7022_v55  ;;  %3524 = vmatpush.bf16.msrb.mxu0 %v6767_v14  ;;  %v6451_v56 = vor.u32 %v9230_v34, %v6448_v47  ;;  %v10389_v14 = vpop.f32.mrf.mxu2  ;;  %v6640_v34 = vld [vmem:[#allocation6 + $0x338] sm:$0xf0] }
 0x217   :  { %v9442_v61 = vld [vmem:[#allocation6 + $0x834] sm:$0xf0]  ;;  %10771 = vst [vmem:[#allocation29_spill] sm:$0xff] %v10389_v14  ;;  %v9342_v47 = vld [vmem:[#allocation6 + $0x51c] sm:$0xf] }
 0x218   :  { %v7534_v62 = vld [vmem:[#allocation6 + $0xa18] sm:$0xf]  ;;  %v7279_v20 = vor.u32 %v9442_v61, %v7278_v58  ;;  %3538 = vmatpush.bf16.msrb.mxu1 %v7023_v19  ;;  %v6707_v58 = vor.u32 %v9294_v49, %v6704_v51  ;;  %v6896_v49 = vld [vmem:[#allocation6 + $0x538] sm:$0xf0] }
 0x219   :  { %v9506_v1 = vld [vmem:[#allocation6 + $0xa34] sm:$0xf0]  ;;  %3525 = vmatmul.bf16.vlgmr.msrb.gmra.mxu0 %v10265_v0  ;;  %v7216_v14 = vld [vmem:[#allocation6 + $0x7b8] sm:$0xf0] }
 0x21a   :  { %v8014_v6 = vld [vmem:[#allocation6 + $0xdd8] sm:$0xf]  ;;  %v7535_v26 = vor.u32 %v9506_v1, %v7534_v62  ;;  %3552 = vmatpush.bf16.msrb.mxu2 %v7279_v20  ;;  %v9222_v62 = vld [vmem:[#allocation6 + $0x15c] sm:$0xf]  ;;  %v6963_v1 = vor.u32 %v9358_v53, %v6960_v35  ;;  %v10396_v20 = vpop.f32.mrf.mxu0 }
 0x21b   :  { %v9626_v10 = vld [vmem:[#allocation6 + $0xdf4] sm:$0xf0]  ;;  %3539 = vmatmul.bf16.vlgmr.msrb.gmra.mxu1 %v10272_v23  ;;  %10772 = vst [vmem:[#allocation30_spill] sm:$0xff] %v10396_v20 }
 0x21c   :  { %v8015_v40 = vor.u32 %v9626_v10, %v8014_v6  ;;  %v7982_v32 = vld [vmem:[#allocation6 + $0xd98] sm:$0xf]  ;;  %3566 = vmatpush.bf16.msrb.mxu3 %v7535_v26  ;;  %3587 = vmatpush.bf16.msra.mxu1 %v6483_v16  ;;  %v6416_v6 = vld [vmem:[#allocation6 + $0x178] sm:$0xf0] }
 0x21d   :  { %v9618_v33 = vld [vmem:[#allocation6 + $0xdb4] sm:$0xf0]  ;;  %v9286_v10 = vld [vmem:[#allocation6 + $0x35c] sm:$0xf]  ;;  %3553 = vmatmul.bf16.vlgmr.msrb.gmra.mxu2 %v10275_v37  ;;  %v6419_v21 = vor.u32 %v9222_v62, %v6416_v6 }
 0x21e   :  { %3573 = vmatpush.bf16.msra.mxu0 %v8015_v40  ;;  %v7983_v55 = vor.u32 %v9618_v33, %v7982_v32  ;;  %3601 = vmatpush.bf16.msra.mxu2 %v6739_v29  ;;  %v7950_v60 = vld [vmem:[#allocation6 + $0xd58] sm:$0xf]  ;;  %v6675_v22 = vor.u32 %v9286_v10, %v6672_v13  ;;  %v9214_v16 = vld [vmem:[#allocation6 + $0x11c] sm:$0xf]  ;;  %v6931_v29 = vor.u32 %v9350_v15, %v6928_v17  ;;  %v10400_v6 = vpop.f32.mrf.mxu2 }
 0x21f   :  { %v9610_v61 = vld [vmem:[#allocation6 + $0xd74] sm:$0xf0]  ;;  %3567 = vmatmul.bf16.vlgmr.msrb.gmra.mxu3 %v10279_v42  ;;  %v6384_v32 = vld [vmem:[#allocation6 + $0x138] sm:$0xf0] }
 0x220   :  { %3615 = vmatpush.bf16.msra.mxu3 %v6995_v44  ;;  %v7951_v19 = vor.u32 %v9610_v61, %v7950_v60  ;;  %3588 = vmatpush.bf16.msra.mxu1 %v6451_v56  ;;  %v7918_v26 = vld [vmem:[#allocation6 + $0xd18] sm:$0xf]  ;;  %v9278_v33 = vld [vmem:[#allocation6 + $0x31c] sm:$0xf]  ;;  %v10398_v44 = vpop.f32.mrf.mxu3  ;;  %v6387_v53 = vor.u32 %v9214_v16, %v6384_v32  ;;  %v6899_v60 = vor.u32 %v9342_v47, %v6896_v49 }
 0x221   :  { %v9602_v40 = vld [vmem:[#allocation6 + $0xd34] sm:$0xf0]  ;;  %10773 = vst [vmem:[#allocation31_spill] sm:$0xff] %v10398_v44  ;;  %v6643_v35 = vor.u32 %v9278_v33, %v6640_v34  ;;  %v6352_v61 = vld [vmem:[#allocation6 + $0xf8] sm:$0xf0] }
 0x222   :  { %3574 = vmatpush.bf16.msra.mxu0 %v7983_v55  ;;  %3602 = vmatpush.bf16.msra.mxu2 %v6707_v58  ;;  %v7919_v51 = vor.u32 %v9602_v40, %v7918_v26  ;;  %v7886_v55 = vld [vmem:[#allocation6 + $0xcd8] sm:$0xf]  ;;  %v9206_v58 = vld [vmem:[#allocation6 + $0xdc] sm:$0xf]  ;;  %v10402_v40 = vpop.f32.mrf.mxu1  ;;  %v10404_v34 = vpop.f32.mrf.mxu0 }
 0x223   :  { %v9594_v56 = vld [vmem:[#allocation6 + $0xcf4] sm:$0xf0]  ;;  %v9270_v62 = vld [vmem:[#allocation6 + $0x2dc] sm:$0xf]  ;;  %v6355_v17 = vor.u32 %v9206_v58, %v6352_v61  ;;  %10774 = vst [vmem:[#allocation32_spill] sm:$0xff] %v10404_v34 }
 0x224   :  { %3616 = vmatpush.bf16.msra.mxu3 %v6963_v1  ;;  %3589 = vmatpush.bf16.msra.mxu1 %v6419_v21  ;;  %v6608_v1 = vld [vmem:[#allocation6 + $0x2f8] sm:$0xf0]  ;;  %v7887_v15 = vor.u32 %v9594_v56, %v7886_v55  ;;  %v7854_v21 = vld [vmem:[#allocation6 + $0xc98] sm:$0xf] }
 0x225   :  { %v9334_v10 = vld [vmem:[#allocation6 + $0x4dc] sm:$0xf]  ;;  %v7822_v56 = vld [vmem:[#allocation6 + $0xc58] sm:$0xf] }
 0x226   :  { %3575 = vmatpush.bf16.msra.mxu0 %v7951_v19  ;;  %3603 = vmatpush.bf16.msra.mxu2 %v6675_v22  ;;  %v6864_v13 = vld [vmem:[#allocation6 + $0x4f8] sm:$0xf0]  ;;  %v6611_v19 = vor.u32 %v9270_v62, %v6608_v1  ;;  %v9586_v22 = vld [vmem:[#allocation6 + $0xcb4] sm:$0xf0] }
 0x227   :  { %v9198_v26 = vld [vmem:[#allocation6 + $0x9c] sm:$0xf]  ;;  %v6867_v16 = vor.u32 %v9334_v10, %v6864_v13  ;;  %v9578_v58 = vld [vmem:[#allocation6 + $0xc74] sm:$0xf0] }
 0x228   :  { %3617 = vmatpush.bf16.msra.mxu3 %v6931_v29  ;;  %3590 = vmatpush.bf16.msra.mxu1 %v6387_v53  ;;  %v6320_v29 = vld [vmem:[#allocation6 + $0xb8] sm:$0xf0]  ;;  %v10406_v47 = vpop.f32.mrf.mxu3  ;;  %v7855_v53 = vor.u32 %v9586_v22, %v7854_v21  ;;  %v7823_v46 = vor.u32 %v9578_v58, %v7822_v56  ;;  %v9570_v34 = vld [vmem:[#allocation6 + $0xc34] sm:$0xf0] }
 0x229   :  { %v9262_v32 = vld [vmem:[#allocation6 + $0x29c] sm:$0xf] }
 0x22a   :  { %3576 = vmatpush.bf16.msra.mxu0 %v7919_v51  ;;  %3604 = vmatpush.bf16.msra.mxu2 %v6643_v35  ;;  %v6576_v33 = vld [vmem:[#allocation6 + $0x2b8] sm:$0xf0]  ;;  %v6323_v35 = vor.u32 %v9198_v26, %v6320_v29  ;;  %v10412_v58 = vpop.f32.mrf.mxu1 }
 0x22b   :  { %v9326_v49 = vld [vmem:[#allocation6 + $0x49c] sm:$0xf]  ;;  %v6579_v55 = vor.u32 %v9262_v32, %v6576_v33 }
 0x22c   :  { %3618 = vmatpush.bf16.msra.mxu3 %v6899_v60  ;;  %v6832_v51 = vld [vmem:[#allocation6 + $0x4b8] sm:$0xf0]  ;;  %3591 = vmatpush.bf16.msra.mxu1 %v6355_v17 }
 0x22d   :  { %v9190_v61 = vld [vmem:[#allocation6 + $0x5c] sm:$0xf]  ;;  %v6835_v60 = vor.u32 %v9326_v49, %v6832_v51  ;;  %v10410_v49 = vpop.f32.mrf.mxu0 }
 0x22e   :  { %3577 = vmatpush.bf16.msra.mxu0 %v7887_v15  ;;  %3605 = vmatpush.bf16.msra.mxu2 %v6611_v19  ;;  %v6288_v62 = vld [vmem:[#allocation6 + $0x78] sm:$0xf0]  ;;  %v10408_v15 = vpop.f32.mrf.mxu2 }
 0x22f   :  { %v9254_v1 = vld [vmem:[#allocation6 + $0x25c] sm:$0xf]  ;;  %v6291_v17 = vor.u32 %v9190_v61, %v6288_v62 }
 0x230   :  { %3619 = vmatpush.bf16.msra.mxu3 %v6867_v16  ;;  %v6544_v10 = vld [vmem:[#allocation6 + $0x278] sm:$0xf0]  ;;  %3592 = vmatpush.bf16.msra.mxu1 %v6323_v35  ;;  %v7791_v35 = vor.u32 %v9570_v34, %v7790_v63 }
 0x231   :  { %v9318_v13 = vld [vmem:[#allocation6 + $0x45c] sm:$0xf]  ;;  %v6547_v19 = vor.u32 %v9254_v1, %v6544_v10  ;;  %v10414_v1 = vpop.f32.mrf.mxu3 }
 0x232   :  { %3578 = vmatpush.bf16.msra.mxu0 %v7855_v53  ;;  %3606 = vmatpush.bf16.msra.mxu2 %v6579_v55  ;;  %v9182_v21 = vld [vmem:[#allocation6 + $0x1c] sm:$0xf]  ;;  %v6803_v16 = vor.u32 %v9318_v13, %v6800_v8 }
 0x233   :  { %v6256_v22 = vld [vmem:[#allocation6 + $0x38] sm:$0xf0] }
 0x234   :  { %v9246_v26 = vld [vmem:[#allocation6 + $0x21c] sm:$0xf]  ;;  %3620 = vmatpush.bf16.msra.mxu3 %v6835_v60  ;;  %3593 = vmatpush.bf16.msra.mxu1 %v6291_v17  ;;  %v6259_v8 = vor.u32 %v9182_v21, %v6256_v22  ;;  %v7219_v21 = vor.u32 %v9422_v9, %v7216_v14 }
 0x235   :  { %v6512_v29 = vld [vmem:[#allocation6 + $0x238] sm:$0xf0] }
 0x236   :  { %v9310_v32 = vld [vmem:[#allocation6 + $0x41c] sm:$0xf]  ;;  %3579 = vmatpush.bf16.msra.mxu0 %v7823_v46  ;;  %3607 = vmatpush.bf16.msra.mxu2 %v6547_v19  ;;  %v6515_v60 = vor.u32 %v9246_v26, %v6512_v29  ;;  %v10416_v22 = vpop.f32.mrf.mxu2 }
 0x237   :  { %v6768_v33 = vld [vmem:[#allocation6 + $0x438] sm:$0xf0] }
 0x238   :  { %v9430_v51 = vld [vmem:[#allocation6 + $0x7dc] sm:$0xf]  ;;  %3621 = vmatpush.bf16.msra.mxu3 %v6803_v16  ;;  %v6771_v20 = vor.u32 %v9310_v32, %v6768_v33  ;;  %3594 = vmatpush.bf16.msra.mxu1 %v6259_v8 }
 0x239   :  { %v7248_v53 = vld [vmem:[#allocation6 + $0x7f8] sm:$0xf0] }
 0x23a   :  { %v9494_v56 = vld [vmem:[#allocation6 + $0x9dc] sm:$0xf]  ;;  %v7251_v44 = vor.u32 %v9430_v51, %v7248_v53  ;;  %3580 = vmatpush.bf16.msra.mxu0 %v7791_v35  ;;  %3608 = vmatpush.bf16.msra.mxu2 %v6515_v60 }
 0x23b   :  { %v7504_v55 = vld [vmem:[#allocation6 + $0x9f8] sm:$0xf0]  ;;  %3595 = vmatmul.bf16.vlgmr.msra.gmra.mxu1 %v10263_v57 }
 0x23c   :  { %v9558_v61 = vld [vmem:[#allocation6 + $0xbdc] sm:$0xf]  ;;  %v7507_v2 = vor.u32 %v9494_v56, %v7504_v55  ;;  %3622 = vmatpush.bf16.msra.mxu3 %v6771_v20  ;;  %v10419_v55 = vpop.f32.mrf.mxu0 }
 0x23d   :  { %v7760_v62 = vld [vmem:[#allocation6 + $0xbf8] sm:$0xf0]  ;;  %3581 = vmatmul.bf16.vlgmr.msra.gmra.mxu0 %v10277_v41  ;;  %3609 = vmatmul.bf16.vlgmr.msra.gmra.mxu2 %v10269_v11 }
 0x23e   :  { %v9622_v10 = vld [vmem:[#allocation6 + $0xddc] sm:$0xf]  ;;  %v7763_v28 = vor.u32 %v9558_v61, %v7760_v62  ;;  %3629 = vmatpush.bf16.msrb.mxu0 %v7251_v44  ;;  %3643 = vmatpush.bf16.msrb.mxu1 %v7507_v2  ;;  %v10423_v2 = vpop.f32.mrf.mxu1 }
 0x23f   :  { %v8016_v13 = vld [vmem:[#allocation6 + $0xdf8] sm:$0xf0]  ;;  %3623 = vmatmul.bf16.vlgmr.msra.gmra.mxu3 %v10265_v0 }
 0x240   :  { %v9486_v46 = vld [vmem:[#allocation6 + $0x99c] sm:$0xf]  ;;  %v8019_v63 = vor.u32 %v9622_v10, %v8016_v13  ;;  %3657 = vmatpush.bf16.msrb.mxu2 %v7763_v28 }
 0x241   :  { %v7472_v34 = vld [vmem:[#allocation6 + $0x9b8] sm:$0xf0] }
 0x242   :  { %v9550_v42 = vld [vmem:[#allocation6 + $0xb9c] sm:$0xf]  ;;  %v7475_v26 = vor.u32 %v9486_v46, %v7472_v34  ;;  %3671 = vmatpush.bf16.msrb.mxu3 %v8019_v63  ;;  %3630 = vmatpush.bf16.msrb.mxu0 %v7219_v21  ;;  %v10428_v46 = vld [vmem:[#allocation8] sm:$0xff] }
 0x243   :  { %v7728_v37 = vld [vmem:[#allocation6 + $0xbb8] sm:$0xf0]  ;;  %v612_v57 = vperm.slane %v10428_v46, 3 }
 0x244   :  { %v9614_v17 = vld [vmem:[#allocation6 + $0xd9c] sm:$0xf]  ;;  %v7731_v16 = vor.u32 %v9550_v42, %v7728_v37  ;;  %v10426_v42 = vpop.f32.mrf.mxu3  ;;  %3644 = vmatpush.bf16.msrb.mxu1 %v7475_v26 }
 0x245   :  { %v7984_v19 = vld [vmem:[#allocation6 + $0xdb8] sm:$0xf0] }
 0x246   :  { %v9414_v29 = vld [vmem:[#allocation6 + $0x75c] sm:$0xf]  ;;  %v7987_v51 = vor.u32 %v9614_v17, %v7984_v19  ;;  %3658 = vmatpush.bf16.msrb.mxu2 %v7731_v16 }
 0x247   :  { %v7184_v32 = vld [vmem:[#allocation6 + $0x778] sm:$0xf0] }
 0x248   :  { %v9478_v33 = vld [vmem:[#allocation6 + $0x95c] sm:$0xf]  ;;  %v7187_v37 = vor.u32 %v9414_v29, %v7184_v32  ;;  %3672 = vmatpush.bf16.msrb.mxu3 %v7987_v51  ;;  %v10775_v51 = vperm.slane %v10293_v54, 0 }
 0x249   :  { %v7440_v53 = vld [vmem:[#allocation6 + $0x978] sm:$0xf0] }
 0x24a   :  { %v9542_v56 = vld [vmem:[#allocation6 + $0xb5c] sm:$0xf]  ;;  %v7443_v28 = vor.u32 %v9478_v33, %v7440_v53  ;;  %3631 = vmatpush.bf16.msrb.mxu0 %v7187_v37  ;;  %v2913_v53 = vadd.f32 %v10304_v30, %v10775_v51  ;;  %v10776_v37 = vperm.slane %v10293_v54, 1 }
 0x24b   :  { %v7696_v35 = vld [vmem:[#allocation6 + $0xb78] sm:$0xf0] }
 0x24c   :  { %v9606_v9 = vld [vmem:[#allocation6 + $0xd5c] sm:$0xf]  ;;  %v7699_v20 = vor.u32 %v9542_v56, %v7696_v35  ;;  %3645 = vmatpush.bf16.msrb.mxu1 %v7443_v28  ;;  %v10434_v56 = vpop.f32.mrf.mxu2  ;;  %v10436_v35 = vpop.f32.mrf.mxu0  ;;  %v3011_v28 = vadd.f32 %v10332_v12, %v10776_v37  ;;  %v2927_v12 = vadd.f32 %v10306_v43, %v2913_v53 }
 0x24d   :  { %v7952_v14 = vld [vmem:[#allocation6 + $0xd78] sm:$0xf0]  ;;  %v10445_v37 = vpop.f32.mrf.mxu3 }
 0x24e   :  { %v9406_v44 = vld [vmem:[#allocation6 + $0x71c] sm:$0xf]  ;;  %v7955_v11 = vor.u32 %v9606_v9, %v7952_v14  ;;  %3659 = vmatpush.bf16.msrb.mxu2 %v7699_v20  ;;  %v10441_v20 = vpop.f32.mrf.mxu1 }
 0x24f   :  { %v7152_v61 = vld [vmem:[#allocation6 + $0x738] sm:$0xf0] }
 0x250   :  { %v9470_v62 = vld [vmem:[#allocation6 + $0x91c] sm:$0xf]  ;;  %v7155_v63 = vor.u32 %v9406_v44, %v7152_v61  ;;  %3673 = vmatpush.bf16.msrb.mxu3 %v7955_v11  ;;  %v3205_v61 = vadd.f32 %v10393_v18, %v612_v57  ;;  %v3025_v18 = vadd.f32 %v10336_v4, %v3011_v28  ;;  %v2941_v4 = vadd.f32 %v10311_v59, %v2927_v12 }
 0x251   :  { %v7408_v8 = vld [vmem:[#allocation6 + $0x938] sm:$0xf0] }
 0x252   :  { %v9534_v60 = vld [vmem:[#allocation6 + $0xb1c] sm:$0xf]  ;;  %v7411_v34 = vor.u32 %v9470_v62, %v7408_v8  ;;  %3632 = vmatpush.bf16.msrb.mxu0 %v7155_v63 }
 0x253   :  { %v7664_v0 = vld [vmem:[#allocation6 + $0xb38] sm:$0xf0] }
 0x254   :  { %v9598_v10 = vld [vmem:[#allocation6 + $0xd1c] sm:$0xf]  ;;  %v7667_v17 = vor.u32 %v9534_v60, %v7664_v0  ;;  %3646 = vmatpush.bf16.msrb.mxu1 %v7411_v34  ;;  %v3207_v34 = vadd.f32 %v10402_v40, %v612_v57  ;;  %v10451_v28 = vpop.f32.mrf.mxu2 }
 0x255   :  { %v7920_v13 = vld [vmem:[#allocation6 + $0xd38] sm:$0xf0] }
 0x256   :  { %v9398_v19 = vld [vmem:[#allocation6 + $0x6dc] sm:$0xf]  ;;  %v7923_v16 = vor.u32 %v9598_v10, %v7920_v13  ;;  %3660 = vmatpush.bf16.msrb.mxu2 %v7667_v17 }
 0x257   :  { %v7120_v21 = vld [vmem:[#allocation6 + $0x6f8] sm:$0xf0] }
 0x258   :  { %v9462_v26 = vld [vmem:[#allocation6 + $0x8dc] sm:$0xf]  ;;  %v7123_v44 = vor.u32 %v9398_v19, %v7120_v21  ;;  %3674 = vmatpush.bf16.msrb.mxu3 %v7923_v16  ;;  %v3219_v21 = vadd.f32 %v10400_v6, %v3205_v61  ;;  %v3039_v6 = vadd.f32 %v10338_v7, %v3025_v18  ;;  %v10465_v18 = vpop.f32.mrf.mxu3 }
 0x259   :  { %v7376_v29 = vld [vmem:[#allocation6 + $0x8f8] sm:$0xf0] }
 0x25a   :  { %v9526_v32 = vld [vmem:[#allocation6 + $0xadc] sm:$0xf]  ;;  %v7379_v62 = vor.u32 %v9462_v26, %v7376_v29  ;;  %3633 = vmatpush.bf16.msrb.mxu0 %v7123_v44  ;;  %v10777_v44 = vperm.slane %v10293_v54, 2  ;;  %v10461_v54 = vpop.f32.mrf.mxu1 }
 0x25b   :  { %v7632_v33 = vld [vmem:[#allocation6 + $0xaf8] sm:$0xf0] }
 0x25c   :  { %v9590_v9 = vld [vmem:[#allocation6 + $0xcdc] sm:$0xf]  ;;  %v7635_v30 = vor.u32 %v9526_v32, %v7632_v33  ;;  %3647 = vmatpush.bf16.msrb.mxu1 %v7379_v62  ;;  %v3109_v61 = vadd.f32 %v10376_v3, %v10777_v44  ;;  %v3221_v62 = vadd.f32 %v10408_v15, %v3207_v34  ;;  %v8134_v34 = vld [vmem:[#allocation9 + $0xe0] sm:$0xf] }
 0x25d   :  { %v7888_v14 = vld [vmem:[#allocation6 + $0xcf8] sm:$0xf0]  ;;  %v8118_v44 = vld [vmem:[#allocation9 + $0xc0] sm:$0xf] }
 0x25e   :  { %v9390_v11 = vld [vmem:[#allocation6 + $0x69c] sm:$0xf]  ;;  %v7891_v0 = vor.u32 %v9590_v9, %v7888_v14  ;;  %3661 = vmatpush.bf16.msrb.mxu2 %v7635_v30 }
 0x25f   :  { %v7088_v8 = vld [vmem:[#allocation6 + $0x6b8] sm:$0xf0] }
 0x260   :  { %v9454_v60 = vld [vmem:[#allocation6 + $0x89c] sm:$0xf]  ;;  %v7091_v17 = vor.u32 %v9390_v11, %v7088_v8  ;;  %3675 = vmatpush.bf16.msrb.mxu3 %v7891_v0  ;;  %v10459_v0 = vpop.f32.mrf.mxu0 }
 0x261   :  { %v7344_v10 = vld [vmem:[#allocation6 + $0x8b8] sm:$0xf0] }
 0x262   :  { %v9518_v13 = vld [vmem:[#allocation6 + $0xa9c] sm:$0xf]  ;;  %v7347_v26 = vor.u32 %v9454_v60, %v7344_v10  ;;  %3634 = vmatpush.bf16.msrb.mxu0 %v7091_v17  ;;  %v3233_v60 = vadd.f32 %v10406_v47, %v3219_v21  ;;  %v3053_v47 = vadd.f32 %v10344_v31, %v3039_v6  ;;  %v9657_v17 = vld [vmem:[#allocation9 + $0xec] sm:$0xf0]  ;;  %v8262_v21 = vld [vmem:[#allocation9 + $0x1e0] sm:$0xf] }
 0x263   :  { %v7600_v51 = vld [vmem:[#allocation6 + $0xab8] sm:$0xf0] }
 0x264   :  { %v9582_v63 = vld [vmem:[#allocation6 + $0xc9c] sm:$0xf]  ;;  %v7603_v16 = vor.u32 %v9518_v13, %v7600_v51  ;;  %3648 = vmatpush.bf16.msrb.mxu1 %v7347_v26  ;;  %v3123_v26 = vadd.f32 %v10378_v24, %v3109_v61  ;;  %v9653_v61 = vld [vmem:[#allocation9 + $0xcc] sm:$0xf0] }
 0x265   :  { %v7856_v19 = vld [vmem:[#allocation6 + $0xcb8] sm:$0xf0] }
 0x266   :  { %v9382_v29 = vld [vmem:[#allocation6 + $0x65c] sm:$0xf]  ;;  %v7859_v43 = vor.u32 %v9582_v63, %v7856_v19  ;;  %3662 = vmatpush.bf16.msrb.mxu2 %v7603_v16  ;;  %v2955_v19 = vadd.f32 %v10317_v52, %v2941_v4  ;;  %v3235_v16 = vadd.f32 %v10414_v1, %v3221_v62  ;;  %v3067_v1 = vadd.f32 %v10346_v45, %v3053_v47  ;;  %v8246_v62 = vld [vmem:[#allocation9 + $0x1c0] sm:$0xf]  ;;  %v10483_v47 = vpop.f32.mrf.mxu1 }
 0x267   :  { %v7056_v32 = vld [vmem:[#allocation6 + $0x678] sm:$0xf0]  ;;  %v8502_v45 = vld [vmem:[#allocation9 + $0x3c0] sm:$0xf] }
 0x268   :  { %v9446_v33 = vld [vmem:[#allocation6 + $0x85c] sm:$0xf]  ;;  %v7059_v30 = vor.u32 %v9382_v29, %v7056_v32  ;;  %3676 = vmatpush.bf16.msrb.mxu3 %v7859_v43  ;;  %v9689_v32 = vld [vmem:[#allocation9 + $0x1ec] sm:$0xf0]  ;;  %v2969_v24 = vadd.f32 %v10319_v39, %v2955_v19 }
 0x269   :  { %v7312_v53 = vld [vmem:[#allocation6 + $0x878] sm:$0xf0]  ;;  %v9721_v43 = vld [vmem:[#allocation9 + $0x2ec] sm:$0xf0] }
 0x26a   :  { %v9510_v9 = vld [vmem:[#allocation6 + $0xa5c] sm:$0xf]  ;;  %v7315_v59 = vor.u32 %v9446_v33, %v7312_v53  ;;  %3635 = vmatpush.bf16.msrb.mxu0 %v7059_v30  ;;  %v8390_v33 = vld [vmem:[#allocation9 + $0x2e0] sm:$0xf]  ;;  %v3247_v53 = vadd.f32 %v10410_v49, %v3233_v60  ;;  %v3137_v49 = vadd.f32 %v10384_v27, %v3123_v26  ;;  %v3249_v30 = vadd.f32 %v10419_v55, %v3235_v16 }
 0x26b   :  { %v7568_v14 = vld [vmem:[#allocation6 + $0xa78] sm:$0xf0]  ;;  %v8391_v6 = vor.u32 %v9721_v43, %v8390_v33  ;;  %v8374_v60 = vld [vmem:[#allocation9 + $0x2c0] sm:$0xf]  ;;  %v8119_v27 = vor.u32 %v9653_v61, %v8118_v44  ;;  %v2983_v55 = vadd.f32 %v10322_v48, %v2969_v24  ;;  %v9681_v48 = vld [vmem:[#allocation9 + $0x1ac] sm:$0xf0]  ;;  %v3163_v16 = vadd.f32 %v10380_v5, %v10366_v36 }
 0x26c   :  { %v9574_v40 = vld [vmem:[#allocation6 + $0xc5c] sm:$0xf]  ;;  %v7571_v10 = vor.u32 %v9510_v9, %v7568_v14  ;;  %3649 = vmatpush.bf16.msrb.mxu1 %v7315_v59  ;;  %v8518_v9 = vld [vmem:[#allocation9 + $0x3e0] sm:$0xf]  ;;  %v9753_v14 = vld [vmem:[#allocation9 + $0x3ec] sm:$0xf0]  ;;  %v3261_v39 = vadd.f32 %v10412_v58, %v3247_v53  ;;  %v3263_v19 = vadd.f32 %v10423_v2, %v3249_v30 }
 0x26d   :  { %v7824_v57 = vld [vmem:[#allocation6 + $0xc78] sm:$0xf0]  ;;  %v9717_v59 = vld [vmem:[#allocation9 + $0x2cc] sm:$0xf0]  ;;  %v8230_v58 = vld [vmem:[#allocation9 + $0x1a0] sm:$0xf] }
 0x26e   :  { %v9374_v11 = vld [vmem:[#allocation6 + $0x61c] sm:$0xf]  ;;  %v7827_v3 = vor.u32 %v9574_v40, %v7824_v57  ;;  %3663 = vmatpush.bf16.msrb.mxu2 %v7571_v10  ;;  %v8135_v40 = vor.u32 %v9657_v17, %v8134_v34  ;;  %v8263_v57 = vor.u32 %v9689_v32, %v8262_v21  ;;  %v3081_v10 = vadd.f32 %v10357_v38, %v3067_v1  ;;  %v8102_v38 = vld [vmem:[#allocation9 + $0xa0] sm:$0xf]  ;;  %v9713_v21 = vld [vmem:[#allocation9 + $0x2ac] sm:$0xf0]  ;;  %v10490_v32 = vpop.f32.mrf.mxu3 }
 0x26f   :  { %v7024_v8 = vld [vmem:[#allocation6 + $0x638] sm:$0xf0]  ;;  %v8358_v17 = vld [vmem:[#allocation9 + $0x2a0] sm:$0xf]  ;;  %v9745_v43 = vld [vmem:[#allocation9 + $0x3ac] sm:$0xf0]  ;;  %v8231_v5 = vor.u32 %v9681_v48, %v8230_v58 }
 0x270   :  { %v9438_v13 = vld [vmem:[#allocation6 + $0x81c] sm:$0xf]  ;;  %v7027_v29 = vor.u32 %v9374_v11, %v7024_v8  ;;  %3677 = vmatpush.bf16.msrb.mxu3 %v7827_v3  ;;  %v8519_v11 = vor.u32 %v9753_v14, %v8518_v9  ;;  %v9685_v8 = vld [vmem:[#allocation9 + $0x1cc] sm:$0xf0]  ;;  %v3095_v26 = vadd.f32 %v10359_v50, %v3081_v10  ;;  %v8486_v33 = vld [vmem:[#allocation9 + $0x3a0] sm:$0xf] }
 0x271   :  { %v7280_v7 = vld [vmem:[#allocation6 + $0x838] sm:$0xf0]  ;;  %v8247_v3 = vor.u32 %v9685_v8, %v8246_v62  ;;  %v8086_v9 = vld [vmem:[#allocation9 + $0x80] sm:$0xf]  ;;  %v9645_v14 = vld [vmem:[#allocation9 + $0x8c] sm:$0xf0] }
 0x272   :  { %v9502_v51 = vld [vmem:[#allocation6 + $0xa1c] sm:$0xf]  ;;  %v7283_v52 = vor.u32 %v9438_v13, %v7280_v7  ;;  %3636 = vmatpush.bf16.msrb.mxu0 %v7027_v29  ;;  %v10476_v13 = vpop.f32.mrf.mxu2  ;;  %v9749_v7 = vld [vmem:[#allocation9 + $0x3cc] sm:$0xf0]  ;;  %v3275_v29 = vadd.f32 %v10416_v22, %v3261_v39  ;;  %v8359_v22 = vor.u32 %v9713_v21, %v8358_v17  ;;  %v8342_v1 = vld [vmem:[#allocation9 + $0x280] sm:$0xf] }
 0x273   :  { %v7536_v15 = vld [vmem:[#allocation6 + $0xa38] sm:$0xf0]  ;;  %v8503_v34 = vor.u32 %v9749_v7, %v8502_v45  ;;  %v9677_v24 = vld [vmem:[#allocation9 + $0x18c] sm:$0xf0]  ;;  %v8470_v61 = vld [vmem:[#allocation9 + $0x380] sm:$0xf] }
 0x274   :  { %v9566_v12 = vld [vmem:[#allocation6 + $0xc1c] sm:$0xf]  ;;  %v7539_v31 = vor.u32 %v9502_v51, %v7536_v15  ;;  %3650 = vmatpush.bf16.msrb.mxu1 %v7283_v52  ;;  %v10479_v51 = vpop.f32.mrf.mxu0  ;;  %v8375_v15 = vor.u32 %v9717_v59, %v8374_v60  ;;  %v3277_v52 = vadd.f32 %v10434_v56, %v3263_v19  ;;  %v10782_v56 = vld [vmem:[#allocation28_spill] sm:$0xff]  ;;  %v3289_v44 = vadd.f32 %v10426_v42, %v3275_v29  ;;  %v10785_v10 = vld [vmem:[#allocation30_spill] sm:$0xff] }
 0x275   :  { %v7792_v63 = vld [vmem:[#allocation6 + $0xc38] sm:$0xf0]  ;;  %3637 = vmatmul.bf16.vlgmr.msrb.gmra.mxu0 %v10272_v23  ;;  %v9741_v62 = vld [vmem:[#allocation9 + $0x38c] sm:$0xf0]  ;;  %v8087_v59 = vor.u32 %v9645_v14, %v8086_v9 }
 0x276   :  { %v7795_v4 = vor.u32 %v9566_v12, %v7792_v63  ;;  %3664 = vmatpush.bf16.msrb.mxu2 %v7539_v31  ;;  %5319 = vmatpush.bf16.msra.mxu0 %v8135_v40  ;;  %v9649_v12 = vld [vmem:[#allocation9 + $0xac] sm:$0xf0]  ;;  %v3151_v63 = vadd.f32 %v10382_v25, %v3137_v49  ;;  %v10781_v31 = vld [vmem:[#allocation26_spill] sm:$0xff]  ;;  %v8487_v40 = vor.u32 %v9745_v43, %v8486_v33  ;;  %v10783_v49 = vld [vmem:[#allocation27_spill] sm:$0xff]  ;;  %v3400_v21 = vpop.f32.mrf.mxu3  ;;  %v10522_v33 = vpop.f32.mrf.mxu1 }
 0x277   :  { %v10778_v25 = vld [vmem:[#allocation24_spill] sm:$0xff]  ;;  %v10779_v2 = vld [vmem:[#allocation25_spill] sm:$0xff]  ;;  %v8103_v50 = vor.u32 %v9649_v12, %v8102_v38  ;;  %v2997_v36 = vadd.f32 %v10781_v31, %v2983_v55  ;;  %v3693_v30 = vunpack.c.l.bf16 %v10783_v49  ;;  %v3291_v60 = vadd.f32 %v10445_v37, %v3277_v52  ;;  %v8070_v55 = vld [vmem:[#allocation9 + $0x60] sm:$0xf] }
 0x278   :  { %3678 = vmatpush.bf16.msrb.mxu3 %v7795_v4  ;;  %5333 = vmatpush.bf16.msra.mxu1 %v8263_v57  ;;  %v10780_v23 = vld [vmem:[#allocation29_spill] sm:$0xff]  ;;  %v8214_v4 = vld [vmem:[#allocation9 + $0x180] sm:$0xf]  ;;  %v8471_v12 = vor.u32 %v9741_v62, %v8470_v61  ;;  %v3694_v19 = vunpack.c.h.bf16 %v10783_v49 }
 0x279   :  { %3651 = vmatmul.bf16.vlgmr.msrb.gmra.mxu1 %v10778_v25  ;;  %3665 = vmatmul.bf16.vlgmr.msrb.gmra.mxu2 %v10779_v2  ;;  %v3165_v53 = vadd.f32 %v10780_v23, %v3151_v63  ;;  %v9709_v57 = vld [vmem:[#allocation9 + $0x28c] sm:$0xf0]  ;;  %v8215_v7 = vor.u32 %v9677_v24, %v8214_v4  ;;  %v8326_v63 = vld [vmem:[#allocation9 + $0x260] sm:$0xf]  ;;  %v10517_v29 = vmul.f32 0.20019531, %v3693_v30  ;;  %v613_v2 = vperm.slane %v10428_v46, 4 }
 0x27a   :  { %5347 = vmatpush.bf16.msra.mxu2 %v8391_v6  ;;  %5320 = vmatpush.bf16.msra.mxu0 %v8119_v27  ;;  %v10498_v6 = vpack.c.bf16 %v3095_v26, %v2997_v36  ;;  %v10506_v45 = vpop.f32.mrf.mxu2  ;;  %v8343_v27 = vor.u32 %v9709_v57, %v8342_v1  ;;  %v9641_v42 = vld [vmem:[#allocation9 + $0x6c] sm:$0xf0]  ;;  %v8454_v26 = vld [vmem:[#allocation9 + $0x360] sm:$0xf]  ;;  %v10526_v14 = vmul.f32 0.20019531, %v3694_v19 }
 0x27b   :  { %3679 = vmatmul.bf16.vlgmr.msrb.gmra.mxu3 %v10277_v41  ;;  %v3177_v41 = vadd.f32 %v10782_v56, %v3163_v16  ;;  %v9673_v58 = vld [vmem:[#allocation9 + $0x16c] sm:$0xf0]  ;;  %v8071_v43 = vor.u32 %v9641_v42, %v8070_v55  ;;  %v8054_v52 = vld [vmem:[#allocation9 + $0x40] sm:$0xf] }
 0x27c   :  { %5361 = vmatpush.bf16.msra.mxu3 %v8519_v11  ;;  %5334 = vmatpush.bf16.msra.mxu1 %v8247_v3  ;;  %v10784_v11 = vld [vmem:[#allocation31_spill] sm:$0xff]  ;;  %v9705_v37 = vld [vmem:[#allocation9 + $0x26c] sm:$0xf0]  ;;  %v10513_v17 = vpop.f32.mrf.mxu0  ;;  %v3702_v4 = vunpack.c.h.bf16 %v10498_v6 }
 0x27d   :  { %v3179_v8 = vadd.f32 %v10784_v11, %v3165_v53  ;;  %v3191_v39 = vadd.f32 %v10785_v10, %v3177_v41  ;;  %v8198_v3 = vld [vmem:[#allocation9 + $0x160] sm:$0xf]  ;;  %v9737_v16 = vld [vmem:[#allocation9 + $0x36c] sm:$0xf0]  ;;  %v8327_v53 = vor.u32 %v9705_v37, %v8326_v63  ;;  %v3303_v10 = vadd.f32 %v10436_v35, %v613_v2 }
 0x27e   :  { %5348 = vmatpush.bf16.msra.mxu2 %v8375_v15  ;;  %5321 = vmatpush.bf16.msra.mxu0 %v8103_v50  ;;  %v10786_v15 = vld [vmem:[#allocation32_spill] sm:$0xff]  ;;  %v8199_v23 = vor.u32 %v9673_v58, %v8198_v3  ;;  %v8182_v31 = vld [vmem:[#allocation9 + $0x140] sm:$0xf]  ;;  %v8455_v36 = vor.u32 %v9737_v16, %v8454_v26  ;;  %v3718_v42 = vmul.f32 0.20019531, %v3702_v4  ;;  %v3428_v26 = vpop.f32.mrf.mxu1 }
 0x27f   :  { %v3193_v38 = vadd.f32 %v10786_v15, %v3179_v8  ;;  %v10511_v48 = vpack.c.bf16 %v3289_v44, %v3191_v39  ;;  %v9637_v50 = vld [vmem:[#allocation9 + $0x4c] sm:$0xf0]  ;;  %v8438_v1 = vld [vmem:[#allocation9 + $0x340] sm:$0xf]  ;;  %v614_v44 = vperm.slane %v10428_v46, 5 }
 0x280   :  { %5362 = vmatpush.bf16.msra.mxu3 %v8503_v34  ;;  %5335 = vmatpush.bf16.msra.mxu1 %v8231_v5  ;;  %v3701_v34 = vunpack.c.l.bf16 %v10498_v6  ;;  %v9669_v5 = vld [vmem:[#allocation9 + $0x14c] sm:$0xf0]  ;;  %v8055_v61 = vor.u32 %v9637_v50, %v8054_v52  ;;  %v8038_v8 = vld [vmem:[#allocation9 + $0x20] sm:$0xf] }
 0x281   :  { %v10519_v25 = vpack.c.bf16 %v3291_v60, %v3193_v38  ;;  %v9701_v9 = vld [vmem:[#allocation9 + $0x24c] sm:$0xf0]  ;;  %v3695_v24 = vunpack.c.l.bf16 %v10511_v48  ;;  %v8183_v62 = vor.u32 %v9669_v5, %v8182_v31  ;;  %v3401_v35 = vadd.f32 %v3400_v21, %v614_v44  ;;  %v8742_v46 = vld [vmem:[#allocation9 + $0x5a0] sm:$0xf] }
 0x282   :  { %5349 = vmatpush.bf16.msra.mxu2 %v8359_v22  ;;  %5322 = vmatpush.bf16.msra.mxu0 %v8087_v59  ;;  %v8310_v22 = vld [vmem:[#allocation9 + $0x240] sm:$0xf]  ;;  %v9733_v57 = vld [vmem:[#allocation9 + $0x34c] sm:$0xf0]  ;;  %v10540_v15 = vpop.f32.mrf.mxu2 }
 0x283   :  { %v3703_v56 = vunpack.c.l.bf16 %v10519_v25  ;;  %v3704_v41 = vunpack.c.h.bf16 %v10519_v25  ;;  %v8311_v11 = vor.u32 %v9701_v9, %v8310_v22  ;;  %v9633_v60 = vld [vmem:[#allocation9 + $0x2c] sm:$0xf0]  ;;  %v8166_v59 = vld [vmem:[#allocation9 + $0x120] sm:$0xf]  ;;  %v8439_v39 = vor.u32 %v9733_v57, %v8438_v1 }
 0x284   :  { %5363 = vmatpush.bf16.msra.mxu3 %v8487_v40  ;;  %5336 = vmatpush.bf16.msra.mxu1 %v8215_v7  ;;  %v3717_v40 = vmul.f32 0.20019531, %v3701_v34  ;;  %v9665_v7 = vld [vmem:[#allocation9 + $0x12c] sm:$0xf0]  ;;  %v3711_v3 = vmul.f32 0.20019531, %v3695_v24  ;;  %v3414_v38 = vpop.f32.mrf.mxu0  ;;  %v8039_v16 = vor.u32 %v9633_v60, %v8038_v8  ;;  %v3317_v22 = vadd.f32 %v10441_v20, %v3303_v10  ;;  %v8278_v1 = vld [vmem:[#allocation9 + $0x200] sm:$0xf] }
 0x285   :  { %v9697_v55 = vld [vmem:[#allocation9 + $0x22c] sm:$0xf0]  ;;  %v3719_v63 = vmul.f32 0.20019531, %v3703_v56  ;;  %v3720_v37 = vmul.f32 0.20019531, %v3704_v41  ;;  %v8167_v52 = vor.u32 %v9665_v7, %v8166_v59  ;;  %v8406_v57 = vld [vmem:[#allocation9 + $0x300] sm:$0xf]  ;;  %v3758_v59 = vmax.f32 %v3702_v4, %v3718_v42 }
 0x286   :  { %5350 = vmatpush.bf16.msra.mxu2 %v8343_v27  ;;  %5323 = vmatpush.bf16.msra.mxu0 %v8071_v43  ;;  %v8294_v27 = vld [vmem:[#allocation9 + $0x220] sm:$0xf]  ;;  %v9729_v58 = vld [vmem:[#allocation9 + $0x32c] sm:$0xf0] }
 0x287   :  { %v8022_v43 = vld [vmem:[#allocation9] sm:$0xf]  ;;  %v8295_v50 = vor.u32 %v9697_v55, %v8294_v27  ;;  %v9629_v31 = vld [vmem:[#allocation9 + $0xc] sm:$0xf0]  ;;  %v3759_v7 = vmax.f32 %v3703_v56, %v3719_v63  ;;  %v3415_v27 = vadd.f32 %v3414_v38, %v3401_v35  ;;  %v3751_v56 = vmax.f32 %v3695_v24, %v3711_v3  ;;  %v3430_v3 = vpop.f32.mrf.mxu1 }
 0x288   :  { %5364 = vmatpush.bf16.msra.mxu3 %v8471_v12  ;;  %5337 = vmatpush.bf16.msra.mxu1 %v8199_v23  ;;  %v8422_v12 = vld [vmem:[#allocation9 + $0x320] sm:$0xf]  ;;  %v3696_v23 = vunpack.c.h.bf16 %v10511_v48  ;;  %v9661_v5 = vld [vmem:[#allocation9 + $0x10c] sm:$0xf0]  ;;  %v8023_v20 = vor.u32 %v9629_v31, %v8022_v43  ;;  %v3760_v42 = vmax.f32 %v3704_v41, %v3720_v37 }
 0x289   :  { %v8423_v9 = vor.u32 %v9729_v58, %v8422_v12  ;;  %v9693_v21 = vld [vmem:[#allocation9 + $0x20c] sm:$0xf0]  ;;  %v8646_v8 = vld [vmem:[#allocation9 + $0x4e0] sm:$0xf]  ;;  %v3305_v12 = vadd.f32 %v10459_v0, %v613_v2  ;;  %v3429_v49 = vadd.f32 %v3428_v26, %v3415_v27 }
 0x28a   :  { %5351 = vmatpush.bf16.msra.mxu2 %v8327_v53  ;;  %5324 = vmatpush.bf16.msra.mxu0 %v8055_v61  ;;  %v3402_v53 = vpop.f32.mrf.mxu3  ;;  %v3749_v61 = vmax.f32 %v3693_v30, %v10517_v29  ;;  %v9785_v60 = vld [vmem:[#allocation9 + $0x4ec] sm:$0xf0]  ;;  %v8774_v10 = vld [vmem:[#allocation9 + $0x5e0] sm:$0xf]  ;;  %v3712_v55 = vmul.f32 0.20019531, %v3696_v23  ;;  %v8279_v6 = vor.u32 %v9693_v21, %v8278_v1  ;;  %v3331_v29 = vadd.f32 %v10451_v28, %v3317_v22  ;;  %v3442_v0 = vpop.f32.mrf.mxu2 }
 0x28b   :  { %v8630_v38 = vld [vmem:[#allocation9 + $0x4c0] sm:$0xf]  ;;  %v9781_v58 = vld [vmem:[#allocation9 + $0x4cc] sm:$0xf0]  ;;  %v3319_v48 = vadd.f32 %v10461_v54, %v3305_v12  ;;  %v3403_v41 = vadd.f32 %v3402_v53, %v614_v44 }
 0x28c   :  { %5365 = vmatpush.bf16.msra.mxu3 %v8455_v36  ;;  %5338 = vmatpush.bf16.msra.mxu1 %v8183_v62  ;;  %v8150_v36 = vld [vmem:[#allocation9 + $0x100] sm:$0xf]  ;;  %v3757_v62 = vmax.f32 %v3701_v34, %v3717_v40  ;;  %v3750_v34 = vmax.f32 %v3694_v19, %v10526_v14  ;;  %v8647_v40 = vor.u32 %v9785_v60, %v8646_v8  ;;  %v9813_v19 = vld [vmem:[#allocation9 + $0x5cc] sm:$0xf0]  ;;  %v3416_v24 = vpop.f32.mrf.mxu0 }
 0x28d   :  { %v8151_v30 = vor.u32 %v9661_v5, %v8150_v36  ;;  %v8758_v28 = vld [vmem:[#allocation9 + $0x5c0] sm:$0xf]  ;;  %v3752_v14 = vmax.f32 %v3696_v23, %v3712_v55  ;;  %v3345_v25 = vadd.f32 %v10465_v18, %v3331_v29  ;;  %v8631_v37 = vor.u32 %v9781_v58, %v8630_v38  ;;  %v9809_v18 = vld [vmem:[#allocation9 + $0x5ac] sm:$0xf0] }
 0x28e   :  { %5352 = vmatpush.bf16.msra.mxu2 %v8311_v11  ;;  %v9725_v11 = vld [vmem:[#allocation9 + $0x30c] sm:$0xf0]  ;;  %5325 = vmatpush.bf16.msra.mxu0 %v8039_v16  ;;  %v10564_v63 = vpack.c.bf16 %v3757_v62, %v3749_v61  ;;  %v10566_v35 = vpack.c.bf16 %v3758_v59, %v3750_v34  ;;  %v10568_v16 = vpack.c.bf16 %v3759_v7, %v3751_v56  ;;  %v8614_v54 = vld [vmem:[#allocation9 + $0x4a0] sm:$0xf] }
 0x28f   :  { %v8407_v4 = vor.u32 %v9725_v11, %v8406_v57  ;;  %v10574_v26 = vpack.c.bf16 %v3760_v42, %v3752_v14  ;;  %v8759_v23 = vor.u32 %v9813_v19, %v8758_v28  ;;  %v3333_v44 = vadd.f32 %v10476_v13, %v3319_v48  ;;  %v8598_v22 = vld [vmem:[#allocation9 + $0x480] sm:$0xf]  ;;  %v9805_v57 = vld [vmem:[#allocation9 + $0x58c] sm:$0xf0]  ;;  %v3484_v59 = vpop.f32.mrf.mxu1 }
 0x290   :  { %5366 = vmatpush.bf16.msra.mxu3 %v8439_v39  ;;  %v9817_v39 = vld [vmem:[#allocation9 + $0x5ec] sm:$0xf0]  ;;  %5339 = vmatpush.bf16.msra.mxu1 %v8167_v52  ;;  %v3359_v53 = vadd.f32 %v10479_v51, %v3345_v25  ;;  %v3417_v31 = vadd.f32 %v3416_v24, %v3403_v41  ;;  %v8743_v5 = vor.u32 %v9809_v18, %v8742_v46  ;;  %v8726_v21 = vld [vmem:[#allocation9 + $0x580] sm:$0xf]  ;;  %v9655_v46 = vld [vmem:[#allocation9 + $0xe4] sm:$0xf] }
 0x291   :  { %v8775_v2 = vor.u32 %v9817_v39, %v8774_v10  ;;  %v9777_v52 = vld [vmem:[#allocation9 + $0x4ac] sm:$0xf0]  ;;  %v3347_v61 = vadd.f32 %v10490_v32, %v3333_v44  ;;  %v8727_v7 = vor.u32 %v9805_v57, %v8726_v21  ;;  %v8582_v27 = vld [vmem:[#allocation9 + $0x460] sm:$0xf]  ;;  %v8136_v18 = vld [vmem:[#allocation9 + $0xf0] sm:$0xf0] }
 0x292   :  { %5353 = vmatpush.bf16.msra.mxu2 %v8295_v50  ;;  %5326 = vmatpush.bf16.msra.mxu0 %v8023_v20  ;;  %v3456_v43 = vpop.f32.mrf.mxu3  ;;  %v3443_v50 = vadd.f32 %v3442_v0, %v3429_v49  ;;  %v8615_v36 = vor.u32 %v9777_v52, %v8614_v54  ;;  %v3444_v62 = vpop.f32.mrf.mxu2  ;;  %v3373_v13 = vadd.f32 %v10483_v47, %v3359_v53  ;;  %v9769_v20 = vld [vmem:[#allocation9 + $0x46c] sm:$0xf0]  ;;  %v8710_v55 = vld [vmem:[#allocation9 + $0x560] sm:$0xf] }
 0x293   :  { %v3431_v8 = vadd.f32 %v3430_v3, %v3417_v31  ;;  %v9801_v12 = vld [vmem:[#allocation9 + $0x56c] sm:$0xf0]  ;;  %v8583_v47 = vor.u32 %v9769_v20, %v8582_v27  ;;  %v8566_v29 = vld [vmem:[#allocation9 + $0x440] sm:$0xf]  ;;  %v8139_v57 = vor.u32 %v9655_v46, %v8136_v18 }
 0x294   :  { %5367 = vmatpush.bf16.msra.mxu3 %v8423_v9  ;;  %5340 = vmatpush.bf16.msra.mxu1 %v8151_v30  ;;  %v9773_v9 = vld [vmem:[#allocation9 + $0x48c] sm:$0xf0]  ;;  %v3457_v1 = vadd.f32 %v3456_v43, %v3443_v50  ;;  %v3470_v11 = vpop.f32.mrf.mxu0  ;;  %v3387_v32 = vadd.f32 %v10506_v45, %v3373_v13  ;;  %v8711_v34 = vor.u32 %v9801_v12, %v8710_v55  ;;  %v8694_v42 = vld [vmem:[#allocation9 + $0x540] sm:$0xf]  ;;  %v9647_v55 = vld [vmem:[#allocation9 + $0xa4] sm:$0xf] }
 0x295   :  { %5327 = vmatmul.bf16.vlgmr.msra.gmra.mxu0 %v10564_v63  ;;  %v8599_v51 = vor.u32 %v9773_v9, %v8598_v22  ;;  %v3445_v10 = vadd.f32 %v3444_v62, %v3431_v8  ;;  %v9797_v0 = vld [vmem:[#allocation9 + $0x54c] sm:$0xf0]  ;;  %v8678_v41 = vld [vmem:[#allocation9 + $0x520] sm:$0xf]  ;;  %v8104_v12 = vld [vmem:[#allocation9 + $0xb0] sm:$0xf0] }
 0x296   :  { %5354 = vmatpush.bf16.msra.mxu2 %v8279_v6  ;;  %5375 = vmatpush.bf16.msrb.mxu0 %v8647_v40  ;;  %v3471_v60 = vadd.f32 %v3470_v11, %v3457_v1  ;;  %v3361_v6 = vadd.f32 %v10513_v17, %v3347_v61  ;;  %v8695_v45 = vor.u32 %v9797_v0, %v8694_v42  ;;  %v8550_v17 = vld [vmem:[#allocation9 + $0x420] sm:$0xf]  ;;  %v9761_v19 = vld [vmem:[#allocation9 + $0x42c] sm:$0xf0] }
 0x297   :  { %5341 = vmatmul.bf16.vlgmr.msra.gmra.mxu1 %v10566_v35  ;;  %v3486_v28 = vpop.f32.mrf.mxu1  ;;  %v9793_v3 = vld [vmem:[#allocation9 + $0x52c] sm:$0xf0]  ;;  %v8551_v43 = vor.u32 %v9761_v19, %v8550_v17  ;;  %v8662_v54 = vld [vmem:[#allocation9 + $0x500] sm:$0xf]  ;;  %v8072_v17 = vld [vmem:[#allocation9 + $0x70] sm:$0xf0] }
 0x298   :  { %5368 = vmatpush.bf16.msra.mxu3 %v8407_v4  ;;  %5389 = vmatpush.bf16.msrb.mxu1 %v8775_v2  ;;  %v3485_v39 = vadd.f32 %v3484_v59, %v3471_v60  ;;  %v9765_v4 = vld [vmem:[#allocation9 + $0x44c] sm:$0xf0]  ;;  %v3375_v38 = vadd.f32 %v10522_v33, %v3361_v6  ;;  %v8679_v52 = vor.u32 %v9793_v3, %v8678_v41  ;;  %v9651_v60 = vld [vmem:[#allocation9 + $0xc4] sm:$0xf]  ;;  %v9030_v0 = vld [vmem:[#allocation9 + $0x7e0] sm:$0xf] }
 0x299   :  { %5355 = vmatmul.bf16.vlgmr.msra.gmra.mxu2 %v10568_v16  ;;  %v8567_v49 = vor.u32 %v9765_v4, %v8566_v29  ;;  %v9757_v33 = vld [vmem:[#allocation9 + $0x40c] sm:$0xf0]  ;;  %v9683_v59 = vld [vmem:[#allocation9 + $0x1c4] sm:$0xf]  ;;  %v8107_v6 = vor.u32 %v9647_v55, %v8104_v12  ;;  %v8088_v29 = vld [vmem:[#allocation9 + $0x90] sm:$0xf0] }
 0x29a   :  { %5376 = vmatpush.bf16.msrb.mxu0 %v8631_v37  ;;  %v3458_v30 = vpop.f32.mrf.mxu3  ;;  %v3687_v56 = vpack.c.bf16 %v3485_v39, %v3387_v32  ;;  %v3389_v14 = vadd.f32 %v10540_v15, %v3375_v38  ;;  %v9789_v50 = vld [vmem:[#allocation9 + $0x50c] sm:$0xf0]  ;;  %v8232_v32 = vld [vmem:[#allocation9 + $0x1b0] sm:$0xf0]  ;;  %v9675_v4 = vld [vmem:[#allocation9 + $0x184] sm:$0xf] }
 0x29b   :  { %5369 = vmatmul.bf16.vlgmr.msra.gmra.mxu3 %v10574_v26  ;;  %v3459_v40 = vadd.f32 %v3458_v30, %v3445_v10  ;;  %v8663_v21 = vor.u32 %v9789_v50, %v8662_v54  ;;  %v9679_v30 = vld [vmem:[#allocation9 + $0x1a4] sm:$0xf]  ;;  %v9849_v42 = vld [vmem:[#allocation9 + $0x6ec] sm:$0xf0]  ;;  %v8056_v54 = vld [vmem:[#allocation9 + $0x50] sm:$0xf0] }
 0x29c   :  { %5390 = vmatpush.bf16.msrb.mxu1 %v8759_v23  ;;  %v3472_v2 = vpop.f32.mrf.mxu0  ;;  %v3697_v48 = vunpack.c.l.bf16 %v3687_v56  ;;  %v3698_v24 = vunpack.c.h.bf16 %v3687_v56  ;;  %v8534_v23 = vld [vmem:[#allocation9 + $0x400] sm:$0xf]  ;;  %v9881_v38 = vld [vmem:[#allocation9 + $0x7ec] sm:$0xf0]  ;;  %v9671_v19 = vld [vmem:[#allocation9 + $0x164] sm:$0xf] }
 0x29d   :  { %v3473_v58 = vadd.f32 %v3472_v2, %v3459_v40  ;;  %v8535_v1 = vor.u32 %v9757_v33, %v8534_v23  ;;  %v8216_v40 = vld [vmem:[#allocation9 + $0x190] sm:$0xf0]  ;;  %v8902_v56 = vld [vmem:[#allocation9 + $0x6e0] sm:$0xf]  ;;  %v9877_v3 = vld [vmem:[#allocation9 + $0x7cc] sm:$0xf0] }
 0x29e   :  { %5377 = vmatpush.bf16.msrb.mxu0 %v8615_v36  ;;  %v3713_v44 = vmul.f32 0.20019531, %v3697_v48  ;;  %v3714_v53 = vmul.f32 0.20019531, %v3698_v24  ;;  %v9687_v36 = vld [vmem:[#allocation9 + $0x1e4] sm:$0xf]  ;;  %v8903_v2 = vor.u32 %v9849_v42, %v8902_v56  ;;  %v8184_v50 = vld [vmem:[#allocation9 + $0x150] sm:$0xf0] }
 0x29f   :  { %v3487_v25 = vadd.f32 %v3486_v28, %v3473_v58  ;;  %v9031_v28 = vor.u32 %v9881_v38, %v9030_v0  ;;  %v8870_v46 = vld [vmem:[#allocation9 + $0x6a0] sm:$0xf]  ;;  %v9841_v18 = vld [vmem:[#allocation9 + $0x6ac] sm:$0xf0]  ;;  %v8152_v12 = vld [vmem:[#allocation9 + $0x110] sm:$0xf0] }
 0x2a0   :  { %5391 = vmatpush.bf16.msrb.mxu1 %v8743_v5  ;;  %v8264_v5 = vld [vmem:[#allocation9 + $0x1f0] sm:$0xf0]  ;;  %v3753_v62 = vmax.f32 %v3697_v48, %v3713_v44  ;;  %v3754_v11 = vmax.f32 %v3698_v24, %v3714_v53  ;;  %5403 = vmatpush.bf16.msrb.mxu2 %v8903_v2  ;;  %v8886_v48 = vld [vmem:[#allocation9 + $0x6c0] sm:$0xf]  ;;  %v9845_v24 = vld [vmem:[#allocation9 + $0x6cc] sm:$0xf0]  ;;  %v8871_v53 = vor.u32 %v9841_v18, %v8870_v46 }
 0x2a1   :  { %v3691_v37 = vpack.c.bf16 %v3487_v25, %v3389_v14  ;;  %v8267_v61 = vor.u32 %v9687_v36, %v8264_v5  ;;  %v8200_v14 = vld [vmem:[#allocation9 + $0x170] sm:$0xf0]  ;;  %5417 = vmatpush.bf16.msrb.mxu3 %v9031_v28  ;;  %v9014_v25 = vld [vmem:[#allocation9 + $0x7c0] sm:$0xf]  ;;  %v8887_v41 = vor.u32 %v9845_v24, %v8886_v48  ;;  %v9631_v36 = vld [vmem:[#allocation9 + $0x24] sm:$0xf] }
 0x2a2   :  { %5378 = vmatpush.bf16.msrb.mxu0 %v8599_v51  ;;  %v8120_v51 = vld [vmem:[#allocation9 + $0xd0] sm:$0xf0]  ;;  %v9015_v23 = vor.u32 %v9877_v3, %v9014_v25  ;;  %v8203_v33 = vor.u32 %v9671_v19, %v8200_v14  ;;  %v8998_v44 = vld [vmem:[#allocation9 + $0x7a0] sm:$0xf]  ;;  %v9865_v56 = vld [vmem:[#allocation9 + $0x76c] sm:$0xf0] }
 0x2a3   :  { %v3705_v31 = vunpack.c.l.bf16 %v3691_v37  ;;  %v3706_v15 = vunpack.c.h.bf16 %v3691_v37  ;;  %v8123_v10 = vor.u32 %v9651_v60, %v8120_v51  ;;  %v10596_v60 = vpop.f32.mrf.mxu3  ;;  %v8950_v19 = vld [vmem:[#allocation9 + $0x740] sm:$0xf]  ;;  %v9811_v14 = vld [vmem:[#allocation9 + $0x5c4] sm:$0xf]  ;;  %v8760_v48 = vld [vmem:[#allocation9 + $0x5d0] sm:$0xf0] }
 0x2a4   :  { %5392 = vmatpush.bf16.msrb.mxu1 %v8727_v7  ;;  %v8248_v7 = vld [vmem:[#allocation9 + $0x1d0] sm:$0xf0]  ;;  %5404 = vmatpush.bf16.msrb.mxu2 %v8887_v41  ;;  %v9861_v25 = vld [vmem:[#allocation9 + $0x74c] sm:$0xf0]  ;;  %v8934_v46 = vld [vmem:[#allocation9 + $0x720] sm:$0xf] }
 0x2a5   :  { %v3721_v22 = vmul.f32 0.20019531, %v3705_v31  ;;  %v3722_v9 = vmul.f32 0.20019531, %v3706_v15  ;;  %v8251_v39 = vor.u32 %v9683_v59, %v8248_v7  ;;  %5418 = vmatpush.bf16.msrb.mxu3 %v9015_v23  ;;  %v9627_v59 = vld [vmem:[#allocation9 + $0x4] sm:$0xf]  ;;  %v8024_v7 = vld [vmem:[#allocation9 + $0x10] sm:$0xf0]  ;;  %v8951_v41 = vor.u32 %v9861_v25, %v8950_v19 }
 0x2a6   :  { %5379 = vmatpush.bf16.msrb.mxu0 %v8583_v47  ;;  %v9643_v47 = vld [vmem:[#allocation9 + $0x84] sm:$0xf]  ;;  %v8027_v42 = vor.u32 %v9627_v59, %v8024_v7  ;;  %v8616_v23 = vld [vmem:[#allocation9 + $0x4b0] sm:$0xf0]  ;;  %v9853_v59 = vld [vmem:[#allocation9 + $0x70c] sm:$0xf0] }
 0x2a7   :  { %v3761_v13 = vmax.f32 %v3705_v31, %v3721_v22  ;;  %v3762_v8 = vmax.f32 %v3706_v15, %v3722_v9  ;;  %v8091_v58 = vor.u32 %v9643_v47, %v8088_v29  ;;  %v9873_v31 = vld [vmem:[#allocation9 + $0x7ac] sm:$0xf0]  ;;  %v8040_v9 = vld [vmem:[#allocation9 + $0x30] sm:$0xf0]  ;;  %v9815_v29 = vld [vmem:[#allocation9 + $0x5e4] sm:$0xf] }
 0x2a8   :  { %5393 = vmatpush.bf16.msrb.mxu1 %v8711_v34  ;;  %v8235_v34 = vor.u32 %v9679_v30, %v8232_v32  ;;  %v8999_v5 = vor.u32 %v9873_v31, %v8998_v44  ;;  %5405 = vmatpush.bf16.msrb.mxu2 %v8871_v53  ;;  %v8043_v51 = vor.u32 %v9631_v36, %v8040_v9  ;;  %v9783_v30 = vld [vmem:[#allocation9 + $0x4e4] sm:$0xf]  ;;  %v8648_v32 = vld [vmem:[#allocation9 + $0x4f0] sm:$0xf0]  ;;  %v9833_v47 = vld [vmem:[#allocation9 + $0x66c] sm:$0xf0] }
 0x2a9   :  { %v10588_v27 = vpack.c.bf16 %v3761_v13, %v3753_v62  ;;  %v10590_v20 = vpack.c.bf16 %v3762_v8, %v3754_v11  ;;  %v8982_v62 = vld [vmem:[#allocation9 + $0x780] sm:$0xf]  ;;  %v10594_v11 = vpop.f32.mrf.mxu2  ;;  %v9869_v8 = vld [vmem:[#allocation9 + $0x78c] sm:$0xf0]  ;;  %v8651_v38 = vor.u32 %v9783_v30, %v8648_v32  ;;  %v9807_v18 = vld [vmem:[#allocation9 + $0x5a4] sm:$0xf] }
 0x2aa   :  { %5380 = vmatpush.bf16.msrb.mxu0 %v8567_v49  ;;  %v9639_v49 = vld [vmem:[#allocation9 + $0x64] sm:$0xf]  ;;  %5419 = vmatpush.bf16.msrb.mxu3 %v8999_v5  ;;  %v8744_v44 = vld [vmem:[#allocation9 + $0x5b0] sm:$0xf0]  ;;  %v9857_v31 = vld [vmem:[#allocation9 + $0x72c] sm:$0xf0] }
 0x2ab   :  { %v8075_v37 = vor.u32 %v9639_v49, %v8072_v17  ;;  %v8632_v49 = vld [vmem:[#allocation9 + $0x4d0] sm:$0xf0]  ;;  %v9829_v17 = vld [vmem:[#allocation9 + $0x64c] sm:$0xf0]  ;;  %v9771_v36 = vld [vmem:[#allocation9 + $0x484] sm:$0xf]  ;;  %v8935_v5 = vor.u32 %v9857_v31, %v8934_v46 }
 0x2ac   :  { %5394 = vmatpush.bf16.msrb.mxu1 %v8695_v45  ;;  %v8219_v45 = vor.u32 %v9675_v4, %v8216_v40  ;;  %v8776_v4 = vld [vmem:[#allocation9 + $0x5f0] sm:$0xf0]  ;;  %v9719_v7 = vld [vmem:[#allocation9 + $0x2e4] sm:$0xf] }
 0x2ad   :  { %v8779_v28 = vor.u32 %v9815_v29, %v8776_v4  ;;  %v8600_v9 = vld [vmem:[#allocation9 + $0x490] sm:$0xf0]  ;;  %v9799_v4 = vld [vmem:[#allocation9 + $0x564] sm:$0xf] }
 0x2ae   :  { %5381 = vmatpush.bf16.msrb.mxu0 %v8551_v43  ;;  %v9635_v43 = vld [vmem:[#allocation9 + $0x44] sm:$0xf]  ;;  %v8520_v30 = vld [vmem:[#allocation9 + $0x3f0] sm:$0xf0]  ;;  %v8603_v32 = vor.u32 %v9771_v36, %v8600_v9 }
 0x2af   :  { %v8059_v15 = vor.u32 %v9635_v43, %v8056_v54  ;;  %v9775_v43 = vld [vmem:[#allocation9 + $0x4a4] sm:$0xf]  ;;  %v8763_v54 = vor.u32 %v9811_v14, %v8760_v48  ;;  %v8584_v29 = vld [vmem:[#allocation9 + $0x470] sm:$0xf0] }
 0x2b0   :  { %5395 = vmatpush.bf16.msrb.mxu1 %v8679_v52  ;;  %v9667_v52 = vld [vmem:[#allocation9 + $0x144] sm:$0xf]  ;;  %v8568_v48 = vld [vmem:[#allocation9 + $0x450] sm:$0xf0] }
 0x2b1   :  { %v8187_v22 = vor.u32 %v9667_v52, %v8184_v50  ;;  %v10598_v3 = vpop.f32.mrf.mxu2  ;;  %v8806_v52 = vld [vmem:[#allocation9 + $0x620] sm:$0xf]  ;;  %v9825_v50 = vld [vmem:[#allocation9 + $0x62c] sm:$0xf0]  ;;  %v8696_v25 = vld [vmem:[#allocation9 + $0x550] sm:$0xf0] }
 0x2b2   :  { %5382 = vmatpush.bf16.msrb.mxu0 %v8535_v1  ;;  %v9663_v1 = vld [vmem:[#allocation9 + $0x124] sm:$0xf]  ;;  %v8807_v53 = vor.u32 %v9825_v50, %v8806_v52  ;;  %v8680_v36 = vld [vmem:[#allocation9 + $0x530] sm:$0xf0] }
 0x2b3   :  { %v9759_v46 = vld [vmem:[#allocation9 + $0x424] sm:$0xf] }
 0x2b4   :  { %5396 = vmatpush.bf16.msrb.mxu1 %v8663_v21  ;;  %v8168_v21 = vld [vmem:[#allocation9 + $0x130] sm:$0xf0]  ;;  %v9791_v31 = vld [vmem:[#allocation9 + $0x524] sm:$0xf] }
 0x2b5   :  { %5383 = vmatmul.bf16.vlgmr.msrb.gmra.mxu0 %v10588_v27  ;;  %v8171_v55 = vor.u32 %v9663_v1, %v8168_v21  ;;  %v9803_v1 = vld [vmem:[#allocation9 + $0x584] sm:$0xf]  ;;  %v8728_v21 = vld [vmem:[#allocation9 + $0x590] sm:$0xf0] }
 0x2b6   :  { %5431 = vmatpush.bf16.msra.mxu0 %v8139_v57  ;;  %v8854_v57 = vld [vmem:[#allocation9 + $0x680] sm:$0xf]  ;;  %v9739_v9 = vld [vmem:[#allocation9 + $0x384] sm:$0xf] }
 0x2b7   :  { %5397 = vmatmul.bf16.vlgmr.msrb.gmra.mxu1 %v10590_v20 }
 0x2b8   :  { %5445 = vmatpush.bf16.msra.mxu1 %v8267_v61  ;;  %v9837_v61 = vld [vmem:[#allocation9 + $0x68c] sm:$0xf0] }
 0x2b9   :  { %v8855_v13 = vor.u32 %v9837_v61, %v8854_v57  ;;  %v8747_v57 = vor.u32 %v9807_v18, %v8744_v44  ;;  %v8790_v61 = vld [vmem:[#allocation9 + $0x600] sm:$0xf] }
 0x2ba   :  { %5432 = vmatpush.bf16.msra.mxu0 %v8123_v10  ;;  %v9659_v10 = vld [vmem:[#allocation9 + $0x104] sm:$0xf] }
 0x2bb   :  { %5406 = vmatpush.bf16.msrb.mxu2 %v8855_v13  ;;  %v8155_v2 = vor.u32 %v9659_v10, %v8152_v12  ;;  %v8918_v13 = vld [vmem:[#allocation9 + $0x700] sm:$0xf]  ;;  %v8392_v10 = vld [vmem:[#allocation9 + $0x2f0] sm:$0xf0]  ;;  %v9751_v12 = vld [vmem:[#allocation9 + $0x3e4] sm:$0xf] }
 0x2bc   :  { %5446 = vmatpush.bf16.msra.mxu1 %v8251_v39  ;;  %v8983_v39 = vor.u32 %v9869_v8, %v8982_v62  ;;  %v9821_v62 = vld [vmem:[#allocation9 + $0x60c] sm:$0xf0]  ;;  %v10606_v8 = vpop.f32.mrf.mxu1 }
 0x2be   :  { %5433 = vmatpush.bf16.msra.mxu0 %v8107_v6  ;;  %5420 = vmatpush.bf16.msrb.mxu3 %v8983_v39  ;;  %v8838_v6 = vld [vmem:[#allocation9 + $0x660] sm:$0xf]  ;;  %v8919_v39 = vor.u32 %v9853_v59, %v8918_v13  ;;  %v8536_v13 = vld [vmem:[#allocation9 + $0x410] sm:$0xf0] }
 0x2bf   :  { %v8839_v40 = vor.u32 %v9833_v47, %v8838_v6  ;;  %v9767_v6 = vld [vmem:[#allocation9 + $0x464] sm:$0xf]  ;;  %v8523_v47 = vor.u32 %v9751_v12, %v8520_v30  ;;  %v8142_v12 = vld [vmem:[#allocation9 + $0xe8] sm:$0xf]  ;;  %v9658_v30 = vld [vmem:[#allocation9 + $0xf4] sm:$0xf0] }
 0x2c0   :  { %5447 = vmatpush.bf16.msra.mxu1 %v8235_v34  ;;  %v8966_v34 = vld [vmem:[#allocation9 + $0x760] sm:$0xf] }
 0x2c1   :  { %v8967_v0 = vor.u32 %v9865_v56, %v8966_v34  ;;  %5407 = vmatpush.bf16.msrb.mxu2 %v8839_v40  ;;  %v8731_v34 = vor.u32 %v9803_v1, %v8728_v21  ;;  %v8712_v40 = vld [vmem:[#allocation9 + $0x570] sm:$0xf0]  ;;  %v10608_v56 = vpop.f32.mrf.mxu2 }
 0x2c2   :  { %5434 = vmatpush.bf16.msra.mxu0 %v8091_v58  ;;  %v9779_v58 = vld [vmem:[#allocation9 + $0x4c4] sm:$0xf]  ;;  %v8715_v14 = vor.u32 %v9799_v4, %v8712_v40  ;;  %v8472_v21 = vld [vmem:[#allocation9 + $0x390] sm:$0xf0] }
 0x2c3   :  { %5421 = vmatpush.bf16.msrb.mxu3 %v8967_v0  ;;  %v8376_v0 = vld [vmem:[#allocation9 + $0x2d0] sm:$0xf0]  ;;  %v8475_v59 = vor.u32 %v9739_v9, %v8472_v21  ;;  %v9695_v9 = vld [vmem:[#allocation9 + $0x224] sm:$0xf] }
 0x2c4   :  { %5448 = vmatpush.bf16.msra.mxu1 %v8219_v45  ;;  %v8822_v45 = vld [vmem:[#allocation9 + $0x640] sm:$0xf]  ;;  %v10614_v52 = vpop.f32.mrf.mxu1  ;;  %v8456_v40 = vld [vmem:[#allocation9 + $0x370] sm:$0xf0]  ;;  %v9727_v21 = vld [vmem:[#allocation9 + $0x324] sm:$0xf] }
 0x2c5   :  { %v8823_v24 = vor.u32 %v9829_v17, %v8822_v45  ;;  %v9763_v45 = vld [vmem:[#allocation9 + $0x444] sm:$0xf] }
 0x2c6   :  { %5435 = vmatpush.bf16.msra.mxu0 %v8075_v37  ;;  %v8635_v37 = vor.u32 %v9779_v58, %v8632_v49  ;;  %v8504_v49 = vld [vmem:[#allocation9 + $0x3d0] sm:$0xf0]  ;;  %v8571_v50 = vor.u32 %v9763_v45, %v8568_v48  ;;  %v9654_v48 = vld [vmem:[#allocation9 + $0xd4] sm:$0xf0] }
 0x2c7   :  { %5408 = vmatpush.bf16.msrb.mxu2 %v8823_v24  ;;  %5422 = vmatpush.bf16.msrb.mxu3 %v8951_v41  ;;  %v9795_v24 = vld [vmem:[#allocation9 + $0x544] sm:$0xf] }
 0x2c8   :  { %5449 = vmatpush.bf16.msra.mxu1 %v8203_v33  ;;  %v10600_v33 = vpop.f32.mrf.mxu3  ;;  %v9711_v41 = vld [vmem:[#allocation9 + $0x2a4] sm:$0xf]  ;;  %v8699_v44 = vor.u32 %v9795_v24, %v8696_v25 }
 0x2c9   :  { %v9699_v25 = vld [vmem:[#allocation9 + $0x244] sm:$0xf] }
 0x2ca   :  { %5436 = vmatpush.bf16.msra.mxu0 %v8059_v15  ;;  %v10603_v15 = vpop.f32.mrf.mxu0 }
 0x2cb   :  { %5409 = vmatpush.bf16.msrb.mxu2 %v8807_v53  ;;  %5423 = vmatpush.bf16.msrb.mxu3 %v8935_v5  ;;  %v8552_v53 = vld [vmem:[#allocation9 + $0x430] sm:$0xf0]  ;;  %v9707_v5 = vld [vmem:[#allocation9 + $0x284] sm:$0xf] }
 0x2cc   :  { %5450 = vmatpush.bf16.msra.mxu1 %v8187_v22  ;;  %v8619_v22 = vor.u32 %v9775_v43, %v8616_v23  ;;  %v9743_v43 = vld [vmem:[#allocation9 + $0x3a4] sm:$0xf] }
 0x2ce   :  { %5437 = vmatpush.bf16.msra.mxu0 %v8043_v51  ;;  %v8791_v51 = vor.u32 %v9821_v62, %v8790_v61  ;;  %v8555_v61 = vor.u32 %v9759_v46, %v8552_v53  ;;  %v9755_v62 = vld [vmem:[#allocation9 + $0x404] sm:$0xf] }
 0x2cf   :  { %5424 = vmatpush.bf16.msrb.mxu3 %v8919_v39  ;;  %v8683_v39 = vor.u32 %v9791_v31, %v8680_v36  ;;  %v8110_v36 = vld [vmem:[#allocation9 + $0xa8] sm:$0xf] }
 0x2d0   :  { %5451 = vmatpush.bf16.msra.mxu1 %v8171_v55  ;;  %v8395_v55 = vor.u32 %v9719_v7, %v8392_v10  ;;  %5410 = vmatpush.bf16.msrb.mxu2 %v8791_v51  ;;  %v9787_v51 = vld [vmem:[#allocation9 + $0x504] sm:$0xf] }
 0x2d2   :  { %5438 = vmatpush.bf16.msra.mxu0 %v8027_v42  ;;  %v9715_v42 = vld [vmem:[#allocation9 + $0x2c4] sm:$0xf]  ;;  %v10612_v19 = vpop.f32.mrf.mxu0 }
 0x2d3   :  { %5473 = vmatpush.bf16.msra.mxu3 %v8523_v47  ;;  %v8379_v58 = vor.u32 %v9715_v42, %v8376_v0  ;;  %v9735_v47 = vld [vmem:[#allocation9 + $0x364] sm:$0xf]  ;;  %v10622_v42 = vld [vmem:[#allocation8] sm:$0xff] }
 0x2d4   :  { %5452 = vmatpush.bf16.msra.mxu1 %v8155_v2  ;;  %5459 = vmatpush.bf16.msra.mxu2 %v8395_v55  ;;  %v9747_v2 = vld [vmem:[#allocation9 + $0x3c4] sm:$0xf]  ;;  %v8664_v55 = vld [vmem:[#allocation9 + $0x510] sm:$0xf0]  ;;  %v615_v0 = vperm.slane %v10622_v42, 6 }
 0x2d5   :  { %5439 = vmatmul.bf16.vlgmr.msra.gmra.mxu0 %v10564_v63  ;;  %v8507_v17 = vor.u32 %v9747_v2, %v8504_v49  ;;  %v3596_v2 = vpop.f32.mrf.mxu1  ;;  %v8459_v49 = vor.u32 %v9735_v47, %v8456_v40  ;;  %v8667_v45 = vor.u32 %v9787_v51, %v8664_v55 }
 0x2d6   :  { %5487 = vmatpush.bf16.msrb.mxu0 %v8651_v38  ;;  %v10610_v38 = vpop.f32.mrf.mxu3  ;;  %v3499_v46 = vadd.f32 %v10594_v11, %v615_v0 }
 0x2d7   :  { %5453 = vmatmul.bf16.vlgmr.msra.gmra.mxu1 %v10566_v35  ;;  %5474 = vmatpush.bf16.msra.mxu3 %v8507_v17  ;;  %v8143_v17 = vor.u32 %v9658_v30, %v8142_v12  ;;  %v8094_v30 = vld [vmem:[#allocation9 + $0x88] sm:$0xf] }
 0x2d8   :  { %5501 = vmatpush.bf16.msrb.mxu1 %v8779_v28  ;;  %v8587_v28 = vor.u32 %v9767_v6, %v8584_v29  ;;  %5460 = vmatpush.bf16.msra.mxu2 %v8379_v58  ;;  %v8328_v6 = vld [vmem:[#allocation9 + $0x270] sm:$0xf0]  ;;  %v9690_v29 = vld [vmem:[#allocation9 + $0x1f4] sm:$0xf0]  ;;  %v8539_v58 = vor.u32 %v9755_v62, %v8536_v13  ;;  %v8238_v62 = vld [vmem:[#allocation9 + $0x1a8] sm:$0xf] }
 0x2d9   :  { %v9682_v13 = vld [vmem:[#allocation9 + $0x1b4] sm:$0xf0] }
 0x2da   :  { %5488 = vmatpush.bf16.msrb.mxu0 %v8635_v37  ;;  %v8360_v37 = vld [vmem:[#allocation9 + $0x2b0] sm:$0xf0]  ;;  %v10620_v10 = vpop.f32.mrf.mxu0  ;;  %v8239_v47 = vor.u32 %v9682_v13, %v8238_v62  ;;  %v8046_v62 = vld [vmem:[#allocation9 + $0x28] sm:$0xf]  ;;  %v9634_v13 = vld [vmem:[#allocation9 + $0x34] sm:$0xf0] }
 0x2db   :  { %v8363_v23 = vor.u32 %v9711_v41, %v8360_v37  ;;  %v8312_v41 = vld [vmem:[#allocation9 + $0x250] sm:$0xf0]  ;;  %v9731_v37 = vld [vmem:[#allocation9 + $0x344] sm:$0xf] }
 0x2dc   :  { %5502 = vmatpush.bf16.msrb.mxu1 %v8763_v54  ;;  %v8488_v54 = vld [vmem:[#allocation9 + $0x3b0] sm:$0xf0] }
 0x2dd   :  { %v8491_v18 = vor.u32 %v9743_v43, %v8488_v54  ;;  %5461 = vmatpush.bf16.msra.mxu2 %v8363_v23  ;;  %v8254_v43 = vld [vmem:[#allocation9 + $0x1c8] sm:$0xf]  ;;  %v9686_v23 = vld [vmem:[#allocation9 + $0x1d4] sm:$0xf0]  ;;  %v8315_v54 = vor.u32 %v9699_v25, %v8312_v41 }
 0x2de   :  { %5489 = vmatpush.bf16.msrb.mxu0 %v8619_v22  ;;  %v8344_v22 = vld [vmem:[#allocation9 + $0x290] sm:$0xf0]  ;;  %v10618_v7 = vpop.f32.mrf.mxu3  ;;  %v8078_v41 = vld [vmem:[#allocation9 + $0x68] sm:$0xf] }
 0x2df   :  { %5475 = vmatpush.bf16.msra.mxu3 %v8491_v18  ;;  %v8347_v1 = vor.u32 %v9707_v5, %v8344_v22  ;;  %v9650_v5 = vld [vmem:[#allocation9 + $0xb4] sm:$0xf0]  ;;  %v8255_v22 = vor.u32 %v9686_v23, %v8254_v43 }
 0x2e0   :  { %5503 = vmatpush.bf16.msrb.mxu1 %v8747_v57  ;;  %v10616_v57 = vpop.f32.mrf.mxu2  ;;  %v8111_v12 = vor.u32 %v9650_v5, %v8110_v36  ;;  %v8062_v5 = vld [vmem:[#allocation9 + $0x48] sm:$0xf] }
 0x2e1   :  { %5462 = vmatpush.bf16.msra.mxu2 %v8347_v1  ;;  %v8296_v1 = vld [vmem:[#allocation9 + $0x230] sm:$0xf0] }
 0x2e2   :  { %5490 = vmatpush.bf16.msrb.mxu0 %v8603_v32  ;;  %v9703_v32 = vld [vmem:[#allocation9 + $0x264] sm:$0xf]  ;;  %v8299_v51 = vor.u32 %v9695_v9, %v8296_v1 }
 0x2e3   :  { %5476 = vmatpush.bf16.msra.mxu3 %v8475_v59  ;;  %v8331_v4 = vor.u32 %v9703_v32, %v8328_v6  ;;  %v8424_v59 = vld [vmem:[#allocation9 + $0x330] sm:$0xf0]  ;;  %v9646_v32 = vld [vmem:[#allocation9 + $0x94] sm:$0xf0]  ;;  %v3598_v6 = vpop.f32.mrf.mxu1 }
 0x2e4   :  { %5504 = vmatpush.bf16.msrb.mxu1 %v8731_v34  ;;  %v8270_v34 = vld [vmem:[#allocation9 + $0x1e8] sm:$0xf]  ;;  %v8427_v55 = vor.u32 %v9727_v21, %v8424_v59 }
 0x2e5   :  { %v8271_v24 = vor.u32 %v9690_v29, %v8270_v34  ;;  %5463 = vmatpush.bf16.msra.mxu2 %v8331_v4  ;;  %v9691_v34 = vld [vmem:[#allocation9 + $0x204] sm:$0xf]  ;;  %v8280_v29 = vld [vmem:[#allocation9 + $0x210] sm:$0xf0] }
 0x2e6   :  { %5491 = vmatpush.bf16.msrb.mxu0 %v8587_v28  ;;  %v616_v28 = vperm.slane %v10622_v42, 7  ;;  %v3624_v53 = vpop.f32.mrf.mxu3  ;;  %v9723_v4 = vld [vmem:[#allocation9 + $0x304] sm:$0xf]  ;;  %v8190_v42 = vld [vmem:[#allocation9 + $0x148] sm:$0xf] }
 0x2e7   :  { %5477 = vmatpush.bf16.msra.mxu3 %v8459_v49  ;;  %v8283_v49 = vor.u32 %v9691_v34, %v8280_v29  ;;  %v8030_v29 = vld [vmem:[#allocation9 + $0x8] sm:$0xf] }
 0x2e8   :  { %5505 = vmatpush.bf16.msrb.mxu1 %v8715_v14  ;;  %v8126_v14 = vld [vmem:[#allocation9 + $0xc8] sm:$0xf]  ;;  %v3610_v18 = vpop.f32.mrf.mxu2  ;;  %v3597_v11 = vadd.f32 %v3596_v2, %v616_v28  ;;  %v3599_v23 = vadd.f32 %v3598_v6, %v616_v28  ;;  %v9670_v28 = vld [vmem:[#allocation9 + $0x154] sm:$0xf0] }
 0x2e9   :  { %v8127_v31 = vor.u32 %v9654_v48, %v8126_v14  ;;  %5464 = vmatpush.bf16.msra.mxu2 %v8315_v54  ;;  %v8222_v2 = vld [vmem:[#allocation9 + $0x188] sm:$0xf]  ;;  %v3501_v14 = vadd.f32 %v10598_v3, %v615_v0  ;;  %v8095_v48 = vor.u32 %v9646_v32, %v8094_v30  ;;  %v9666_v30 = vld [vmem:[#allocation9 + $0x134] sm:$0xf0] }
 0x2ea   :  { %5492 = vmatpush.bf16.msrb.mxu0 %v8571_v50  ;;  %v8440_v50 = vld [vmem:[#allocation9 + $0x350] sm:$0xf0]  ;;  %v3611_v40 = vadd.f32 %v3610_v18, %v3597_v11  ;;  %v8191_v11 = vor.u32 %v9670_v28, %v8190_v42  ;;  %v9810_v42 = vld [vmem:[#allocation9 + $0x5b4] sm:$0xf0] }
 0x2eb   :  { %v3515_v3 = vadd.f32 %v10600_v33, %v3501_v14  ;;  %v9818_v14 = vld [vmem:[#allocation9 + $0x5f4] sm:$0xf0] }
 0x2ec   :  { %5506 = vmatpush.bf16.msrb.mxu1 %v8699_v44  ;;  %v8443_v44 = vor.u32 %v9731_v37, %v8440_v50  ;;  %v9642_v37 = vld [vmem:[#allocation9 + $0x74] sm:$0xf0]  ;;  %v3625_v43 = vadd.f32 %v3624_v53, %v3611_v40  ;;  %v8158_v40 = vld [vmem:[#allocation9 + $0x108] sm:$0xf] }
 0x2ed   :  { %5465 = vmatpush.bf16.msra.mxu2 %v8299_v51  ;;  %v9638_v53 = vld [vmem:[#allocation9 + $0x54] sm:$0xf0]  ;;  %v3529_v1 = vadd.f32 %v10612_v19, %v3515_v3 }
 0x2ee   :  { %5493 = vmatpush.bf16.msrb.mxu0 %v8555_v61  ;;  %v10629_v61 = vpop.f32.mrf.mxu0  ;;  %5478 = vmatpush.bf16.msra.mxu3 %v8443_v44  ;;  %v3626_v54 = vpop.f32.mrf.mxu3  ;;  %v8079_v44 = vor.u32 %v9642_v37, %v8078_v41 }
 0x2f0   :  { %5507 = vmatpush.bf16.msrb.mxu1 %v8683_v39  ;;  %v3513_v39 = vadd.f32 %v10596_v60, %v3499_v46  ;;  %v8408_v60 = vld [vmem:[#allocation9 + $0x310] sm:$0xf0]  ;;  %v9674_v46 = vld [vmem:[#allocation9 + $0x174] sm:$0xf0] }
 0x2f1   :  { %5466 = vmatpush.bf16.msra.mxu2 %v8283_v49  ;;  %v9662_v49 = vld [vmem:[#allocation9 + $0x114] sm:$0xf0] }
 0x2f2   :  { %5494 = vmatpush.bf16.msrb.mxu0 %v8539_v58  ;;  %v9678_v58 = vld [vmem:[#allocation9 + $0x194] sm:$0xf0]  ;;  %5479 = vmatpush.bf16.msra.mxu3 %v8427_v55  ;;  %v8159_v41 = vor.u32 %v9662_v49, %v8158_v40 }
 0x2f3   :  { %v8223_v25 = vor.u32 %v9678_v58, %v8222_v2 }
 0x2f4   :  { %5508 = vmatpush.bf16.msrb.mxu1 %v8667_v45  ;;  %v3527_v45 = vadd.f32 %v10603_v15, %v3513_v39  ;;  %v8206_v15 = vld [vmem:[#allocation9 + $0x168] sm:$0xf] }
 0x2f5   :  { %5495 = vmatmul.bf16.vlgmr.msrb.gmra.mxu0 %v10588_v27  ;;  %v8207_v36 = vor.u32 %v9674_v46, %v8206_v15  ;;  %v8766_v15 = vld [vmem:[#allocation9 + $0x5c8] sm:$0xf]  ;;  %v9814_v46 = vld [vmem:[#allocation9 + $0x5d4] sm:$0xf0] }
 0x2f6   :  { %5543 = vmatpush.bf16.msra.mxu0 %v8143_v17  ;;  %v8411_v17 = vor.u32 %v9723_v4, %v8408_v60  ;;  %v3638_v50 = vpop.f32.mrf.mxu0  ;;  %v3541_v18 = vadd.f32 %v10606_v8, %v3527_v45  ;;  %v8063_v8 = vor.u32 %v9638_v53, %v8062_v5  ;;  %v9630_v4 = vld [vmem:[#allocation9 + $0x14] sm:$0xf0]  ;;  %v8654_v60 = vld [vmem:[#allocation9 + $0x4e8] sm:$0xf]  ;;  %v8767_v5 = vor.u32 %v9814_v46, %v8766_v15 }
 0x2f7   :  { %5509 = vmatmul.bf16.vlgmr.msrb.gmra.mxu1 %v10590_v20  ;;  %v3639_v0 = vadd.f32 %v3638_v50, %v3625_v43  ;;  %v9786_v45 = vld [vmem:[#allocation9 + $0x4f4] sm:$0xf0] }
 0x2f8   :  { %5557 = vmatpush.bf16.msra.mxu1 %v8271_v24  ;;  %v3612_v24 = vpop.f32.mrf.mxu2  ;;  %5480 = vmatpush.bf16.msra.mxu3 %v8411_v17  ;;  %v3555_v9 = vadd.f32 %v10608_v56, %v3541_v18  ;;  %v3543_v56 = vadd.f32 %v10614_v52, %v3529_v1  ;;  %v8655_v37 = vor.u32 %v9786_v45, %v8654_v60  ;;  %v9778_v53 = vld [vmem:[#allocation9 + $0x4b4] sm:$0xf0]  ;;  %v9875_v60 = vld [vmem:[#allocation9 + $0x7c4] sm:$0xf]  ;;  %v9016_v45 = vld [vmem:[#allocation9 + $0x7d0] sm:$0xf0] }
 0x2f9   :  { %v9798_v15 = vld [vmem:[#allocation9 + $0x554] sm:$0xf0] }
 0x2fa   :  { %5544 = vmatpush.bf16.msra.mxu0 %v8127_v31  ;;  %v3652_v31 = vpop.f32.mrf.mxu1  ;;  %v3569_v32 = vadd.f32 %v10610_v38, %v3555_v9  ;;  %v3557_v2 = vadd.f32 %v10616_v57, %v3543_v56  ;;  %v8782_v38 = vld [vmem:[#allocation9 + $0x5e8] sm:$0xf] }
 0x2fb   :  { %v3653_v21 = vadd.f32 %v3652_v31, %v3639_v0  ;;  %v8783_v57 = vor.u32 %v9818_v14, %v8782_v38  ;;  %v9770_v38 = vld [vmem:[#allocation9 + $0x474] sm:$0xf0]  ;;  %v8718_v14 = vld [vmem:[#allocation9 + $0x568] sm:$0xf] }
 0x2fc   :  { %5558 = vmatpush.bf16.msra.mxu1 %v8255_v22  ;;  %v3613_v22 = vadd.f32 %v3612_v24, %v3599_v23  ;;  %v3583_v58 = vadd.f32 %v10620_v10, %v3569_v32  ;;  %v8031_v24 = vor.u32 %v9630_v4, %v8030_v29  ;;  %v3571_v43 = vadd.f32 %v10618_v7, %v3557_v2  ;;  %v9782_v10 = vld [vmem:[#allocation9 + $0x4d4] sm:$0xf0]  ;;  %v8622_v7 = vld [vmem:[#allocation9 + $0x4a8] sm:$0xf]  ;;  %v9843_v29 = vld [vmem:[#allocation9 + $0x6c4] sm:$0xf] }
 0x2fd   :  { %v8888_v4 = vld [vmem:[#allocation9 + $0x6d0] sm:$0xf0] }
 0x2fe   :  { %5545 = vmatpush.bf16.msra.mxu0 %v8111_v12  ;;  %v3627_v51 = vadd.f32 %v3626_v54, %v3613_v22  ;;  %v3680_v39 = vpop.f32.mrf.mxu3  ;;  %v3640_v55 = vpop.f32.mrf.mxu0  ;;  %v8174_v12 = vld [vmem:[#allocation9 + $0x128] sm:$0xf]  ;;  %v3585_v18 = vadd.f32 %v10629_v61, %v3571_v43 }
 0x2ff   :  { %v8175_v34 = vor.u32 %v9666_v30, %v8174_v12  ;;  %v8638_v54 = vld [vmem:[#allocation9 + $0x4c8] sm:$0xf]  ;;  %v9806_v30 = vld [vmem:[#allocation9 + $0x594] sm:$0xf0] }
 0x300   :  { %5559 = vmatpush.bf16.msra.mxu1 %v8239_v47  ;;  %v3666_v33 = vpop.f32.mrf.mxu2  ;;  %v3641_v19 = vadd.f32 %v3640_v55, %v3627_v51  ;;  %v8047_v47 = vor.u32 %v9634_v13, %v8046_v62  ;;  %v8639_v31 = vor.u32 %v9782_v10, %v8638_v54  ;;  %v8750_v22 = vld [vmem:[#allocation9 + $0x5a8] sm:$0xf]  ;;  %v9774_v55 = vld [vmem:[#allocation9 + $0x494] sm:$0xf0] }
 0x301   :  { %v3667_v59 = vadd.f32 %v3666_v33, %v3653_v21  ;;  %v8623_v21 = vor.u32 %v9778_v53, %v8622_v7  ;;  %v8904_v33 = vld [vmem:[#allocation9 + $0x6f0] sm:$0xf0]  ;;  %v8751_v51 = vor.u32 %v9810_v42, %v8750_v22  ;;  %v8734_v12 = vld [vmem:[#allocation9 + $0x588] sm:$0xf]  ;;  %v9766_v10 = vld [vmem:[#allocation9 + $0x454] sm:$0xf0] }
 0x302   :  { %5546 = vmatpush.bf16.msra.mxu0 %v8095_v48  ;;  %v3654_v17 = vpop.f32.mrf.mxu1  ;;  %v8735_v49 = vor.u32 %v9806_v30, %v8734_v12  ;;  %v8574_v54 = vld [vmem:[#allocation9 + $0x448] sm:$0xf]  ;;  %v9762_v53 = vld [vmem:[#allocation9 + $0x434] sm:$0xf0]  ;;  %v9688_v12 = vld [vmem:[#allocation9 + $0x1ec] sm:$0xf] }
 0x303   :  { %v3681_v6 = vadd.f32 %v3680_v39, %v3667_v59  ;;  %v3655_v48 = vadd.f32 %v3654_v17, %v3641_v19  ;;  %v9032_v59 = vld [vmem:[#allocation9 + $0x7f0] sm:$0xf0]  ;;  %v8606_v39 = vld [vmem:[#allocation9 + $0x488] sm:$0xf]  ;;  %v9794_v42 = vld [vmem:[#allocation9 + $0x534] sm:$0xf0] }
 0x304   :  { %5560 = vmatpush.bf16.msra.mxu1 %v8223_v25  ;;  %v8590_v17 = vld [vmem:[#allocation9 + $0x468] sm:$0xf]  ;;  %v8272_v30 = vld [vmem:[#allocation9 + $0x1f8] sm:$0xf0] }
 0x305   :  { %v3688_v52 = vpack.c.bf16 %v3681_v6, %v3583_v58  ;;  %v8607_v58 = vor.u32 %v9774_v55, %v8606_v39  ;;  %v8558_v7 = vld [vmem:[#allocation9 + $0x428] sm:$0xf]  ;;  %v9656_v39 = vld [vmem:[#allocation9 + $0xec] sm:$0xf]  ;;  %v8144_v55 = vld [vmem:[#allocation9 + $0xf8] sm:$0xf0] }
 0x306   :  { %5547 = vmatpush.bf16.msra.mxu0 %v8079_v44  ;;  %v3682_v50 = vpop.f32.mrf.mxu3  ;;  %v8686_v22 = vld [vmem:[#allocation9 + $0x528] sm:$0xf] }
 0x307   :  { %v3699_v3 = vunpack.c.l.bf16 %v3688_v52  ;;  %v3700_v0 = vunpack.c.h.bf16 %v3688_v52  ;;  %v9802_v52 = vld [vmem:[#allocation9 + $0x574] sm:$0xf0] }
 0x308   :  { %5561 = vmatpush.bf16.msra.mxu1 %v8207_v36  ;;  %v3668_v25 = vpop.f32.mrf.mxu2  ;;  %v8719_v43 = vor.u32 %v9802_v52, %v8718_v14 }
 0x309   :  { %v3669_v23 = vadd.f32 %v3668_v25, %v3655_v48  ;;  %v3715_v28 = vmul.f32 0.20019531, %v3699_v3  ;;  %v3716_v9 = vmul.f32 0.20019531, %v3700_v0  ;;  %v8891_v48 = vor.u32 %v9843_v29, %v8888_v4  ;;  %v9839_v25 = vld [vmem:[#allocation9 + $0x6a4] sm:$0xf]  ;;  %v8952_v4 = vld [vmem:[#allocation9 + $0x750] sm:$0xf0] }
 0x30a   :  { %5548 = vmatpush.bf16.msra.mxu0 %v8063_v8  ;;  %v9847_v8 = vld [vmem:[#allocation9 + $0x6e4] sm:$0xf] }
 0x30b   :  { %v3683_v44 = vadd.f32 %v3682_v50, %v3669_v23  ;;  %v3755_v32 = vmax.f32 %v3699_v3, %v3715_v28  ;;  %v3756_v56 = vmax.f32 %v3700_v0, %v3716_v9  ;;  %v9871_v23 = vld [vmem:[#allocation9 + $0x7a4] sm:$0xf]  ;;  %v8702_v50 = vld [vmem:[#allocation9 + $0x548] sm:$0xf]  ;;  %v8856_v0 = vld [vmem:[#allocation9 + $0x690] sm:$0xf0] }
 0x30c   :  { %5562 = vmatpush.bf16.msra.mxu1 %v8191_v11  ;;  %v9879_v11 = vld [vmem:[#allocation9 + $0x7e4] sm:$0xf] }
 0x30d   :  { %v3692_v36 = vpack.c.bf16 %v3683_v44, %v3585_v18  ;;  %v9835_v3 = vld [vmem:[#allocation9 + $0x684] sm:$0xf]  ;;  %v8575_v44 = vor.u32 %v9766_v10, %v8574_v54  ;;  %v9680_v54 = vld [vmem:[#allocation9 + $0x1ac] sm:$0xf]  ;;  %v8240_v10 = vld [vmem:[#allocation9 + $0x1b8] sm:$0xf0] }
 0x30e   :  { %5549 = vmatpush.bf16.msra.mxu0 %v8047_v47  ;;  %v8907_v47 = vor.u32 %v9847_v8, %v8904_v33  ;;  %v8859_v28 = vor.u32 %v9835_v3, %v8856_v0  ;;  %v8559_v8 = vor.u32 %v9762_v53, %v8558_v7  ;;  %v8687_v33 = vor.u32 %v9794_v42, %v8686_v22  ;;  %v9859_v29 = vld [vmem:[#allocation9 + $0x744] sm:$0xf]  ;;  %v8920_v0 = vld [vmem:[#allocation9 + $0x710] sm:$0xf0]  ;;  %v8526_v7 = vld [vmem:[#allocation9 + $0x3e8] sm:$0xf] }
 0x30f   :  { %v3707_v1 = vunpack.c.l.bf16 %v3692_v36  ;;  %v3708_v61 = vunpack.c.h.bf16 %v3692_v36  ;;  %v9867_v36 = vld [vmem:[#allocation9 + $0x784] sm:$0xf]  ;;  %v8955_v52 = vor.u32 %v9859_v29, %v8952_v4  ;;  %v9754_v53 = vld [vmem:[#allocation9 + $0x3f4] sm:$0xf0]  ;;  %v9644_v22 = vld [vmem:[#allocation9 + $0x8c] sm:$0xf] }
 0x310   :  { %5563 = vmatpush.bf16.msra.mxu1 %v8175_v34  ;;  %v9035_v34 = vor.u32 %v9879_v11, %v9032_v59  ;;  %v8968_v11 = vld [vmem:[#allocation9 + $0x770] sm:$0xf0]  ;;  %v9790_v59 = vld [vmem:[#allocation9 + $0x514] sm:$0xf0]  ;;  %v9851_v3 = vld [vmem:[#allocation9 + $0x704] sm:$0xf] }
 0x311   :  { %v3723_v62 = vmul.f32 0.20019531, %v3707_v1  ;;  %v3724_v13 = vmul.f32 0.20019531, %v3708_v61  ;;  %v8096_v42 = vld [vmem:[#allocation9 + $0x98] sm:$0xf0]  ;;  %v8494_v29 = vld [vmem:[#allocation9 + $0x3a8] sm:$0xf] }
 0x312   :  { %5550 = vmatpush.bf16.msra.mxu0 %v8031_v24  ;;  %v9019_v24 = vor.u32 %v9875_v60, %v9016_v45  ;;  %v9652_v60 = vld [vmem:[#allocation9 + $0xcc] sm:$0xf]  ;;  %v8128_v45 = vld [vmem:[#allocation9 + $0xd8] sm:$0xf0]  ;;  %v9746_v4 = vld [vmem:[#allocation9 + $0x3b4] sm:$0xf0] }
 0x313   :  { %v3763_v6 = vmax.f32 %v3707_v1, %v3723_v62  ;;  %v3764_v19 = vmax.f32 %v3708_v61, %v3724_v13  ;;  %v9831_v1 = vld [vmem:[#allocation9 + $0x664] sm:$0xf]  ;;  %v8840_v61 = vld [vmem:[#allocation9 + $0x670] sm:$0xf0]  ;;  %v8542_v62 = vld [vmem:[#allocation9 + $0x408] sm:$0xf] }
 0x314   :  { %5564 = vmatpush.bf16.msra.mxu1 %v8159_v41  ;;  %v8872_v41 = vld [vmem:[#allocation9 + $0x6b0] sm:$0xf0]  ;;  %v9758_v13 = vld [vmem:[#allocation9 + $0x414] sm:$0xf0] }
 0x315   :  { %5551 = vmatmul.bf16.vlgmr.msra.gmra.mxu0 %v10564_v63  ;;  %v10654_v40 = vpack.c.bf16 %v3763_v6, %v3755_v32  ;;  %v10656_v2 = vpack.c.bf16 %v3764_v19, %v3756_v56  ;;  %v8875_v46 = vor.u32 %v9839_v25, %v8872_v41  ;;  %v8843_v32 = vor.u32 %v9831_v1, %v8840_v61  ;;  %v9827_v6 = vld [vmem:[#allocation9 + $0x644] sm:$0xf]  ;;  %v8936_v41 = vld [vmem:[#allocation9 + $0x730] sm:$0xf0] }
 0x316   :  { %5599 = vmatpush.bf16.msrb.mxu0 %v8655_v37  ;;  %v8591_v37 = vor.u32 %v9770_v38, %v8590_v17  ;;  %v8543_v19 = vor.u32 %v9758_v13, %v8542_v62  ;;  %v9684_v17 = vld [vmem:[#allocation9 + $0x1cc] sm:$0xf]  ;;  %v8256_v38 = vld [vmem:[#allocation9 + $0x1d8] sm:$0xf0]  ;;  %v9855_v25 = vld [vmem:[#allocation9 + $0x724] sm:$0xf]  ;;  %v8923_v61 = vor.u32 %v9851_v3, %v8920_v0  ;;  %v8099_v62 = vor.u32 %v9644_v22, %v8096_v42 }
 0x317   :  { %5565 = vmatmul.bf16.vlgmr.msra.gmra.mxu1 %v10566_v35  ;;  %5411 = vmatmul.bf16.vlgmr.msrb.gmra.mxu2 %v10654_v40  ;;  %v9738_v0 = vld [vmem:[#allocation9 + $0x374] sm:$0xf0]  ;;  %v9816_v22 = vld [vmem:[#allocation9 + $0x5ec] sm:$0xf]  ;;  %v8784_v42 = vld [vmem:[#allocation9 + $0x5f8] sm:$0xf0] }
 0x318   :  { %5613 = vmatpush.bf16.msrb.mxu1 %v8783_v57  ;;  %5425 = vmatmul.bf16.vlgmr.msrb.gmra.mxu3 %v10656_v2  ;;  %v9000_v57 = vld [vmem:[#allocation9 + $0x7b0] sm:$0xf0] }
 0x319   :  { %5515 = vmatpush.bf16.msrb.mxu2 %v8907_v47  ;;  %5529 = vmatpush.bf16.msrb.mxu3 %v9035_v34  ;;  %v9003_v18 = vor.u32 %v9871_v23, %v9000_v57  ;;  %v8824_v34 = vld [vmem:[#allocation9 + $0x650] sm:$0xf0]  ;;  %v9648_v23 = vld [vmem:[#allocation9 + $0xac] sm:$0xf]  ;;  %v8112_v57 = vld [vmem:[#allocation9 + $0xb8] sm:$0xf0] }
 0x31a   :  { %5600 = vmatpush.bf16.msrb.mxu0 %v8639_v31  ;;  %v8703_v31 = vor.u32 %v9798_v15, %v8702_v50  ;;  %v8827_v14 = vor.u32 %v9827_v6, %v8824_v34  ;;  %v8939_v15 = vor.u32 %v9855_v25, %v8936_v41  ;;  %v8366_v6 = vld [vmem:[#allocation9 + $0x2a8] sm:$0xf]  ;;  %v9742_v41 = vld [vmem:[#allocation9 + $0x394] sm:$0xf0] }
 0x31b   :  { %v8478_v25 = vld [vmem:[#allocation9 + $0x388] sm:$0xf] }
 0x31c   :  { %5614 = vmatpush.bf16.msrb.mxu1 %v8767_v5  ;;  %v8984_v5 = vld [vmem:[#allocation9 + $0x790] sm:$0xf0] }
 0x31d   :  { %5516 = vmatpush.bf16.msrb.mxu2 %v8891_v48  ;;  %5530 = vmatpush.bf16.msrb.mxu3 %v9019_v24  ;;  %v8987_v9 = vor.u32 %v9867_v36, %v8984_v5  ;;  %v9823_v48 = vld [vmem:[#allocation9 + $0x624] sm:$0xf]  ;;  %v8808_v24 = vld [vmem:[#allocation9 + $0x630] sm:$0xf0]  ;;  %v8115_v36 = vor.u32 %v9648_v23, %v8112_v57  ;;  %v8243_v5 = vor.u32 %v9680_v54, %v8240_v10  ;;  %v9664_v23 = vld [vmem:[#allocation9 + $0x12c] sm:$0xf] }
 0x31e   :  { %5601 = vmatpush.bf16.msrb.mxu0 %v8623_v21  ;;  %v9863_v21 = vld [vmem:[#allocation9 + $0x764] sm:$0xf]  ;;  %v8811_v50 = vor.u32 %v9823_v48, %v8808_v24  ;;  %v8176_v57 = vld [vmem:[#allocation9 + $0x138] sm:$0xf0]  ;;  %v8479_v10 = vor.u32 %v9742_v41, %v8478_v25 }
 0x31f   :  { %v8971_v56 = vor.u32 %v9863_v21, %v8968_v11  ;;  %v9718_v11 = vld [vmem:[#allocation9 + $0x2d4] sm:$0xf0]  ;;  %v8179_v3 = vor.u32 %v9664_v23, %v8176_v57  ;;  %v9772_v23 = vld [vmem:[#allocation9 + $0x48c] sm:$0xf]  ;;  %v8608_v57 = vld [vmem:[#allocation9 + $0x498] sm:$0xf0] }
 0x320   :  { %5615 = vmatpush.bf16.msrb.mxu1 %v8751_v51  ;;  %v8670_v51 = vld [vmem:[#allocation9 + $0x508] sm:$0xf] }
 0x321   :  { %5517 = vmatpush.bf16.msrb.mxu2 %v8875_v46  ;;  %5531 = vmatpush.bf16.msrb.mxu3 %v9003_v18  ;;  %v8671_v47 = vor.u32 %v9790_v59, %v8670_v51  ;;  %v9819_v46 = vld [vmem:[#allocation9 + $0x604] sm:$0xf]  ;;  %v8792_v18 = vld [vmem:[#allocation9 + $0x610] sm:$0xf0]  ;;  %v8510_v51 = vld [vmem:[#allocation9 + $0x3c8] sm:$0xf] }
 0x322   :  { %5602 = vmatpush.bf16.msrb.mxu0 %v8607_v58  ;;  %v8147_v58 = vor.u32 %v9656_v39, %v8144_v55  ;;  %v8795_v1 = vor.u32 %v9819_v46, %v8792_v18  ;;  %v9750_v59 = vld [vmem:[#allocation9 + $0x3d4] sm:$0xf0]  ;;  %v9640_v39 = vld [vmem:[#allocation9 + $0x6c] sm:$0xf]  ;;  %v8080_v55 = vld [vmem:[#allocation9 + $0x78] sm:$0xf0] }
 0x323   :  { %v8462_v46 = vld [vmem:[#allocation9 + $0x368] sm:$0xf] }
 0x324   :  { %5616 = vmatpush.bf16.msrb.mxu1 %v8735_v49  ;;  %v8275_v49 = vor.u32 %v9688_v12, %v8272_v30  ;;  %v9672_v12 = vld [vmem:[#allocation9 + $0x16c] sm:$0xf]  ;;  %v8208_v30 = vld [vmem:[#allocation9 + $0x178] sm:$0xf0] }
 0x325   :  { %5518 = vmatpush.bf16.msrb.mxu2 %v8859_v28  ;;  %5532 = vmatpush.bf16.msrb.mxu3 %v8987_v9  ;;  %v9676_v28 = vld [vmem:[#allocation9 + $0x18c] sm:$0xf]  ;;  %v8224_v9 = vld [vmem:[#allocation9 + $0x198] sm:$0xf0]  ;;  %v8211_v34 = vor.u32 %v9672_v12, %v8208_v30 }
 0x326   :  { %5603 = vmatpush.bf16.msrb.mxu0 %v8591_v37  ;;  %v8131_v37 = vor.u32 %v9652_v60, %v8128_v45  ;;  %v8227_v13 = vor.u32 %v9676_v28, %v8224_v9  ;;  %v9668_v60 = vld [vmem:[#allocation9 + $0x14c] sm:$0xf]  ;;  %v8192_v45 = vld [vmem:[#allocation9 + $0x158] sm:$0xf0]  ;;  %v8463_v9 = vor.u32 %v9738_v0, %v8462_v46 }
 0x327   :  { %5467 = vmatmul.bf16.vlgmr.msra.gmra.mxu2 %v10568_v16  ;;  %v8195_v24 = vor.u32 %v9668_v60, %v8192_v45 }
 0x328   :  { %5617 = vmatpush.bf16.msrb.mxu1 %v8719_v43  ;;  %5481 = vmatmul.bf16.vlgmr.msra.gmra.mxu3 %v10574_v26  ;;  %v8259_v43 = vor.u32 %v9684_v17, %v8256_v38  ;;  %v8495_v38 = vor.u32 %v9746_v4, %v8494_v29  ;;  %v9776_v29 = vld [vmem:[#allocation9 + $0x4ac] sm:$0xf]  ;;  %v8624_v4 = vld [vmem:[#allocation9 + $0x4b8] sm:$0xf0] }
 0x329   :  { %5519 = vmatpush.bf16.msrb.mxu2 %v8843_v32  ;;  %5533 = vmatpush.bf16.msrb.mxu3 %v8971_v56  ;;  %v8511_v56 = vor.u32 %v9750_v59, %v8510_v51  ;;  %v9780_v51 = vld [vmem:[#allocation9 + $0x4cc] sm:$0xf]  ;;  %v8640_v59 = vld [vmem:[#allocation9 + $0x4d8] sm:$0xf0]  ;;  %v8627_v25 = vor.u32 %v9776_v29, %v8624_v4 }
 0x32a   :  { %5604 = vmatpush.bf16.msrb.mxu0 %v8575_v44  ;;  %v8398_v44 = vld [vmem:[#allocation9 + $0x2e8] sm:$0xf] }
 0x32c   :  { %5618 = vmatpush.bf16.msrb.mxu1 %v8703_v31  ;;  %v9722_v31 = vld [vmem:[#allocation9 + $0x2f4] sm:$0xf0] }
 0x32d   :  { %5520 = vmatpush.bf16.msrb.mxu2 %v8827_v14  ;;  %5534 = vmatpush.bf16.msrb.mxu3 %v8955_v52  ;;  %v8399_v21 = vor.u32 %v9722_v31, %v8398_v44  ;;  %v8350_v14 = vld [vmem:[#allocation9 + $0x288] sm:$0xf]  ;;  %v9710_v52 = vld [vmem:[#allocation9 + $0x294] sm:$0xf0]  ;;  %v9628_v44 = vld [vmem:[#allocation9 + $0xc] sm:$0xf] }
 0x32e   :  { %5605 = vmatpush.bf16.msrb.mxu0 %v8559_v8  ;;  %v8527_v8 = vor.u32 %v9754_v53, %v8526_v7  ;;  %v8351_v54 = vor.u32 %v9710_v52, %v8350_v14  ;;  %v8032_v31 = vld [vmem:[#allocation9 + $0x18] sm:$0xf0]  ;;  %v9784_v7 = vld [vmem:[#allocation9 + $0x4ec] sm:$0xf]  ;;  %v8414_v14 = vld [vmem:[#allocation9 + $0x308] sm:$0xf] }
 0x32f   :  { %v8656_v53 = vld [vmem:[#allocation9 + $0x4f8] sm:$0xf0]  ;;  %v9726_v52 = vld [vmem:[#allocation9 + $0x314] sm:$0xf0] }
 0x330   :  { %5619 = vmatpush.bf16.msrb.mxu1 %v8687_v33  ;;  %v8382_v33 = vld [vmem:[#allocation9 + $0x2c8] sm:$0xf] }
 0x331   :  { %5521 = vmatpush.bf16.msrb.mxu2 %v8811_v50  ;;  %5535 = vmatpush.bf16.msrb.mxu3 %v8939_v15  ;;  %v8383_v32 = vor.u32 %v9718_v11, %v8382_v33  ;;  %v8334_v50 = vld [vmem:[#allocation9 + $0x268] sm:$0xf]  ;;  %v9706_v15 = vld [vmem:[#allocation9 + $0x274] sm:$0xf0] }
 0x332   :  { %5606 = vmatpush.bf16.msrb.mxu0 %v8543_v19  ;;  %v9714_v19 = vld [vmem:[#allocation9 + $0x2b4] sm:$0xf0]  ;;  %v8335_v28 = vor.u32 %v9706_v15, %v8334_v50  ;;  %v8446_v33 = vld [vmem:[#allocation9 + $0x348] sm:$0xf]  ;;  %v8415_v15 = vor.u32 %v9726_v52, %v8414_v14  ;;  %v9756_v14 = vld [vmem:[#allocation9 + $0x40c] sm:$0xf] }
 0x333   :  { %v8367_v17 = vor.u32 %v9714_v19, %v8366_v6  ;;  %v9734_v11 = vld [vmem:[#allocation9 + $0x354] sm:$0xf0]  ;;  %v8430_v6 = vld [vmem:[#allocation9 + $0x328] sm:$0xf]  ;;  %v8544_v52 = vld [vmem:[#allocation9 + $0x418] sm:$0xf0] }
 0x334   :  { %5620 = vmatpush.bf16.msrb.mxu1 %v8671_v47  ;;  %v8083_v47 = vor.u32 %v9640_v39, %v8080_v55  ;;  %v9812_v39 = vld [vmem:[#allocation9 + $0x5cc] sm:$0xf]  ;;  %v8768_v55 = vld [vmem:[#allocation9 + $0x5d8] sm:$0xf0]  ;;  %v8447_v30 = vor.u32 %v9734_v11, %v8446_v33  ;;  %v9730_v19 = vld [vmem:[#allocation9 + $0x334] sm:$0xf0] }
 0x335   :  { %5607 = vmatmul.bf16.vlgmr.msrb.gmra.mxu0 %v10588_v27  ;;  %5522 = vmatpush.bf16.msrb.mxu2 %v8795_v1  ;;  %v8318_v1 = vld [vmem:[#allocation9 + $0x248] sm:$0xf]  ;;  %v8431_v45 = vor.u32 %v9730_v19, %v8430_v6  ;;  %v9764_v33 = vld [vmem:[#allocation9 + $0x44c] sm:$0xf]  ;;  %v8576_v11 = vld [vmem:[#allocation9 + $0x458] sm:$0xf0] }
 0x336   :  { %5655 = vmatpush.bf16.msra.mxu0 %v8147_v58  ;;  %5536 = vmatpush.bf16.msrb.mxu3 %v8923_v61  ;;  %v9636_v58 = vld [vmem:[#allocation9 + $0x4c] sm:$0xf]  ;;  %v8035_v61 = vor.u32 %v9628_v44, %v8032_v31  ;;  %v9022_v44 = vld [vmem:[#allocation9 + $0x7c8] sm:$0xf]  ;;  %v9878_v31 = vld [vmem:[#allocation9 + $0x7d4] sm:$0xf0] }
 0x337   :  { %5621 = vmatmul.bf16.vlgmr.msrb.gmra.mxu1 %v10590_v20  ;;  %v9760_v6 = vld [vmem:[#allocation9 + $0x42c] sm:$0xf]  ;;  %v8560_v19 = vld [vmem:[#allocation9 + $0x438] sm:$0xf0] }
 0x338   :  { %5669 = vmatpush.bf16.msra.mxu1 %v8275_v49  ;;  %5523 = vmatmul.bf16.vlgmr.msrb.gmra.mxu2 %v10654_v40  ;;  %v8064_v49 = vld [vmem:[#allocation9 + $0x58] sm:$0xf0] }
 0x339   :  { %5571 = vmatpush.bf16.msra.mxu2 %v8399_v21  ;;  %5537 = vmatmul.bf16.vlgmr.msrb.gmra.mxu3 %v10656_v2  ;;  %v8067_v48 = vor.u32 %v9636_v58, %v8064_v49  ;;  %v9808_v58 = vld [vmem:[#allocation9 + $0x5ac] sm:$0xf]  ;;  %v8752_v49 = vld [vmem:[#allocation9 + $0x5b8] sm:$0xf0] }
 0x33a   :  { %5656 = vmatpush.bf16.msra.mxu0 %v8131_v37  ;;  %5585 = vmatpush.bf16.msra.mxu3 %v8527_v8  ;;  %v9632_v37 = vld [vmem:[#allocation9 + $0x2c] sm:$0xf]  ;;  %v9702_v8 = vld [vmem:[#allocation9 + $0x254] sm:$0xf0]  ;;  %v8755_v41 = vor.u32 %v9808_v58, %v8752_v49  ;;  %v8846_v58 = vld [vmem:[#allocation9 + $0x668] sm:$0xf] }
 0x33b   :  { %v8319_v12 = vor.u32 %v9702_v8, %v8318_v1  ;;  %v9874_v8 = vld [vmem:[#allocation9 + $0x7b4] sm:$0xf0] }
 0x33c   :  { %5670 = vmatpush.bf16.msra.mxu1 %v8259_v43  ;;  %v8048_v43 = vld [vmem:[#allocation9 + $0x38] sm:$0xf0]  ;;  %v9834_v49 = vld [vmem:[#allocation9 + $0x674] sm:$0xf0] }
 0x33d   :  { %5572 = vmatpush.bf16.msra.mxu2 %v8383_v32  ;;  %v8051_v18 = vor.u32 %v9632_v37, %v8048_v43  ;;  %v8302_v32 = vld [vmem:[#allocation9 + $0x228] sm:$0xf]  ;;  %v9882_v43 = vld [vmem:[#allocation9 + $0x7f4] sm:$0xf0] }
 0x33e   :  { %5657 = vmatpush.bf16.msra.mxu0 %v8115_v36  ;;  %5586 = vmatpush.bf16.msra.mxu3 %v8511_v56  ;;  %v9660_v36 = vld [vmem:[#allocation9 + $0x10c] sm:$0xf]  ;;  %v9698_v56 = vld [vmem:[#allocation9 + $0x234] sm:$0xf0]  ;;  %v9038_v37 = vld [vmem:[#allocation9 + $0x7e8] sm:$0xf] }
 0x33f   :  { %v8303_v60 = vor.u32 %v9698_v56, %v8302_v32  ;;  %v9039_v46 = vor.u32 %v9882_v43, %v9038_v37  ;;  %v8990_v32 = vld [vmem:[#allocation9 + $0x788] sm:$0xf]  ;;  %v9870_v56 = vld [vmem:[#allocation9 + $0x794] sm:$0xf0]  ;;  %v8547_v43 = vor.u32 %v9756_v14, %v8544_v52  ;;  %v8448_v14 = vld [vmem:[#allocation9 + $0x358] sm:$0xf0] }
 0x340   :  { %5671 = vmatpush.bf16.msra.mxu1 %v8243_v5  ;;  %v8160_v5 = vld [vmem:[#allocation9 + $0x118] sm:$0xf0]  ;;  %v8991_v4 = vor.u32 %v9870_v56, %v8990_v32  ;;  %v8830_v37 = vld [vmem:[#allocation9 + $0x648] sm:$0xf]  ;;  %v9740_v32 = vld [vmem:[#allocation9 + $0x38c] sm:$0xf] }
 0x341   :  { %5573 = vmatpush.bf16.msra.mxu2 %v8367_v17  ;;  %v8163_v21 = vor.u32 %v9660_v36, %v8160_v5  ;;  %v8286_v17 = vld [vmem:[#allocation9 + $0x208] sm:$0xf]  ;;  %v9768_v36 = vld [vmem:[#allocation9 + $0x46c] sm:$0xf]  ;;  %v8592_v5 = vld [vmem:[#allocation9 + $0x478] sm:$0xf0] }
 0x342   :  { %5658 = vmatpush.bf16.msra.mxu0 %v8099_v62  ;;  %5587 = vmatpush.bf16.msra.mxu3 %v8495_v38  ;;  %v8659_v62 = vor.u32 %v9784_v7, %v8656_v53  ;;  %v9694_v38 = vld [vmem:[#allocation9 + $0x214] sm:$0xf0]  ;;  %v9800_v7 = vld [vmem:[#allocation9 + $0x56c] sm:$0xf]  ;;  %v8720_v53 = vld [vmem:[#allocation9 + $0x578] sm:$0xf0]  ;;  %v8595_v1 = vor.u32 %v9768_v36, %v8592_v5 }
 0x343   :  { %v8287_v50 = vor.u32 %v9694_v38, %v8286_v17  ;;  %v8974_v17 = vld [vmem:[#allocation9 + $0x768] sm:$0xf]  ;;  %v9866_v38 = vld [vmem:[#allocation9 + $0x774] sm:$0xf0]  ;;  %v8480_v56 = vld [vmem:[#allocation9 + $0x398] sm:$0xf0] }
 0x344   :  { %5672 = vmatpush.bf16.msra.mxu1 %v8227_v13  ;;  %v8787_v13 = vor.u32 %v9816_v22, %v8784_v42  ;;  %v9023_v42 = vor.u32 %v9878_v31, %v9022_v44  ;;  %v8798_v44 = vld [vmem:[#allocation9 + $0x608] sm:$0xf]  ;;  %v9822_v31 = vld [vmem:[#allocation9 + $0x614] sm:$0xf0] }
 0x345   :  { %5574 = vmatpush.bf16.msra.mxu2 %v8351_v54  ;;  %v9804_v54 = vld [vmem:[#allocation9 + $0x58c] sm:$0xf]  ;;  %v8926_v36 = vld [vmem:[#allocation9 + $0x708] sm:$0xf]  ;;  %v9854_v5 = vld [vmem:[#allocation9 + $0x714] sm:$0xf0] }
 0x346   :  { %5659 = vmatpush.bf16.msra.mxu0 %v8083_v47  ;;  %5588 = vmatpush.bf16.msra.mxu3 %v8479_v10  ;;  %v8643_v47 = vor.u32 %v9780_v51, %v8640_v59  ;;  %v8736_v10 = vld [vmem:[#allocation9 + $0x598] sm:$0xf0] }
 0x347   :  { %v8739_v0 = vor.u32 %v9804_v54, %v8736_v10  ;;  %v8958_v54 = vld [vmem:[#allocation9 + $0x748] sm:$0xf]  ;;  %v9862_v10 = vld [vmem:[#allocation9 + $0x754] sm:$0xf0] }
 0x348   :  { %5673 = vmatpush.bf16.msra.mxu1 %v8211_v34  ;;  %v8771_v34 = vor.u32 %v9812_v39, %v8768_v55  ;;  %v8862_v39 = vld [vmem:[#allocation9 + $0x688] sm:$0xf]  ;;  %v9838_v55 = vld [vmem:[#allocation9 + $0x694] sm:$0xf0] }
 0x349   :  { %5575 = vmatpush.bf16.msra.mxu2 %v8335_v28  ;;  %v8878_v28 = vld [vmem:[#allocation9 + $0x6a8] sm:$0xf]  ;;  %v8863_v29 = vor.u32 %v9838_v55, %v8862_v39 }
 0x34a   :  { %5660 = vmatpush.bf16.msra.mxu0 %v8067_v48  ;;  %5589 = vmatpush.bf16.msra.mxu3 %v8463_v9  ;;  %v8910_v48 = vld [vmem:[#allocation9 + $0x6e8] sm:$0xf]  ;;  %v9842_v9 = vld [vmem:[#allocation9 + $0x6b4] sm:$0xf0] }
 0x34b   :  { %v8879_v51 = vor.u32 %v9842_v9, %v8878_v28  ;;  %v8799_v28 = vor.u32 %v9822_v31, %v8798_v44  ;;  %v8927_v9 = vor.u32 %v9854_v5, %v8926_v36  ;;  %v10680_v31 = vpop.f32.mrf.mxu2  ;;  %v10682_v36 = vpop.f32.mrf.mxu3 }
 0x34c   :  { %5674 = vmatpush.bf16.msra.mxu1 %v8195_v24  ;;  %v9850_v24 = vld [vmem:[#allocation9 + $0x6f4] sm:$0xf0] }
 0x34d   :  { %5576 = vmatpush.bf16.msra.mxu2 %v8319_v12  ;;  %v8579_v12 = vor.u32 %v9764_v33, %v8576_v11  ;;  %v9748_v33 = vld [vmem:[#allocation9 + $0x3cc] sm:$0xf]  ;;  %v8512_v11 = vld [vmem:[#allocation9 + $0x3d8] sm:$0xf0] }
 0x34e   :  { %5661 = vmatpush.bf16.msra.mxu0 %v8051_v18  ;;  %5590 = vmatpush.bf16.msra.mxu3 %v8447_v30  ;;  %v9846_v18 = vld [vmem:[#allocation9 + $0x6d4] sm:$0xf0] }
 0x350   :  { %5675 = vmatpush.bf16.msra.mxu1 %v8179_v3  ;;  %v8611_v3 = vor.u32 %v9772_v23, %v8608_v57  ;;  %v9830_v57 = vld [vmem:[#allocation9 + $0x654] sm:$0xf0] }
 0x351   :  { %5577 = vmatpush.bf16.msra.mxu2 %v8303_v60  ;;  %v8563_v60 = vor.u32 %v9760_v6, %v8560_v19  ;;  %v8483_v19 = vor.u32 %v9740_v32, %v8480_v56  ;;  %v9898_v32 = vld [vmem:[#allocation12 + $0x78] sm:$0xff] }
 0x352   :  { %5662 = vmatpush.bf16.msra.mxu0 %v8035_v61  ;;  %5591 = vmatpush.bf16.msra.mxu3 %v8431_v45  ;;  %v8723_v61 = vor.u32 %v9800_v7, %v8720_v53  ;;  %v9720_v7 = vld [vmem:[#allocation9 + $0x2ec] sm:$0xf]  ;;  %v8400_v53 = vld [vmem:[#allocation9 + $0x2f8] sm:$0xf0] }
 0x354   :  { %5676 = vmatpush.bf16.msra.mxu1 %v8163_v21  ;;  %v9006_v21 = vld [vmem:[#allocation9 + $0x7a8] sm:$0xf] }
 0x355   :  { %5663 = vmatmul.bf16.vlgmr.msra.gmra.mxu0 %v10564_v63  ;;  %v8911_v63 = vor.u32 %v9850_v24, %v8910_v48  ;;  %5578 = vmatpush.bf16.msra.mxu2 %v8287_v50  ;;  %v9007_v59 = vor.u32 %v9874_v8, %v9006_v21  ;;  %v9788_v48 = vld [vmem:[#allocation9 + $0x50c] sm:$0xf]  ;;  %v8672_v24 = vld [vmem:[#allocation9 + $0x518] sm:$0xf0]  ;;  %v8831_v50 = vor.u32 %v9830_v57, %v8830_v37 }
 0x356   :  { %5711 = vmatpush.bf16.msrb.mxu0 %v8659_v62  ;;  %5592 = vmatpush.bf16.msra.mxu3 %v8415_v15  ;;  %v9796_v62 = vld [vmem:[#allocation9 + $0x54c] sm:$0xf]  ;;  %v8675_v23 = vor.u32 %v9788_v48, %v8672_v24  ;;  %v8959_v15 = vor.u32 %v9862_v10, %v8958_v54  ;;  %v8384_v8 = vld [vmem:[#allocation9 + $0x2d8] sm:$0xf0] }
 0x357   :  { %5677 = vmatmul.bf16.vlgmr.msra.gmra.mxu1 %v10566_v35  ;;  %v8894_v35 = vld [vmem:[#allocation9 + $0x6c8] sm:$0xf]  ;;  %v9716_v21 = vld [vmem:[#allocation9 + $0x2cc] sm:$0xf]  ;;  %v8432_v37 = vld [vmem:[#allocation9 + $0x338] sm:$0xf0] }
 0x358   :  { %5725 = vmatpush.bf16.msrb.mxu1 %v8787_v13  ;;  %v8895_v22 = vor.u32 %v9846_v18, %v8894_v35  ;;  %5579 = vmatmul.bf16.vlgmr.msra.gmra.mxu2 %v10568_v16  ;;  %v8704_v13 = vld [vmem:[#allocation9 + $0x558] sm:$0xf0]  ;;  %v8942_v35 = vld [vmem:[#allocation9 + $0x728] sm:$0xf]  ;;  %v9858_v18 = vld [vmem:[#allocation9 + $0x734] sm:$0xf0] }
 0x359   :  { %5627 = vmatpush.bf16.msrb.mxu2 %v8911_v63  ;;  %5593 = vmatmul.bf16.vlgmr.msra.gmra.mxu3 %v10574_v26  ;;  %v8707_v30 = vor.u32 %v9796_v62, %v8704_v13  ;;  %v8814_v63 = vld [vmem:[#allocation9 + $0x628] sm:$0xf]  ;;  %v9712_v62 = vld [vmem:[#allocation9 + $0x2ac] sm:$0xf]  ;;  %v8368_v13 = vld [vmem:[#allocation9 + $0x2b8] sm:$0xf0] }
 0x35a   :  { %5712 = vmatpush.bf16.msrb.mxu0 %v8643_v47  ;;  %5641 = vmatpush.bf16.msrb.mxu3 %v9039_v46  ;;  %v9792_v47 = vld [vmem:[#allocation9 + $0x52c] sm:$0xf]  ;;  %v9826_v46 = vld [vmem:[#allocation9 + $0x634] sm:$0xf0]  ;;  %v8371_v39 = vor.u32 %v9712_v62, %v8368_v13  ;;  %v8288_v10 = vld [vmem:[#allocation9 + $0x218] sm:$0xf0] }
 0x35b   :  { %v9696_v24 = vld [vmem:[#allocation9 + $0x22c] sm:$0xf] }
 0x35c   :  { %5726 = vmatpush.bf16.msrb.mxu1 %v8771_v34  ;;  %v8688_v34 = vld [vmem:[#allocation9 + $0x538] sm:$0xf0]  ;;  %v9692_v54 = vld [vmem:[#allocation9 + $0x20c] sm:$0xf] }
 0x35d   :  { %5628 = vmatpush.bf16.msrb.mxu2 %v8895_v22  ;;  %v8691_v45 = vor.u32 %v9792_v47, %v8688_v34  ;;  %v9752_v22 = vld [vmem:[#allocation9 + $0x3ec] sm:$0xf]  ;;  %v8336_v34 = vld [vmem:[#allocation9 + $0x278] sm:$0xf0] }
 0x35e   :  { %5713 = vmatpush.bf16.msrb.mxu0 %v8627_v25  ;;  %5642 = vmatpush.bf16.msrb.mxu3 %v9023_v42  ;;  %v8847_v25 = vor.u32 %v9834_v49, %v8846_v58  ;;  %v8528_v42 = vld [vmem:[#allocation9 + $0x3f8] sm:$0xf0]  ;;  %v9704_v47 = vld [vmem:[#allocation9 + $0x26c] sm:$0xf] }
 0x35f   :  { %v8339_v58 = vor.u32 %v9704_v47, %v8336_v34  ;;  %v9836_v13 = vld [vmem:[#allocation9 + $0x68c] sm:$0xf]  ;;  %v8976_v34 = vld [vmem:[#allocation9 + $0x778] sm:$0xf0] }
 0x360   :  { %5727 = vmatpush.bf16.msrb.mxu1 %v8755_v41  ;;  %v8975_v41 = vor.u32 %v9866_v38, %v8974_v17  ;;  %v8320_v17 = vld [vmem:[#allocation9 + $0x258] sm:$0xf0]  ;;  %v9732_v38 = vld [vmem:[#allocation9 + $0x34c] sm:$0xf] }
 0x361   :  { %5629 = vmatpush.bf16.msrb.mxu2 %v8879_v51  ;;  %v9744_v51 = vld [vmem:[#allocation9 + $0x3ac] sm:$0xf]  ;;  %v8451_v48 = vor.u32 %v9732_v38, %v8448_v14  ;;  %v8832_v38 = vld [vmem:[#allocation9 + $0x658] sm:$0xf0] }
 0x362   :  { %5714 = vmatpush.bf16.msrb.mxu0 %v8611_v3  ;;  %5643 = vmatpush.bf16.msrb.mxu3 %v9007_v59  ;;  %v8815_v3 = vor.u32 %v9826_v46, %v8814_v63  ;;  %v8496_v59 = vld [vmem:[#allocation9 + $0x3b8] sm:$0xf0]  ;;  %v9848_v63 = vld [vmem:[#allocation9 + $0x6ec] sm:$0xf] }
 0x363   :  { %v8499_v55 = vor.u32 %v9744_v51, %v8496_v59  ;;  %v8912_v46 = vld [vmem:[#allocation9 + $0x6f8] sm:$0xf0]  ;;  %v9868_v59 = vld [vmem:[#allocation9 + $0x78c] sm:$0xf] }
 0x364   :  { %5728 = vmatpush.bf16.msrb.mxu1 %v8739_v0  ;;  %v8943_v0 = vor.u32 %v9858_v18, %v8942_v35  ;;  %v9880_v35 = vld [vmem:[#allocation9 + $0x7ec] sm:$0xf]  ;;  %v9040_v18 = vld [vmem:[#allocation9 + $0x7f8] sm:$0xf0]  ;;  %v8915_v5 = vor.u32 %v9848_v63, %v8912_v46  ;;  %v9887_v63 = vld [vmem:[#allocation12 + $0x20] sm:$0xff] }
 0x365   :  { %5630 = vmatpush.bf16.msrb.mxu2 %v8863_v29  ;;  %v9736_v29 = vld [vmem:[#allocation9 + $0x36c] sm:$0xf]  ;;  %v8864_v51 = vld [vmem:[#allocation9 + $0x698] sm:$0xf0]  ;;  %v9895_v46 = vld [vmem:[#allocation12 + $0x60] sm:$0xff] }
 0x366   :  { %5715 = vmatpush.bf16.msrb.mxu0 %v8595_v1  ;;  %5644 = vmatpush.bf16.msrb.mxu3 %v8991_v4  ;;  %v8403_v1 = vor.u32 %v9720_v7, %v8400_v53  ;;  %v8464_v4 = vld [vmem:[#allocation9 + $0x378] sm:$0xf0]  ;;  %v9043_v7 = vor.u32 %v9880_v35, %v9040_v18  ;;  %v9844_v53 = vld [vmem:[#allocation9 + $0x6cc] sm:$0xf] }
 0x367   :  { %v8467_v49 = vor.u32 %v9736_v29, %v8464_v4  ;;  %v9864_v47 = vld [vmem:[#allocation9 + $0x76c] sm:$0xf]  ;;  %v9889_v29 = vld [vmem:[#allocation12 + $0x30] sm:$0xff] }
 0x368   :  { %5729 = vmatpush.bf16.msrb.mxu1 %v8723_v61  ;;  %v8531_v61 = vor.u32 %v9752_v22, %v8528_v42  ;;  %v8896_v22 = vld [vmem:[#allocation9 + $0x6d8] sm:$0xf0]  ;;  %v9876_v42 = vld [vmem:[#allocation9 + $0x7cc] sm:$0xf]  ;;  %v9897_v4 = vld [vmem:[#allocation12 + $0x70] sm:$0xff] }
 0x369   :  { %5631 = vmatpush.bf16.msrb.mxu2 %v8847_v25  ;;  %v8304_v25 = vld [vmem:[#allocation9 + $0x238] sm:$0xf0]  ;;  %v9860_v14 = vld [vmem:[#allocation9 + $0x74c] sm:$0xf] }
 0x36a   :  { %5716 = vmatpush.bf16.msrb.mxu0 %v8579_v12  ;;  %5645 = vmatpush.bf16.msrb.mxu3 %v8975_v41  ;;  %v9708_v12 = vld [vmem:[#allocation9 + $0x28c] sm:$0xf] }
 0x36b   :  { %v9728_v41 = vld [vmem:[#allocation9 + $0x32c] sm:$0xf] }
 0x36c   :  { %5730 = vmatpush.bf16.msrb.mxu1 %v8707_v30  ;;  %v8352_v30 = vld [vmem:[#allocation9 + $0x298] sm:$0xf0]  ;;  %v8435_v57 = vor.u32 %v9728_v41, %v8432_v37  ;;  %v9896_v41 = vld [vmem:[#allocation12 + $0x68] sm:$0xff] }
 0x36d   :  { %5632 = vmatpush.bf16.msrb.mxu2 %v8831_v50  ;;  %v8355_v6 = vor.u32 %v9708_v12, %v8352_v30  ;;  %v9724_v50 = vld [vmem:[#allocation9 + $0x30c] sm:$0xf]  ;;  %v10692_v12 = vpop.f32.mrf.mxu3  ;;  %v9890_v30 = vld [vmem:[#allocation12 + $0x38] sm:$0xff] }
 0x36e   :  { %5717 = vmatpush.bf16.msrb.mxu0 %v8563_v60  ;;  %5646 = vmatpush.bf16.msrb.mxu3 %v8959_v15  ;;  %v9700_v60 = vld [vmem:[#allocation9 + $0x24c] sm:$0xf]  ;;  %v8416_v15 = vld [vmem:[#allocation9 + $0x318] sm:$0xf0] }
 0x36f   :  { %v8323_v52 = vor.u32 %v9700_v60, %v8320_v17  ;;  %v8419_v44 = vor.u32 %v9724_v50, %v8416_v15  ;;  %v8979_v60 = vor.u32 %v9864_v47, %v8976_v34  ;;  %v9828_v17 = vld [vmem:[#allocation9 + $0x64c] sm:$0xf]  ;;  %v8944_v15 = vld [vmem:[#allocation9 + $0x738] sm:$0xf0]  ;;  %v9883_v34 = vld [vmem:[#allocation12] sm:$0xff] }
 0x370   :  { %5731 = vmatpush.bf16.msrb.mxu1 %v8691_v45  ;;  %v10674_v45 = vpop.f32.mrf.mxu0  ;;  %v8835_v37 = vor.u32 %v9828_v17, %v8832_v38  ;;  %v9856_v50 = vld [vmem:[#allocation9 + $0x72c] sm:$0xf] }
 0x371   :  { %5633 = vmatpush.bf16.msrb.mxu2 %v8815_v3 }
 0x372   :  { %5718 = vmatpush.bf16.msrb.mxu0 %v8547_v43  ;;  %5647 = vmatpush.bf16.msrb.mxu3 %v8943_v0  ;;  %v10676_v43 = vpop.f32.mrf.mxu1  ;;  %v8291_v0 = vor.u32 %v9692_v54, %v8288_v10  ;;  %v8816_v10 = vld [vmem:[#allocation9 + $0x638] sm:$0xf0] }
 0x374   :  { %5732 = vmatpush.bf16.msrb.mxu1 %v8675_v23  ;;  %v8307_v23 = vor.u32 %v9696_v24, %v8304_v25  ;;  %v9888_v25 = vld [vmem:[#allocation12 + $0x28] sm:$0xff] }
 0x375   :  { %5719 = vmatmul.bf16.vlgmr.msrb.gmra.mxu0 %v10588_v27  ;;  %5634 = vmatpush.bf16.msrb.mxu2 %v8799_v28  ;;  %v8387_v27 = vor.u32 %v9716_v21, %v8384_v8  ;;  %v9024_v28 = vld [vmem:[#allocation9 + $0x7d8] sm:$0xf0]  ;;  %v9840_v21 = vld [vmem:[#allocation9 + $0x6ac] sm:$0xf] }
 0x376   :  { %5648 = vmatpush.bf16.msrb.mxu3 %v8927_v9  ;;  %v8880_v8 = vld [vmem:[#allocation9 + $0x6b8] sm:$0xf0]  ;;  %6071 = vmatpush.bf16.msra.mxu0 %v9890_v30  ;;  %v9884_v30 = vld [vmem:[#allocation12 + $0x8] sm:$0xff] }
 0x377   :  { %5733 = vmatmul.bf16.vlgmr.msrb.gmra.mxu1 %v10590_v20  ;;  %v8515_v20 = vor.u32 %v9748_v33, %v8512_v11  ;;  %v9872_v33 = vld [vmem:[#allocation9 + $0x7ac] sm:$0xf]  ;;  %v9008_v11 = vld [vmem:[#allocation9 + $0x7b8] sm:$0xf0] }
 0x378   :  { %5635 = vmatmul.bf16.vlgmr.msrb.gmra.mxu2 %v10654_v40  ;;  %v10678_v3 = vpop.f32.mrf.mxu0  ;;  %v9011_v62 = vor.u32 %v9872_v33, %v9008_v11  ;;  %6085 = vmatpush.bf16.msra.mxu1 %v9898_v32  ;;  %v9892_v32 = vld [vmem:[#allocation12 + $0x48] sm:$0xff] }
 0x379   :  { %5683 = vmatpush.bf16.msra.mxu2 %v8403_v1  ;;  %5649 = vmatmul.bf16.vlgmr.msrb.gmra.mxu3 %v10656_v2  ;;  %v8899_v1 = vor.u32 %v9844_v53, %v8896_v22  ;;  %v8928_v53 = vld [vmem:[#allocation9 + $0x718] sm:$0xf0] }
 0x37a   :  { %5697 = vmatpush.bf16.msra.mxu3 %v8531_v61  ;;  %v10684_v9 = vpop.f32.mrf.mxu1  ;;  %v9027_v61 = vor.u32 %v9876_v42, %v9024_v28  ;;  %6072 = vmatpush.bf16.msra.mxu0 %v9889_v29  ;;  %v9886_v28 = vld [vmem:[#allocation12 + $0x18] sm:$0xff]  ;;  %v9891_v29 = vld [vmem:[#allocation12 + $0x40] sm:$0xff] }
 0x37c   :  { %6086 = vmatpush.bf16.msra.mxu1 %v9897_v4 }
 0x37d   :  { %5684 = vmatpush.bf16.msra.mxu2 %v8387_v27 }
 0x37e   :  { %5698 = vmatpush.bf16.msra.mxu3 %v8515_v20  ;;  %v8883_v20 = vor.u32 %v9840_v21, %v8880_v8  ;;  %6073 = vmatpush.bf16.msra.mxu0 %v9888_v25 }
 0x380   :  { %v10686_v27 = vpop.f32.mrf.mxu0  ;;  %6087 = vmatpush.bf16.msra.mxu1 %v9896_v41 }
 0x381   :  { %5685 = vmatpush.bf16.msra.mxu2 %v8371_v39  ;;  %v8992_v39 = vld [vmem:[#allocation9 + $0x798] sm:$0xf0] }
 0x382   :  { %5699 = vmatpush.bf16.msra.mxu3 %v8499_v55  ;;  %v10690_v55 = vpop.f32.mrf.mxu2  ;;  %v10694_v56 = vpop.f32.mrf.mxu1  ;;  %6074 = vmatpush.bf16.msra.mxu0 %v9887_v63 }
 0x384   :  { %6088 = vmatpush.bf16.msra.mxu1 %v9895_v46 }
 0x385   :  { %5686 = vmatpush.bf16.msra.mxu2 %v8355_v6  ;;  %v9832_v6 = vld [vmem:[#allocation9 + $0x66c] sm:$0xf] }
 0x386   :  { %5700 = vmatpush.bf16.msra.mxu3 %v8483_v19  ;;  %v8848_v19 = vld [vmem:[#allocation9 + $0x678] sm:$0xf0]  ;;  %6075 = vmatpush.bf16.msra.mxu0 %v9886_v28 }
 0x389   :  { %5687 = vmatpush.bf16.msra.mxu2 %v8339_v58  ;;  %v10696_v58 = vpop.f32.mrf.mxu0 }
 0x38a   :  { %5701 = vmatpush.bf16.msra.mxu3 %v8467_v49  ;;  %v8851_v49 = vor.u32 %v9832_v6, %v8848_v19  ;;  %v10702_v54 = vpop.f32.mrf.mxu1 }
 0x38d   :  { %5688 = vmatpush.bf16.msra.mxu2 %v8323_v52  ;;  %v8960_v52 = vld [vmem:[#allocation9 + $0x758] sm:$0xf0] }
 0x38e   :  { %5702 = vmatpush.bf16.msra.mxu3 %v8451_v48 }
 0x391   :  { %5689 = vmatpush.bf16.msra.mxu2 %v8307_v23  ;;  %v8963_v23 = vor.u32 %v9860_v14, %v8960_v52  ;;  %v5440_v35 = vpop.f32.mrf.mxu0 }
 0x392   :  { %5703 = vmatpush.bf16.msra.mxu3 %v8435_v57  ;;  %v9824_v57 = vld [vmem:[#allocation9 + $0x62c] sm:$0xf]  ;;  %v5454_v11 = vpop.f32.mrf.mxu1 }
 0x393   :  { %v8819_v18 = vor.u32 %v9824_v57, %v8816_v10 }
 0x395   :  { %5690 = vmatpush.bf16.msra.mxu2 %v8291_v0  ;;  %v8947_v0 = vor.u32 %v9856_v50, %v8944_v15 }
 0x396   :  { %5704 = vmatpush.bf16.msra.mxu3 %v8419_v44  ;;  %v9820_v44 = vld [vmem:[#allocation9 + $0x60c] sm:$0xf] }
 0x398   :  { %5691 = vmatmul.bf16.vlgmr.msra.gmra.mxu2 %v10568_v16  ;;  %v8867_v16 = vor.u32 %v9836_v13, %v8864_v51  ;;  %v9893_v13 = vld [vmem:[#allocation12 + $0x50] sm:$0xff] }
 0x399   :  { %5739 = vmatpush.bf16.msrb.mxu2 %v8915_v5  ;;  %5705 = vmatmul.bf16.vlgmr.msra.gmra.mxu3 %v10574_v26  ;;  %v8995_v26 = vor.u32 %v9868_v59, %v8992_v39  ;;  %v8800_v5 = vld [vmem:[#allocation9 + $0x618] sm:$0xf0]  ;;  %v5442_v39 = vpop.f32.mrf.mxu0 }
 0x39a   :  { %5753 = vmatpush.bf16.msrb.mxu3 %v9043_v7  ;;  %v10698_v48 = vpop.f32.mrf.mxu2  ;;  %v9852_v7 = vld [vmem:[#allocation9 + $0x70c] sm:$0xf]  ;;  %v8803_v8 = vor.u32 %v9820_v44, %v8800_v5  ;;  %v5456_v4 = vpop.f32.mrf.mxu1 }
 0x39b   :  { %v10700_v24 = vpop.f32.mrf.mxu3  ;;  %v8931_v33 = vor.u32 %v9852_v7, %v8928_v53 }
 0x39d   :  { %5740 = vmatpush.bf16.msrb.mxu2 %v8899_v1  ;;  %v9894_v1 = vld [vmem:[#allocation12 + $0x58] sm:$0xff] }
 0x39e   :  { %5754 = vmatpush.bf16.msrb.mxu3 %v9027_v61  ;;  %v10708_v61 = vld [vmem:[#allocation11] sm:$0xf]  ;;  %6089 = vmatpush.bf16.msra.mxu1 %v9894_v1 }
 0x39f   :  { %v4032_v21 = vperm.slane %v10708_v61, 1 }
 0x3a1   :  { %5741 = vmatpush.bf16.msrb.mxu2 %v8883_v20  ;;  %v4031_v20 = vperm.slane %v10708_v61, 0  ;;  %v5441_v51 = vadd.f32 %v5440_v35, %v4032_v21  ;;  %v5496_v17 = vpop.f32.mrf.mxu0 }
 0x3a2   :  { %5755 = vmatpush.bf16.msrb.mxu3 %v9011_v62  ;;  %v10704_v22 = vpop.f32.mrf.mxu2  ;;  %v9885_v62 = vld [vmem:[#allocation12 + $0x10] sm:$0xff]  ;;  %6090 = vmatpush.bf16.msra.mxu1 %v9893_v13 }
 0x3a3   :  { %v10706_v42 = vpop.f32.mrf.mxu3  ;;  %6076 = vmatpush.bf16.msra.mxu0 %v9885_v62  ;;  %v5329_v59 = vadd.f32 %v10674_v45, %v4031_v20  ;;  %v5455_v6 = vadd.f32 %v5454_v11, %v5441_v51 }
 0x3a5   :  { %5742 = vmatpush.bf16.msrb.mxu2 %v8867_v16  ;;  %v5343_v19 = vadd.f32 %v10676_v43, %v5329_v59 }
 0x3a6   :  { %5756 = vmatpush.bf16.msrb.mxu3 %v8995_v26  ;;  %6091 = vmatpush.bf16.msra.mxu1 %v9892_v32 }
 0x3a7   :  { %6077 = vmatpush.bf16.msra.mxu0 %v9884_v30  ;;  %v5357_v45 = vadd.f32 %v10680_v31, %v5343_v19 }
 0x3a9   :  { %5743 = vmatpush.bf16.msrb.mxu2 %v8851_v49  ;;  %v5331_v49 = vadd.f32 %v10678_v3, %v4031_v20  ;;  %v5371_v14 = vadd.f32 %v10682_v36, %v5357_v45  ;;  %v5498_v35 = vpop.f32.mrf.mxu0 }
 0x3aa   :  { %5757 = vmatpush.bf16.msrb.mxu3 %v8979_v60  ;;  %v5468_v16 = vpop.f32.mrf.mxu2  ;;  %v5443_v60 = vadd.f32 %v5442_v39, %v4032_v21  ;;  %6092 = vmatpush.bf16.msra.mxu1 %v9891_v29  ;;  %v9905_v29 = vld [vmem:[#allocation12 + $0xb0] sm:$0xff] }
 0x3ab   :  { %v5482_v26 = vpop.f32.mrf.mxu3  ;;  %v5469_v47 = vadd.f32 %v5468_v16, %v5455_v6  ;;  %6078 = vmatpush.bf16.msra.mxu0 %v9883_v34  ;;  %v5345_v52 = vadd.f32 %v10684_v9, %v5331_v49  ;;  %v5385_v41 = vadd.f32 %v10686_v27, %v5371_v14  ;;  %v9914_v34 = vld [vmem:[#allocation12 + $0xf8] sm:$0xff]  ;;  %v9904_v14 = vld [vmem:[#allocation12 + $0xa8] sm:$0xff] }
 0x3ac   :  { %v5457_v43 = vadd.f32 %v5456_v4, %v5443_v60  ;;  %v9913_v4 = vld [vmem:[#allocation12 + $0xf0] sm:$0xff] }
 0x3ad   :  { %5744 = vmatpush.bf16.msrb.mxu2 %v8835_v37  ;;  %v5359_v25 = vadd.f32 %v10690_v55, %v5345_v52  ;;  %v5399_v57 = vadd.f32 %v10694_v56, %v5385_v41  ;;  %v9912_v52 = vld [vmem:[#allocation12 + $0xe8] sm:$0xff]  ;;  %v9911_v41 = vld [vmem:[#allocation12 + $0xe0] sm:$0xff] }
 0x3ae   :  { %5758 = vmatpush.bf16.msrb.mxu3 %v8963_v23  ;;  %v5510_v23 = vpop.f32.mrf.mxu1 }
 0x3af   :  { %v5373_v3 = vadd.f32 %v10692_v12, %v5359_v25  ;;  %v5413_v9 = vadd.f32 %v10698_v48, %v5399_v57  ;;  %v9903_v25 = vld [vmem:[#allocation12 + $0xa0] sm:$0xff]  ;;  %v9910_v57 = vld [vmem:[#allocation12 + $0xd8] sm:$0xff] }
 0x3b1   :  { %5745 = vmatpush.bf16.msrb.mxu2 %v8819_v18  ;;  %v5387_v36 = vadd.f32 %v10696_v58, %v5373_v3  ;;  %v5552_v32 = vpop.f32.mrf.mxu0  ;;  %v9902_v3 = vld [vmem:[#allocation12 + $0x98] sm:$0xff] }
 0x3b2   :  { %5759 = vmatpush.bf16.msrb.mxu3 %v8947_v0  ;;  %v5470_v38 = vpop.f32.mrf.mxu2  ;;  %v5427_v0 = vadd.f32 %v10700_v24, %v5413_v9 }
 0x3b3   :  { %v5471_v31 = vadd.f32 %v5470_v38, %v5457_v43  ;;  %v5401_v27 = vadd.f32 %v10702_v54, %v5387_v36  ;;  %v9909_v36 = vld [vmem:[#allocation12 + $0xd0] sm:$0xff] }
 0x3b5   :  { %5746 = vmatpush.bf16.msrb.mxu2 %v8803_v8  ;;  %v5415_v12 = vadd.f32 %v10704_v22, %v5401_v27  ;;  %v9900_v27 = vld [vmem:[#allocation12 + $0x88] sm:$0xff] }
 0x3b6   :  { %5760 = vmatpush.bf16.msrb.mxu3 %v8931_v33  ;;  %v5512_v44 = vpop.f32.mrf.mxu1 }
 0x3b7   :  { %v5429_v58 = vadd.f32 %v10706_v42, %v5415_v12 }
 0x3b8   :  { %5747 = vmatmul.bf16.vlgmr.msrb.gmra.mxu2 %v10654_v40  ;;  %v5483_v40 = vadd.f32 %v5482_v26, %v5469_v47  ;;  %v9906_v47 = vld [vmem:[#allocation12 + $0xb8] sm:$0xff] }
 0x3b9   :  { %5761 = vmatmul.bf16.vlgmr.msrb.gmra.mxu3 %v10656_v2  ;;  %v5484_v2 = vpop.f32.mrf.mxu3  ;;  %v5554_v6 = vpop.f32.mrf.mxu0  ;;  %6099 = vmatpush.bf16.msra.mxu2 %v9906_v47 }
 0x3ba   :  { %v5497_v37 = vadd.f32 %v5496_v17, %v5483_v40  ;;  %v5485_v10 = vadd.f32 %v5484_v2, %v5471_v31  ;;  %6113 = vmatpush.bf16.msra.mxu3 %v9914_v34 }
 0x3bb   :  { %v5524_v15 = vpop.f32.mrf.mxu2 }
 0x3bc   :  { %v5511_v50 = vadd.f32 %v5510_v23, %v5497_v37  ;;  %v5499_v55 = vadd.f32 %v5498_v35, %v5485_v10  ;;  %v4033_v10 = vperm.slane %v10708_v61, 2 }
 0x3bd   :  { %6100 = vmatpush.bf16.msra.mxu2 %v9905_v29 }
 0x3be   :  { %v5525_v46 = vadd.f32 %v5524_v15, %v5511_v50  ;;  %v5513_v5 = vadd.f32 %v5512_v44, %v5499_v55  ;;  %v5566_v42 = vpop.f32.mrf.mxu1  ;;  %6114 = vmatpush.bf16.msra.mxu3 %v9913_v4  ;;  %v4034_v50 = vperm.slane %v10708_v61, 3  ;;  %v5553_v9 = vadd.f32 %v5552_v32, %v4033_v10 }
 0x3c0   :  { %v5567_v44 = vadd.f32 %v5566_v42, %v5553_v9 }
 0x3c1   :  { %v5538_v63 = vpop.f32.mrf.mxu3  ;;  %v5608_v45 = vpop.f32.mrf.mxu0  ;;  %6101 = vmatpush.bf16.msra.mxu2 %v9904_v14 }
 0x3c2   :  { %v5539_v18 = vadd.f32 %v5538_v63, %v5525_v46  ;;  %6115 = vmatpush.bf16.msra.mxu3 %v9912_v52  ;;  %v9901_v63 = vld [vmem:[#allocation12 + $0x90] sm:$0xff] }
 0x3c3   :  { %v5526_v7 = vpop.f32.mrf.mxu2 }
 0x3c4   :  { %v5767_v56 = vpack.c.bf16 %v5539_v18, %v5427_v0  ;;  %v5527_v53 = vadd.f32 %v5526_v7, %v5513_v5  ;;  %v9908_v0 = vld [vmem:[#allocation12 + $0xc8] sm:$0xff]  ;;  %v9899_v7 = vld [vmem:[#allocation12 + $0x80] sm:$0xff] }
 0x3c5   :  { %6102 = vmatpush.bf16.msra.mxu2 %v9903_v25 }
 0x3c6   :  { %v5771_v1 = vunpack.c.l.bf16 %v5767_v56  ;;  %v5772_v48 = vunpack.c.h.bf16 %v5767_v56  ;;  %v5568_v19 = vpop.f32.mrf.mxu1  ;;  %6116 = vmatpush.bf16.msra.mxu3 %v9911_v41  ;;  %v5555_v56 = vadd.f32 %v5554_v6, %v4033_v10 }
 0x3c8   :  { %v5779_v33 = vmul.f32 0.20019531, %v5771_v1  ;;  %v5780_v11 = vmul.f32 0.20019531, %v5772_v48 }
 0x3c9   :  { %v5540_v28 = vpop.f32.mrf.mxu3  ;;  %v5610_v2 = vpop.f32.mrf.mxu0  ;;  %6103 = vmatpush.bf16.msra.mxu2 %v9902_v3 }
 0x3ca   :  { %v5541_v21 = vadd.f32 %v5540_v28, %v5527_v53  ;;  %v5799_v13 = vmax.f32 %v5771_v1, %v5779_v33  ;;  %v5800_v51 = vmax.f32 %v5772_v48, %v5780_v11  ;;  %6117 = vmatpush.bf16.msra.mxu3 %v9910_v57  ;;  %v9907_v53 = vld [vmem:[#allocation12 + $0xc0] sm:$0xff]  ;;  %v5569_v1 = vadd.f32 %v5568_v19, %v5555_v56 }
 0x3cc   :  { %v5769_v8 = vpack.c.bf16 %v5541_v21, %v5429_v58 }
 0x3cd   :  { %6104 = vmatpush.bf16.msra.mxu2 %v9901_v63 }
 0x3ce   :  { %v5775_v20 = vunpack.c.l.bf16 %v5769_v8  ;;  %v5776_v54 = vunpack.c.h.bf16 %v5769_v8  ;;  %v5622_v17 = vpop.f32.mrf.mxu1  ;;  %6118 = vmatpush.bf16.msra.mxu3 %v9909_v36 }
 0x3d0   :  { %v5783_v62 = vmul.f32 0.20019531, %v5775_v20  ;;  %v5784_v24 = vmul.f32 0.20019531, %v5776_v54 }
 0x3d1   :  { %6105 = vmatpush.bf16.msra.mxu2 %v9900_v27 }
 0x3d2   :  { %v5803_v22 = vmax.f32 %v5775_v20, %v5783_v62  ;;  %v5804_v59 = vmax.f32 %v5776_v54, %v5784_v24  ;;  %v5664_v37 = vpop.f32.mrf.mxu0  ;;  %6119 = vmatpush.bf16.msra.mxu3 %v9908_v0 }
 0x3d3   :  { %v5665_v46 = vadd.f32 %v5664_v37, %v4034_v50 }
 0x3d4   :  { %v5807_v39 = vpack.c.bf16 %v5803_v22, %v5799_v13  ;;  %v5808_v30 = vpack.c.bf16 %v5804_v59, %v5800_v51 }
 0x3d5   :  { %6106 = vmatpush.bf16.msra.mxu2 %v9899_v7 }
 0x3d6   :  { %6079 = vmatmul.bf16.vlgmr.msra.gmra.mxu0 %v5807_v39  ;;  %6093 = vmatmul.bf16.vlgmr.msra.gmra.mxu1 %v5808_v30  ;;  %v10734_v43 = vpop.f32.mrf.mxu1 }
 0x3d7   :  { %6120 = vmatpush.bf16.msra.mxu3 %v9907_v53 }
 0x3da   :  { %v5666_v18 = vpop.f32.mrf.mxu0 }
 0x3db   :  { %v5580_v16 = vpop.f32.mrf.mxu2  ;;  %v5667_v58 = vadd.f32 %v5666_v18, %v4034_v50 }
 0x3dc   :  { %v5594_v26 = vpop.f32.mrf.mxu3  ;;  %v5581_v61 = vadd.f32 %v5580_v16, %v5567_v44 }
 0x3de   :  { %v5678_v15 = vpop.f32.mrf.mxu1  ;;  %v5595_v48 = vadd.f32 %v5594_v26, %v5581_v61 }
 0x3df   :  { %v5679_v12 = vadd.f32 %v5678_v15, %v5665_v46 }
 0x3e0   :  { %v5609_v62 = vadd.f32 %v5608_v45, %v5595_v48 }
 0x3e2   :  { %v5623_v59 = vadd.f32 %v5622_v17, %v5609_v62 }
 0x3e3   :  { %v5582_v49 = vpop.f32.mrf.mxu2 }
 0x3e4   :  { %v5596_v60 = vpop.f32.mrf.mxu3  ;;  %v5583_v54 = vadd.f32 %v5582_v49, %v5569_v1 }
 0x3e6   :  { %v5680_v28 = vpop.f32.mrf.mxu1  ;;  %v5597_v22 = vadd.f32 %v5596_v60, %v5583_v54 }
 0x3e7   :  { %v5681_v20 = vadd.f32 %v5680_v28, %v5667_v58 }
 0x3e8   :  { %v5611_v16 = vadd.f32 %v5610_v2, %v5597_v22 }
 0x3ea   :  { %v5625_v4 = vadd.f32 %v10734_v43, %v5611_v16  ;;  %v6154_v16 = vstv %s10758_s8  ;;  %s10188_s8 = smov [#allocation17]  }
 0x3eb   :  { %s6184_s28 = sshll.u32 %s10188_s8, 4  ;;  %s6185_s28 = int_to_ptr.vmem [resolvable:$true] %s6184_s28 }
 0x3f2   :  { %v5720_v21 = vpop.f32.mrf.mxu0 }
 0x3f4   :  { %v5734_v51 = vpop.f32.mrf.mxu1 }
 0x3fa   :  { %v5722_v19 = vpop.f32.mrf.mxu0 }
 0x3fb   :  { %v10730_v40 = vpop.f32.mrf.mxu2 }
 0x3fc   :  { %v10732_v38 = vpop.f32.mrf.mxu3  ;;  %v5637_v6 = vadd.f32 %v10730_v40, %v5623_v59  ;;  %v5736_v45 = vpop.f32.mrf.mxu1 }
 0x3fe   :  { %v5651_v29 = vadd.f32 %v10732_v38, %v5637_v6 }
 0x403   :  { %v5638_v31 = vpop.f32.mrf.mxu2 }
 0x404   :  { %v10736_v23 = vpop.f32.mrf.mxu3  ;;  %v5639_v49 = vadd.f32 %v5638_v31, %v5625_v4 }
 0x406   :  { %v5653_v41 = vadd.f32 %v10736_v23, %v5639_v49  ;;  %v9932_v23 = vld [vmem:[#allocation14] ss:$0 sm:$0xff] }
 0x41b   :  { %v5692_v35 = vpop.f32.mrf.mxu2 }
 0x41c   :  { %v5706_v55 = vpop.f32.mrf.mxu3  ;;  %v5693_v5 = vadd.f32 %v5692_v35, %v5679_v12 }
 0x41e   :  { %v5707_v8 = vadd.f32 %v5706_v55, %v5693_v5 }
 0x420   :  { %v5721_v24 = vadd.f32 %v5720_v21, %v5707_v8 }
 0x422   :  { %v5735_v30 = vadd.f32 %v5734_v51, %v5721_v24  ;;  %v9933_v24 = vld [vmem:[#allocation15] ss:$0 sm:$0xff] }
 0x423   :  { %v5694_v33 = vpop.f32.mrf.mxu2 }
 0x424   :  { %v5708_v11 = vpop.f32.mrf.mxu3  ;;  %v5695_v13 = vadd.f32 %v5694_v33, %v5681_v20 }
 0x426   :  { %v5709_v39 = vadd.f32 %v5708_v11, %v5695_v13 }
 0x428   :  { %v5723_v47 = vadd.f32 %v5722_v19, %v5709_v39 }
 0x42a   :  { %v5737_v60 = vadd.f32 %v5736_v45, %v5723_v47 }
 0x43b   :  { %v5748_v32 = vpop.f32.mrf.mxu2 }
 0x43c   :  { %v5762_v42 = vpop.f32.mrf.mxu3  ;;  %v5749_v26 = vadd.f32 %v5748_v32, %v5735_v30 }
 0x43e   :  { %v5763_v34 = vadd.f32 %v5762_v42, %v5749_v26 }
 0x440   :  { %v5768_v14 = vpack.c.bf16 %v5763_v34, %v5651_v29 }
 0x442   :  { %v5773_v2 = vunpack.c.l.bf16 %v5768_v14  ;;  %v5774_v37 = vunpack.c.h.bf16 %v5768_v14 }
 0x443   :  { %v5750_v17 = vpop.f32.mrf.mxu2 }
 0x444   :  { %v5751_v52 = vadd.f32 %v5750_v17, %v5737_v60  ;;  %v5764_v25 = vpop.f32.mrf.mxu3  ;;  %v5781_v57 = vmul.f32 0.20019531, %v5773_v2  ;;  %v5782_v10 = vmul.f32 0.20019531, %v5774_v37  ;;  %v6169_v17 = vlaneseq }
 0x446   :  { %v5765_v40 = vadd.f32 %v5764_v25, %v5751_v52  ;;  %v5801_v43 = vmax.f32 %v5773_v2, %v5781_v57  ;;  %v5802_v36 = vmax.f32 %v5774_v37, %v5782_v10  ;;  %v6170_v25 = vand.u32 127, %v6169_v17 }
 0x448   :  { %v5770_v3 = vpack.c.bf16 %v5765_v40, %v5653_v41  ;;  %v6172_v41 = vadd.s32 4294967288, %v6170_v25 }
 0x44a   :  { %v5777_v50 = vunpack.c.l.bf16 %v5770_v3  ;;  %v5778_v15 = vunpack.c.h.bf16 %v5770_v3 }
 0x44c   :  { %v5785_v38 = vmul.f32 0.20019531, %v5777_v50  ;;  %v5786_v63 = vmul.f32 0.20019531, %v5778_v15 }
 0x44e   :  { %v5805_v31 = vmax.f32 %v5777_v50, %v5785_v38  ;;  %v5806_v9 = vmax.f32 %v5778_v15, %v5786_v63 }
 0x450   :  { %v5809_v46 = vpack.c.bf16 %v5805_v31, %v5801_v43  ;;  %v5810_v35 = vpack.c.bf16 %v5806_v9, %v5802_v36 }
 0x452   :  { %6107 = vmatmul.bf16.vlgmr.msra.gmra.mxu2 %v5809_v46  ;;  %6121 = vmatmul.bf16.vlgmr.msra.gmra.mxu3 %v5810_v35 }
 0x453   :  { %v6080_v55 = vpop.f32.mrf.mxu0  ;;  %v6094_v27 = vpop.f32.mrf.mxu1 }
 0x454   :  { %v6081_v18 = vadd.f32 %v9932_v23, %v6080_v55 }
 0x456   :  { %v6095_v0 = vadd.f32 %v6094_v27, %v6081_v18 }
 0x45b   :  { %v6082_v44 = vpop.f32.mrf.mxu0  ;;  %v6096_v28 = vpop.f32.mrf.mxu1 }
 0x45c   :  { %v6083_v5 = vadd.f32 %v9932_v23, %v6082_v44 }
 0x45e   :  { %v6097_v58 = vadd.f32 %v6096_v28, %v6083_v5 }
 0x4d5   :  { %v6108_v12 = vpop.f32.mrf.mxu2  ;;  %v6122_v56 = vpop.f32.mrf.mxu3 }
 0x4d6   :  { %v6109_v61 = vadd.f32 %v6108_v12, %v6095_v0 }
 0x4d8   :  { %v6123_v7 = vadd.f32 %v6122_v56, %v6109_v61 }
 0x4da   :  { %v6127_v53 = vpack.c.bf16 %v6123_v7, %v6123_v7 }
 0x4dc   :  { %v6129_v1 = vunpack.c.l.bf16 %v6127_v53 }
 0x4dd   :  { %v6110_v48 = vpop.f32.mrf.mxu2  ;;  %v6124_v33 = vpop.f32.mrf.mxu3 }
 0x4de   :  { %v6131_v21 = vmul.f32 0.20019531, %v6129_v1  ;;  %v6111_v8 = vadd.f32 %v6110_v48, %v6097_v58 }
 0x4e0   :  { %v6125_v11 = vadd.f32 %v6124_v33, %v6111_v8  ;;  %v6137_v20 = vmax.f32 %v6129_v1, %v6131_v21 }
 0x4e2   :  { %v6128_v54 = vpack.c.bf16 %v6125_v11, %v6125_v11  ;;  %v6139_v62 = vpack.c.bf16 %v6137_v20, %v6137_v20 }
 0x4e4   :  { %v6130_v13 = vunpack.c.l.bf16 %v6128_v54  ;;  %v6141_v51 = vunpack.c.l.bf16 %v6139_v62 }
 0x4e6   :  { %v6132_v22 = vmul.f32 0.20019531, %v6130_v13  ;;  %v6147_v59 = vmul.f32 %v9933_v24, %v6141_v51 }
 0x4e8   :  { %v6138_v39 = vmax.f32 %v6130_v13, %v6132_v22  ;;  %6149 = vadd.xlane.f32.xlu0 %v6147_v59 }
 0x4ea   :  { %v6140_v30 = vpack.c.bf16 %v6138_v39, %v6138_v39 }
 0x4ec   :  { %v6142_v32 = vunpack.c.l.bf16 %v6140_v30 }
 0x4ee   :  { %v6148_v42 = vmul.f32 %v9933_v24, %v6142_v32 }
 0x4f0   :  { %6151 = vadd.xlane.f32.xlu0 %v6148_v42 }
 0x55b   :  { %v6150_v6 = vpop.xlane.xlu0 %6149 }
 0x55c   :  { %v6155_v26 = vadd.f32 %v6154_v16, %v6150_v6 }
 0x55e   :  { %v6157_v19 = vsub.f32 0.0, %v6155_v26 }
 0x560   :  { %v6159_v47 = vmul.f32 1.442695, %v6157_v19 }
 0x562   :  { %9934 = vpow2.f32 %v6159_v47 }
 0x563   :  { %v6152_v34 = vpop.xlane.xlu0 %6151 }
 0x564   :  { %v6156_v29 = vadd.f32 %v6154_v16, %v6152_v34 }
 0x566   :  { %v6158_v4 = vsub.f32 0.0, %v6156_v29 }
 0x568   :  { %v6161_v45 = vmul.f32 1.442695, %v6158_v4  ;;  %v9935_v49 = vpop.eup %9934 }
 0x569   :  { %v6163_v14 = vadd.f32 1.0, %v9935_v49 }
 0x56a   :  { %9936 = vpow2.f32 %v6161_v45 }
 0x56b   :  { %9938 = vrcp.f32 %v6163_v14 }
 0x570   :  { %v9937_v60 = vpop.eup %9936 }
 0x571   :  { %v6164_v52 = vadd.f32 1.0, %v9937_v60  ;;  %v9939_v2 = vpop.eup %9938 }
 0x572   :  { %v6171_v40 = vperm.slane %v9939_v2, %v6170_v25 }
 0x573   :  { %9940 = vrcp.f32 %v6164_v52 }
 0x579   :  { %v9941_v37 = vpop.eup %9940 }
 0x57a   :  { %v6173_v3 = vperm.slane %v9941_v37, %v6172_v41 }
 0x57c   :  { %v6175_v57 = vsel %vm6174_vm0, %v6173_v3, %v6171_v40 }
 0x57d   :  { %6178 = vst.msk [vmem:[#allocation17] sm:$0x1] %vm6177_vm1, %v6175_v57 }
 0x57e   :  { %6189 = dma.vmem_to_hbm [thread:$0]  %s6185_s28, 16, %s6187_s10, [#allocation5]  }
 0x57f   :  { %10170 = dma.done.wait [#allocation5], 16  }
 0x580   :  { %10171 = vsyncadd [#allocation5], 4294967280 }
 0x581   :  { %6194 = vsyncpa [#allocation4], 1 }
 0x582   :  { %6195 = vsyncpa [#allocation7], 1 }
 0x583   :  { %6196 = vsyncpa [#allocation10], 1 }
 0x584   :  { %6197 = vsyncpa [#allocation13], 1 }
 0x585   :  { %6198 = vsyncpa [#allocation16], 1 }
 0x586   :  { %6199 = vsyncpa [#allocation5], 1 }

</bundles_post_ra>
